<compile_context>
chip_gen: v7x
topology: tpu7x:2x2x1
jax: 0.10.0
libtpu: 0.0.40
codegen_flags: <defaults>
</compile_context>

<pallas_src>
import functools

import jax
import jax.numpy as jnp
from jax.experimental import pallas as pl
from jax.experimental.pallas import tpu as pltpu


def _round_up(n, m):
    return ((n + m - 1) // m) * m


# -----------------------------------------------------------------------------
# Pallas kernel: fused multi-layer LSTM + vocab projection over the sequence
# -----------------------------------------------------------------------------
def _decoder_lstm_kernel(x_ref, w_ih_ref, w_hh_ref, b_ref, wo_ref, bo_ref,
                         out_ref, act_st, gx_st, *, num_steps, batch):
    """x_ref   : (N, D)      flattened padded inputs, N = (T+1) * Bp
       w_ih_ref: (L, D, 4D)  per-layer input->gates weight (pre-transposed,
                             gate k lane-aligned at column k*D)
       w_hh_ref: (L, D, 4D)  per-layer hidden->gates weight (pre-transposed)
       b_ref   : (L, 1, 4D)  per-layer combined bias (b_ih + b_hh)
       wo_ref  : (D, Vp)     output projection weight (pre-transposed)
       bo_ref  : (1, Vp)
       out_ref : (N, Vp)     flattened logits
       act_st  : (N, D)      layer activations (layer l overwrites layer l-1)
       gx_st   : (N, 4D)     precomputed input contribution to the gates
    """
    N, D = x_ref.shape
    L = w_ih_ref.shape[0]
    Vp = wo_ref.shape[-1]
    mxu_dtype = w_ih_ref.dtype
    T, Bp = num_steps, batch

    for l in range(L):                                    # static layer unroll
        # Non-recurrent input->gates term for ALL timesteps: one big MXU
        # matmul (M = T*Bp rows), bias folded in once (hoisted off the loop).
        x_all = (x_ref[...] if l == 0 else act_st[...]).astype(mxu_dtype)
        gx_st[...] = (jnp.dot(x_all, w_ih_ref[l],
                              preferred_element_type=jnp.float32)
                      + jnp.broadcast_to(b_ref[l], (N, 4 * D)))

        def step(t, carry):
            h, c = carry
            row = pl.ds(pl.multiple_of(t * Bp, Bp), Bp)
            gates = gx_st[row, :] + jnp.dot(
                h.astype(mxu_dtype), w_hh_ref[l],
                preferred_element_type=jnp.float32)
            # torch.nn.LSTM gate order i, f, g, o; each block at lane k*D.
            i_g = jax.nn.sigmoid(gates[:, 0 * D:1 * D])
            f_g = jax.nn.sigmoid(gates[:, 1 * D:2 * D])
            g_g = jnp.tanh(gates[:, 2 * D:3 * D])
            o_g = jax.nn.sigmoid(gates[:, 3 * D:4 * D])
            c_new = f_g * c + i_g * g_g
            h_new = o_g * jnp.tanh(c_new)
            act_st[row, :] = h_new
            return (h_new, c_new)

        # PyTorch default: zero initial (h, c) for every layer.
        zeros = jnp.zeros((Bp, D), jnp.float32)
        jax.lax.fori_loop(0, T, step, (zeros, zeros), unroll=True)

    # Vocab projection for the whole sequence: one big lane-dense matmul.
    logits = (jnp.dot(act_st[...].astype(mxu_dtype), wo_ref[...],
                      preferred_element_type=jnp.float32)
              + jnp.broadcast_to(bo_ref[...], (N, Vp)))
    out_ref[...] = logits.astype(out_ref.dtype)


# -----------------------------------------------------------------------------
# Parameter construction / packing
# -----------------------------------------------------------------------------
def init_params(key, embed_size, hidden_size, vocab_size, num_layers):
    """Torch-shaped parameters (same tensor shapes as the nn.Module)."""
    ks = jax.random.split(key, 3 + 4 * num_layers)
    bound = 1.0 / jnp.sqrt(hidden_size)
    p = {
        # nn.Embedding(vocab_size, embed_size): N(0, 1)
        "embed": jax.random.normal(ks[0], (vocab_size, embed_size), jnp.float32),
        # nn.Linear(hidden_size, vocab_size)
        "w_out": jax.random.uniform(ks[1], (vocab_size, hidden_size),
                                    jnp.float32, -bound, bound),
        "b_out": jax.random.uniform(ks[2], (vocab_size,),
                                    jnp.float32, -bound, bound),
        "w_ih": [], "w_hh": [], "b_ih": [], "b_hh": [],
    }
    for l in range(num_layers):
        in_size = embed_size if l == 0 else hidden_size
        k0, k1, k2, k3 = ks[3 + 4 * l: 3 + 4 * (l + 1)]
        p["w_ih"].append(jax.random.uniform(
            k0, (4 * hidden_size, in_size), jnp.float32, -bound, bound))
        p["w_hh"].append(jax.random.uniform(
            k1, (4 * hidden_size, hidden_size), jnp.float32, -bound, bound))
        p["b_ih"].append(jax.random.uniform(
            k2, (4 * hidden_size,), jnp.float32, -bound, bound))
        p["b_hh"].append(jax.random.uniform(
            k3, (4 * hidden_size,), jnp.float32, -bound, bound))
    return p


def pack_params(p, *, mxu_dtype=jnp.float32):
    """Pad / transpose torch-shaped params for the kernel.

    D  = round_up(max(E, H), 128): common lane-aligned activation width.
    Vp = round_up(V, 128).
    Zero padding is exact: padded gate pre-activations are 0, so padded h/c
    lanes stay identically 0 through the recurrence and contribute nothing.
    Pass mxu_dtype=jnp.bfloat16 on v6e/v7x for bf16 MXU operands (f32 accum).
    """
    V, E = p["embed"].shape
    H = p["w_hh"][0].shape[1]
    L = len(p["w_ih"])
    D = _round_up(max(E, H), 128)
    Vp = _round_up(V, 128)

    def pad_gate_cols(w4h):  # (rows, 4H) -> (rows, 4D), gate k at [k*D, k*D+H)
        out = jnp.zeros((w4h.shape[0], 4 * D), jnp.float32)
        for k in range(4):
            out = out.at[:, k * D:k * D + H].set(w4h[:, k * H:(k + 1) * H])
        return out

    w_ih_t, w_hh_t, b_fused = [], [], []
    for l in range(L):
        in_l = E if l == 0 else H
        wi = jnp.zeros((D, 4 * D), jnp.float32)
        wi = wi.at[:in_l, :].set(pad_gate_cols(p["w_ih"][l].T))
        wh = jnp.zeros((D, 4 * D), jnp.float32)
        wh = wh.at[:H, :].set(pad_gate_cols(p["w_hh"][l].T))
        w_ih_t.append(wi)
        w_hh_t.append(wh)
        b_fused.append(pad_gate_cols((p["b_ih"][l] + p["b_hh"][l])[None, :]))

    w_out_t = jnp.zeros((D, Vp), jnp.float32).at[:H, :V].set(p["w_out"].T)
    b_out = jnp.zeros((1, Vp), jnp.float32).at[0, :V].set(p["b_out"])

    return {
        "embed": p["embed"],
        "w_ih_t": jnp.stack(w_ih_t).astype(mxu_dtype),   # (L, D, 4D)
        "w_hh_t": jnp.stack(w_hh_t).astype(mxu_dtype),   # (L, D, 4D)
        "b_fused": jnp.stack(b_fused),                   # (L, 1, 4D) f32
        "w_out_t": w_out_t.astype(mxu_dtype),            # (D, Vp)
        "b_out": b_out,                                  # (1, Vp) f32
    }


# -----------------------------------------------------------------------------
# Forward
# -----------------------------------------------------------------------------
@jax.jit
def decoder_rnn_forward(packed, features, captions):
    """features: (B, E) f32, captions: (T, B) i32 -> (T+1, B, V) f32 logits."""
    V, E = packed["embed"].shape
    B = features.shape[0]
    T = captions.shape[0]
    L, D, _ = packed["w_ih_t"].shape
    Vp = packed["w_out_t"].shape[1]

    # Embedding lookup (gather) -- plain-JAX glue.
    emb = jnp.take(packed["embed"], captions, axis=0)         # (T, B, E)
    # TODO(synk): nn.Dropout(0.5) training-mode random mask omitted; treated as
    # eval-mode identity (the deterministic expectation path).
    x = jnp.concatenate([features[None], emb], axis=0)        # (T+1, B, E)

    # Pad batch to a full f32 sublane group, lanes to D (multiple of 128),
    # and flatten the (time, batch) axes OUTSIDE the kernel (free in XLA).
    Bp = max(8, _round_up(B, 8))
    Tp1 = T + 1
    N = Tp1 * Bp
    x = jnp.pad(x, ((0, 0), (0, Bp - B), (0, D - E)))         # (T+1, Bp, D)
    x = x.reshape(N, D)

    kernel = functools.partial(_decoder_lstm_kernel, num_steps=Tp1, batch=Bp)

    out = pl.pallas_call(
        kernel,
        out_shape=jax.ShapeDtypeStruct((N, Vp), jnp.float32),
        scratch_shapes=[
            pltpu.VMEM((N, D), jnp.float32),       # layer activations
            pltpu.VMEM((N, 4 * D), jnp.float32),   # input-gate contributions
        ],
    )(x, packed["w_ih_t"], packed["w_hh_t"], packed["b_fused"],
      packed["w_out_t"], packed["b_out"])

    return out.reshape(Tp1, Bp, Vp)[:, :B, :V]


# -----------------------------------------------------------------------------
# Pure-JAX reference (torch-shaped params) for a sanity check
# -----------------------------------------------------------------------------
def decoder_rnn_reference(p, features, captions):
    emb = jnp.take(p["embed"], captions, axis=0)
    x = jnp.concatenate([features[None], emb], axis=0)
    H = p["w_hh"][0].shape[1]
    for l in range(len(p["w_ih"])):
        w_ih_t, w_hh_t = p["w_ih"][l].T, p["w_hh"][l].T
        b = (p["b_ih"][l] + p["b_hh"][l])[None, :]
        B = x.shape[1]
        h = jnp.zeros((B, H), jnp.float32)
        c = jnp.zeros((B, H), jnp.float32)
        outs = []
        for t in range(x.shape[0]):
            gates = x[t] @ w_ih_t + h @ w_hh_t + b
            i_g = jax.nn.sigmoid(gates[:, 0 * H:1 * H])
            f_g = jax.nn.sigmoid(gates[:, 1 * H:2 * H])
            g_g = jnp.tanh(gates[:, 2 * H:3 * H])
            o_g = jax.nn.sigmoid(gates[:, 3 * H:4 * H])
            c = f_g * c + i_g * g_g
            h = o_g * jnp.tanh(c)
            outs.append(h)
        x = jnp.stack(outs, axis=0)
    return x @ p["w_out"].T + p["b_out"][None, None, :]


# -----------------------------------------------------------------------------
if __name__ == "__main__":
    embed_size, hidden_size, vocab_size, num_layers = 32, 32, 64, 2
    T, B = 8, 2

    key = jax.random.PRNGKey(0)
    k_params, k_feat, k_cap = jax.random.split(key, 3)

    params = init_params(k_params, embed_size, hidden_size, vocab_size,
                         num_layers)
    packed = pack_params(params)   # use mxu_dtype=jnp.bfloat16 on v6e/v7x
    features = jax.random.normal(k_feat, (B, embed_size), jnp.float32)
    captions = jax.random.randint(k_cap, (T, B), 0, vocab_size, jnp.int32)

    out = decoder_rnn_forward(packed, features, captions)
    out = jax.block_until_ready(out)

    assert out.shape == (T + 1, B, vocab_size), out.shape
    ref = decoder_rnn_reference(params, features, captions)
    assert jnp.allclose(out, ref, atol=1e-4, rtol=1e-4), (
        float(jnp.max(jnp.abs(out - ref))))

    print("KERNEL_OK")
</pallas_src>

<mosaic_0001>
module attributes {stable_mosaic.version = 11 : i64} {
  func.func @_decoder_lstm_kernel(%arg0: memref<72x128xf32, #tpu.memory_space<vmem>>, %arg1: memref<2x128x512xf32, #tpu.memory_space<vmem>>, %arg2: memref<2x128x512xf32, #tpu.memory_space<vmem>>, %arg3: memref<2x1x512xf32, #tpu.memory_space<vmem>>, %arg4: memref<128x128xf32, #tpu.memory_space<vmem>>, %arg5: memref<1x128xf32, #tpu.memory_space<vmem>>, %arg6: memref<72x128xf32, #tpu.memory_space<vmem>>, %arg7: memref<72x128xf32, #tpu.memory_space<vmem>>, %arg8: memref<72x512xf32, #tpu.memory_space<vmem>>) attributes {dimension_semantics = [], scalar_prefetch = 0 : i64, scratch_operands = 2 : i64, tpu.core_type = #tpu.core_type<tc>} {
    %c0 = arith.constant 0 : index
    %c0_0 = arith.constant 0 : index
    %0 = vector.load %arg0[%c0, %c0_0] : memref<72x128xf32, #tpu.memory_space<vmem>>, vector<72x128xf32>
    %c0_1 = arith.constant 0 : index
    %c0_2 = arith.constant 0 : index
    %c0_3 = arith.constant 0 : index
    %1 = vector.load %arg1[%c0_1, %c0_2, %c0_3] : memref<2x128x512xf32, #tpu.memory_space<vmem>>, vector<1x128x512xf32>
    %2 = vector.shape_cast %1 : vector<1x128x512xf32> to vector<128x512xf32>
    %cst = arith.constant dense<0.000000e+00> : vector<72x512xf32>
    %3 = tpu.matmul %0, %2, %cst {dimension_numbers = #tpu.dot_dimension_numbers<[1], [0], [0], [1], [0, 0, 1, 1], [], []>} : vector<72x128xf32>, vector<128x512xf32>, vector<72x512xf32> -> vector<72x512xf32>
    %c0_4 = arith.constant 0 : index
    %c0_5 = arith.constant 0 : index
    %c0_6 = arith.constant 0 : index
    %4 = vector.load %arg3[%c0_4, %c0_5, %c0_6] : memref<2x1x512xf32, #tpu.memory_space<vmem>>, vector<1x1x512xf32>
    %5 = vector.shape_cast %4 : vector<1x1x512xf32> to vector<1x512xf32>
    %6 = vector.shape_cast %5 : vector<1x512xf32> to vector<1x512xf32>
    %7 = vector.broadcast %6 : vector<1x512xf32> to vector<72x512xf32>
    %8 = arith.addf %3, %7 : vector<72x512xf32>
    %c0_7 = arith.constant 0 : index
    %c0_8 = arith.constant 0 : index
    %9 = vector.load %arg8[%c0_7, %c0_8] : memref<72x512xf32, #tpu.memory_space<vmem>>, vector<72x512xf32>
    tpu.vector_store %arg8[%c0_7, %c0_8], %8 {strides = array<i32>} : memref<72x512xf32, #tpu.memory_space<vmem>>, vector<72x512xf32>,
    %cst_9 = arith.constant 0.000000e+00 : f32
    %10 = vector.broadcast %cst_9 : f32 to vector<8x128xf32>
    %c0_i32 = arith.constant 0 : i32
    %c8_i32 = arith.constant 8 : i32
    %11 = arith.muli %c0_i32, %c8_i32 : i32
    %12 = tpu.assume_multiple %11, 8 : i32
    %13 = arith.index_cast %12 : i32 to index
    %c0_10 = arith.constant 0 : index
    %14 = vector.load %arg8[%13, %c0_10] : memref<72x512xf32, #tpu.memory_space<vmem>>, vector<8x512xf32>
    %c0_11 = arith.constant 0 : index
    %c0_12 = arith.constant 0 : index
    %c0_13 = arith.constant 0 : index
    %15 = vector.load %arg2[%c0_11, %c0_12, %c0_13] : memref<2x128x512xf32, #tpu.memory_space<vmem>>, vector<1x128x512xf32>
    %16 = vector.shape_cast %15 : vector<1x128x512xf32> to vector<128x512xf32>
    %cst_14 = arith.constant dense<0.000000e+00> : vector<8x512xf32>
    %17 = tpu.matmul %10, %16, %cst_14 {dimension_numbers = #tpu.dot_dimension_numbers<[1], [0], [0], [1], [0, 0, 1, 1], [], []>} : vector<8x128xf32>, vector<128x512xf32>, vector<8x512xf32> -> vector<8x512xf32>
    %18 = arith.addf %14, %17 : vector<8x512xf32>
    %19 = vector.extract_strided_slice %18 {offsets = [0, 0], sizes = [8, 128], strides = [1, 1]} : vector<8x512xf32> to vector<8x128xf32>
    %20 = arith.negf %19 : vector<8x128xf32>
    %21 = math.exp %20 : vector<8x128xf32>
    %cst_15 = arith.constant 1.000000e+00 : f32
    %22 = vector.broadcast %cst_15 : f32 to vector<8x128xf32>
    %23 = arith.addf %22, %21 : vector<8x128xf32>
    %24 = arith.divf %22, %23 : vector<8x128xf32>
    %25 = vector.extract_strided_slice %18 {offsets = [0, 128], sizes = [8, 128], strides = [1, 1]} : vector<8x512xf32> to vector<8x128xf32>
    %26 = arith.negf %25 : vector<8x128xf32>
    %27 = math.exp %26 : vector<8x128xf32>
    %cst_16 = arith.constant 1.000000e+00 : f32
    %28 = vector.broadcast %cst_16 : f32 to vector<8x128xf32>
    %29 = arith.addf %28, %27 : vector<8x128xf32>
    %30 = arith.divf %28, %29 : vector<8x128xf32>
    %31 = vector.extract_strided_slice %18 {offsets = [0, 256], sizes = [8, 128], strides = [1, 1]} : vector<8x512xf32> to vector<8x128xf32>
    %32 = math.tanh %31 : vector<8x128xf32>
    %33 = vector.extract_strided_slice %18 {offsets = [0, 384], sizes = [8, 128], strides = [1, 1]} : vector<8x512xf32> to vector<8x128xf32>
    %34 = arith.negf %33 : vector<8x128xf32>
    %35 = math.exp %34 : vector<8x128xf32>
    %cst_17 = arith.constant 1.000000e+00 : f32
    %36 = vector.broadcast %cst_17 : f32 to vector<8x128xf32>
    %37 = arith.addf %36, %35 : vector<8x128xf32>
    %38 = arith.divf %36, %37 : vector<8x128xf32>
    %39 = arith.mulf %30, %10 : vector<8x128xf32>
    %40 = arith.mulf %24, %32 : vector<8x128xf32>
    %41 = arith.addf %39, %40 : vector<8x128xf32>
    %42 = math.tanh %41 : vector<8x128xf32>
    %43 = arith.mulf %38, %42 : vector<8x128xf32>
    %44 = arith.index_cast %12 : i32 to index
    %c0_18 = arith.constant 0 : index
    %45 = vector.load %arg7[%44, %c0_18] : memref<72x128xf32, #tpu.memory_space<vmem>>, vector<8x128xf32>
    tpu.vector_store %arg7[%44, %c0_18], %43 {strides = array<i32>} : memref<72x128xf32, #tpu.memory_space<vmem>>, vector<8x128xf32>,
    %c1_i32 = arith.constant 1 : i32
    %c8_i32_19 = arith.constant 8 : i32
    %46 = arith.muli %c1_i32, %c8_i32_19 : i32
    %47 = tpu.assume_multiple %46, 8 : i32
    %48 = arith.index_cast %47 : i32 to index
    %c0_20 = arith.constant 0 : index
    %49 = vector.load %arg8[%48, %c0_20] : memref<72x512xf32, #tpu.memory_space<vmem>>, vector<8x512xf32>
    %c0_21 = arith.constant 0 : index
    %c0_22 = arith.constant 0 : index
    %c0_23 = arith.constant 0 : index
    %50 = vector.load %arg2[%c0_21, %c0_22, %c0_23] : memref<2x128x512xf32, #tpu.memory_space<vmem>>, vector<1x128x512xf32>
    %51 = vector.shape_cast %50 : vector<1x128x512xf32> to vector<128x512xf32>
    %cst_24 = arith.constant dense<0.000000e+00> : vector<8x512xf32>
    %52 = tpu.matmul %43, %51, %cst_24 {dimension_numbers = #tpu.dot_dimension_numbers<[1], [0], [0], [1], [0, 0, 1, 1], [], []>} : vector<8x128xf32>, vector<128x512xf32>, vector<8x512xf32> -> vector<8x512xf32>
    %53 = arith.addf %49, %52 : vector<8x512xf32>
    %54 = vector.extract_strided_slice %53 {offsets = [0, 0], sizes = [8, 128], strides = [1, 1]} : vector<8x512xf32> to vector<8x128xf32>
    %55 = arith.negf %54 : vector<8x128xf32>
    %56 = math.exp %55 : vector<8x128xf32>
    %cst_25 = arith.constant 1.000000e+00 : f32
    %57 = vector.broadcast %cst_25 : f32 to vector<8x128xf32>
    %58 = arith.addf %57, %56 : vector<8x128xf32>
    %59 = arith.divf %57, %58 : vector<8x128xf32>
    %60 = vector.extract_strided_slice %53 {offsets = [0, 128], sizes = [8, 128], strides = [1, 1]} : vector<8x512xf32> to vector<8x128xf32>
    %61 = arith.negf %60 : vector<8x128xf32>
    %62 = math.exp %61 : vector<8x128xf32>
    %cst_26 = arith.constant 1.000000e+00 : f32
    %63 = vector.broadcast %cst_26 : f32 to vector<8x128xf32>
    %64 = arith.addf %63, %62 : vector<8x128xf32>
    %65 = arith.divf %63, %64 : vector<8x128xf32>
    %66 = vector.extract_strided_slice %53 {offsets = [0, 256], sizes = [8, 128], strides = [1, 1]} : vector<8x512xf32> to vector<8x128xf32>
    %67 = math.tanh %66 : vector<8x128xf32>
    %68 = vector.extract_strided_slice %53 {offsets = [0, 384], sizes = [8, 128], strides = [1, 1]} : vector<8x512xf32> to vector<8x128xf32>
    %69 = arith.negf %68 : vector<8x128xf32>
    %70 = math.exp %69 : vector<8x128xf32>
    %cst_27 = arith.constant 1.000000e+00 : f32
    %71 = vector.broadcast %cst_27 : f32 to vector<8x128xf32>
    %72 = arith.addf %71, %70 : vector<8x128xf32>
    %73 = arith.divf %71, %72 : vector<8x128xf32>
    %74 = arith.mulf %65, %41 : vector<8x128xf32>
    %75 = arith.mulf %59, %67 : vector<8x128xf32>
    %76 = arith.addf %74, %75 : vector<8x128xf32>
    %77 = math.tanh %76 : vector<8x128xf32>
    %78 = arith.mulf %73, %77 : vector<8x128xf32>
    %79 = arith.index_cast %47 : i32 to index
    %c0_28 = arith.constant 0 : index
    %80 = vector.load %arg7[%79, %c0_28] : memref<72x128xf32, #tpu.memory_space<vmem>>, vector<8x128xf32>
    tpu.vector_store %arg7[%79, %c0_28], %78 {strides = array<i32>} : memref<72x128xf32, #tpu.memory_space<vmem>>, vector<8x128xf32>,
    %c2_i32 = arith.constant 2 : i32
    %c8_i32_29 = arith.constant 8 : i32
    %81 = arith.muli %c2_i32, %c8_i32_29 : i32
    %82 = tpu.assume_multiple %81, 8 : i32
    %83 = arith.index_cast %82 : i32 to index
    %c0_30 = arith.constant 0 : index
    %84 = vector.load %arg8[%83, %c0_30] : memref<72x512xf32, #tpu.memory_space<vmem>>, vector<8x512xf32>
    %c0_31 = arith.constant 0 : index
    %c0_32 = arith.constant 0 : index
    %c0_33 = arith.constant 0 : index
    %85 = vector.load %arg2[%c0_31, %c0_32, %c0_33] : memref<2x128x512xf32, #tpu.memory_space<vmem>>, vector<1x128x512xf32>
    %86 = vector.shape_cast %85 : vector<1x128x512xf32> to vector<128x512xf32>
    %cst_34 = arith.constant dense<0.000000e+00> : vector<8x512xf32>
    %87 = tpu.matmul %78, %86, %cst_34 {dimension_numbers = #tpu.dot_dimension_numbers<[1], [0], [0], [1], [0, 0, 1, 1], [], []>} : vector<8x128xf32>, vector<128x512xf32>, vector<8x512xf32> -> vector<8x512xf32>
    %88 = arith.addf %84, %87 : vector<8x512xf32>
    %89 = vector.extract_strided_slice %88 {offsets = [0, 0], sizes = [8, 128], strides = [1, 1]} : vector<8x512xf32> to vector<8x128xf32>
    %90 = arith.negf %89 : vector<8x128xf32>
    %91 = math.exp %90 : vector<8x128xf32>
    %cst_35 = arith.constant 1.000000e+00 : f32
    %92 = vector.broadcast %cst_35 : f32 to vector<8x128xf32>
    %93 = arith.addf %92, %91 : vector<8x128xf32>
    %94 = arith.divf %92, %93 : vector<8x128xf32>
    %95 = vector.extract_strided_slice %88 {offsets = [0, 128], sizes = [8, 128], strides = [1, 1]} : vector<8x512xf32> to vector<8x128xf32>
    %96 = arith.negf %95 : vector<8x128xf32>
    %97 = math.exp %96 : vector<8x128xf32>
    %cst_36 = arith.constant 1.000000e+00 : f32
    %98 = vector.broadcast %cst_36 : f32 to vector<8x128xf32>
    %99 = arith.addf %98, %97 : vector<8x128xf32>
    %100 = arith.divf %98, %99 : vector<8x128xf32>
    %101 = vector.extract_strided_slice %88 {offsets = [0, 256], sizes = [8, 128], strides = [1, 1]} : vector<8x512xf32> to vector<8x128xf32>
    %102 = math.tanh %101 : vector<8x128xf32>
    %103 = vector.extract_strided_slice %88 {offsets = [0, 384], sizes = [8, 128], strides = [1, 1]} : vector<8x512xf32> to vector<8x128xf32>
    %104 = arith.negf %103 : vector<8x128xf32>
    %105 = math.exp %104 : vector<8x128xf32>
    %cst_37 = arith.constant 1.000000e+00 : f32
    %106 = vector.broadcast %cst_37 : f32 to vector<8x128xf32>
    %107 = arith.addf %106, %105 : vector<8x128xf32>
    %108 = arith.divf %106, %107 : vector<8x128xf32>
    %109 = arith.mulf %100, %76 : vector<8x128xf32>
    %110 = arith.mulf %94, %102 : vector<8x128xf32>
    %111 = arith.addf %109, %110 : vector<8x128xf32>
    %112 = math.tanh %111 : vector<8x128xf32>
    %113 = arith.mulf %108, %112 : vector<8x128xf32>
    %114 = arith.index_cast %82 : i32 to index
    %c0_38 = arith.constant 0 : index
    %115 = vector.load %arg7[%114, %c0_38] : memref<72x128xf32, #tpu.memory_space<vmem>>, vector<8x128xf32>
    tpu.vector_store %arg7[%114, %c0_38], %113 {strides = array<i32>} : memref<72x128xf32, #tpu.memory_space<vmem>>, vector<8x128xf32>,
    %c3_i32 = arith.constant 3 : i32
    %c8_i32_39 = arith.constant 8 : i32
    %116 = arith.muli %c3_i32, %c8_i32_39 : i32
    %117 = tpu.assume_multiple %116, 8 : i32
    %118 = arith.index_cast %117 : i32 to index
    %c0_40 = arith.constant 0 : index
    %119 = vector.load %arg8[%118, %c0_40] : memref<72x512xf32, #tpu.memory_space<vmem>>, vector<8x512xf32>
    %c0_41 = arith.constant 0 : index
    %c0_42 = arith.constant 0 : index
    %c0_43 = arith.constant 0 : index
    %120 = vector.load %arg2[%c0_41, %c0_42, %c0_43] : memref<2x128x512xf32, #tpu.memory_space<vmem>>, vector<1x128x512xf32>
    %121 = vector.shape_cast %120 : vector<1x128x512xf32> to vector<128x512xf32>
    %cst_44 = arith.constant dense<0.000000e+00> : vector<8x512xf32>
    %122 = tpu.matmul %113, %121, %cst_44 {dimension_numbers = #tpu.dot_dimension_numbers<[1], [0], [0], [1], [0, 0, 1, 1], [], []>} : vector<8x128xf32>, vector<128x512xf32>, vector<8x512xf32> -> vector<8x512xf32>
    %123 = arith.addf %119, %122 : vector<8x512xf32>
    %124 = vector.extract_strided_slice %123 {offsets = [0, 0], sizes = [8, 128], strides = [1, 1]} : vector<8x512xf32> to vector<8x128xf32>
    %125 = arith.negf %124 : vector<8x128xf32>
    %126 = math.exp %125 : vector<8x128xf32>
    %cst_45 = arith.constant 1.000000e+00 : f32
    %127 = vector.broadcast %cst_45 : f32 to vector<8x128xf32>
    %128 = arith.addf %127, %126 : vector<8x128xf32>
    %129 = arith.divf %127, %128 : vector<8x128xf32>
    %130 = vector.extract_strided_slice %123 {offsets = [0, 128], sizes = [8, 128], strides = [1, 1]} : vector<8x512xf32> to vector<8x128xf32>
    %131 = arith.negf %130 : vector<8x128xf32>
    %132 = math.exp %131 : vector<8x128xf32>
    %cst_46 = arith.constant 1.000000e+00 : f32
    %133 = vector.broadcast %cst_46 : f32 to vector<8x128xf32>
    %134 = arith.addf %133, %132 : vector<8x128xf32>
    %135 = arith.divf %133, %134 : vector<8x128xf32>
    %136 = vector.extract_strided_slice %123 {offsets = [0, 256], sizes = [8, 128], strides = [1, 1]} : vector<8x512xf32> to vector<8x128xf32>
    %137 = math.tanh %136 : vector<8x128xf32>
    %138 = vector.extract_strided_slice %123 {offsets = [0, 384], sizes = [8, 128], strides = [1, 1]} : vector<8x512xf32> to vector<8x128xf32>
    %139 = arith.negf %138 : vector<8x128xf32>
    %140 = math.exp %139 : vector<8x128xf32>
    %cst_47 = arith.constant 1.000000e+00 : f32
    %141 = vector.broadcast %cst_47 : f32 to vector<8x128xf32>
    %142 = arith.addf %141, %140 : vector<8x128xf32>
    %143 = arith.divf %141, %142 : vector<8x128xf32>
    %144 = arith.mulf %135, %111 : vector<8x128xf32>
    %145 = arith.mulf %129, %137 : vector<8x128xf32>
    %146 = arith.addf %144, %145 : vector<8x128xf32>
    %147 = math.tanh %146 : vector<8x128xf32>
    %148 = arith.mulf %143, %147 : vector<8x128xf32>
    %149 = arith.index_cast %117 : i32 to index
    %c0_48 = arith.constant 0 : index
    %150 = vector.load %arg7[%149, %c0_48] : memref<72x128xf32, #tpu.memory_space<vmem>>, vector<8x128xf32>
    tpu.vector_store %arg7[%149, %c0_48], %148 {strides = array<i32>} : memref<72x128xf32, #tpu.memory_space<vmem>>, vector<8x128xf32>,
    %c4_i32 = arith.constant 4 : i32
    %c8_i32_49 = arith.constant 8 : i32
    %151 = arith.muli %c4_i32, %c8_i32_49 : i32
    %152 = tpu.assume_multiple %151, 8 : i32
    %153 = arith.index_cast %152 : i32 to index
    %c0_50 = arith.constant 0 : index
    %154 = vector.load %arg8[%153, %c0_50] : memref<72x512xf32, #tpu.memory_space<vmem>>, vector<8x512xf32>
    %c0_51 = arith.constant 0 : index
    %c0_52 = arith.constant 0 : index
    %c0_53 = arith.constant 0 : index
    %155 = vector.load %arg2[%c0_51, %c0_52, %c0_53] : memref<2x128x512xf32, #tpu.memory_space<vmem>>, vector<1x128x512xf32>
    %156 = vector.shape_cast %155 : vector<1x128x512xf32> to vector<128x512xf32>
    %cst_54 = arith.constant dense<0.000000e+00> : vector<8x512xf32>
    %157 = tpu.matmul %148, %156, %cst_54 {dimension_numbers = #tpu.dot_dimension_numbers<[1], [0], [0], [1], [0, 0, 1, 1], [], []>} : vector<8x128xf32>, vector<128x512xf32>, vector<8x512xf32> -> vector<8x512xf32>
    %158 = arith.addf %154, %157 : vector<8x512xf32>
    %159 = vector.extract_strided_slice %158 {offsets = [0, 0], sizes = [8, 128], strides = [1, 1]} : vector<8x512xf32> to vector<8x128xf32>
    %160 = arith.negf %159 : vector<8x128xf32>
    %161 = math.exp %160 : vector<8x128xf32>
    %cst_55 = arith.constant 1.000000e+00 : f32
    %162 = vector.broadcast %cst_55 : f32 to vector<8x128xf32>
    %163 = arith.addf %162, %161 : vector<8x128xf32>
    %164 = arith.divf %162, %163 : vector<8x128xf32>
    %165 = vector.extract_strided_slice %158 {offsets = [0, 128], sizes = [8, 128], strides = [1, 1]} : vector<8x512xf32> to vector<8x128xf32>
    %166 = arith.negf %165 : vector<8x128xf32>
    %167 = math.exp %166 : vector<8x128xf32>
    %cst_56 = arith.constant 1.000000e+00 : f32
    %168 = vector.broadcast %cst_56 : f32 to vector<8x128xf32>
    %169 = arith.addf %168, %167 : vector<8x128xf32>
    %170 = arith.divf %168, %169 : vector<8x128xf32>
    %171 = vector.extract_strided_slice %158 {offsets = [0, 256], sizes = [8, 128], strides = [1, 1]} : vector<8x512xf32> to vector<8x128xf32>
    %172 = math.tanh %171 : vector<8x128xf32>
    %173 = vector.extract_strided_slice %158 {offsets = [0, 384], sizes = [8, 128], strides = [1, 1]} : vector<8x512xf32> to vector<8x128xf32>
    %174 = arith.negf %173 : vector<8x128xf32>
    %175 = math.exp %174 : vector<8x128xf32>
    %cst_57 = arith.constant 1.000000e+00 : f32
    %176 = vector.broadcast %cst_57 : f32 to vector<8x128xf32>
    %177 = arith.addf %176, %175 : vector<8x128xf32>
    %178 = arith.divf %176, %177 : vector<8x128xf32>
    %179 = arith.mulf %170, %146 : vector<8x128xf32>
    %180 = arith.mulf %164, %172 : vector<8x128xf32>
    %181 = arith.addf %179, %180 : vector<8x128xf32>
    %182 = math.tanh %181 : vector<8x128xf32>
    %183 = arith.mulf %178, %182 : vector<8x128xf32>
    %184 = arith.index_cast %152 : i32 to index
    %c0_58 = arith.constant 0 : index
    %185 = vector.load %arg7[%184, %c0_58] : memref<72x128xf32, #tpu.memory_space<vmem>>, vector<8x128xf32>
    tpu.vector_store %arg7[%184, %c0_58], %183 {strides = array<i32>} : memref<72x128xf32, #tpu.memory_space<vmem>>, vector<8x128xf32>,
    %c5_i32 = arith.constant 5 : i32
    %c8_i32_59 = arith.constant 8 : i32
    %186 = arith.muli %c5_i32, %c8_i32_59 : i32
    %187 = tpu.assume_multiple %186, 8 : i32
    %188 = arith.index_cast %187 : i32 to index
    %c0_60 = arith.constant 0 : index
    %189 = vector.load %arg8[%188, %c0_60] : memref<72x512xf32, #tpu.memory_space<vmem>>, vector<8x512xf32>
    %c0_61 = arith.constant 0 : index
    %c0_62 = arith.constant 0 : index
    %c0_63 = arith.constant 0 : index
    %190 = vector.load %arg2[%c0_61, %c0_62, %c0_63] : memref<2x128x512xf32, #tpu.memory_space<vmem>>, vector<1x128x512xf32>
    %191 = vector.shape_cast %190 : vector<1x128x512xf32> to vector<128x512xf32>
    %cst_64 = arith.constant dense<0.000000e+00> : vector<8x512xf32>
    %192 = tpu.matmul %183, %191, %cst_64 {dimension_numbers = #tpu.dot_dimension_numbers<[1], [0], [0], [1], [0, 0, 1, 1], [], []>} : vector<8x128xf32>, vector<128x512xf32>, vector<8x512xf32> -> vector<8x512xf32>
    %193 = arith.addf %189, %192 : vector<8x512xf32>
    %194 = vector.extract_strided_slice %193 {offsets = [0, 0], sizes = [8, 128], strides = [1, 1]} : vector<8x512xf32> to vector<8x128xf32>
    %195 = arith.negf %194 : vector<8x128xf32>
    %196 = math.exp %195 : vector<8x128xf32>
    %cst_65 = arith.constant 1.000000e+00 : f32
    %197 = vector.broadcast %cst_65 : f32 to vector<8x128xf32>
    %198 = arith.addf %197, %196 : vector<8x128xf32>
    %199 = arith.divf %197, %198 : vector<8x128xf32>
    %200 = vector.extract_strided_slice %193 {offsets = [0, 128], sizes = [8, 128], strides = [1, 1]} : vector<8x512xf32> to vector<8x128xf32>
    %201 = arith.negf %200 : vector<8x128xf32>
    %202 = math.exp %201 : vector<8x128xf32>
    %cst_66 = arith.constant 1.000000e+00 : f32
    %203 = vector.broadcast %cst_66 : f32 to vector<8x128xf32>
    %204 = arith.addf %203, %202 : vector<8x128xf32>
    %205 = arith.divf %203, %204 : vector<8x128xf32>
    %206 = vector.extract_strided_slice %193 {offsets = [0, 256], sizes = [8, 128], strides = [1, 1]} : vector<8x512xf32> to vector<8x128xf32>
    %207 = math.tanh %206 : vector<8x128xf32>
    %208 = vector.extract_strided_slice %193 {offsets = [0, 384], sizes = [8, 128], strides = [1, 1]} : vector<8x512xf32> to vector<8x128xf32>
    %209 = arith.negf %208 : vector<8x128xf32>
    %210 = math.exp %209 : vector<8x128xf32>
    %cst_67 = arith.constant 1.000000e+00 : f32
    %211 = vector.broadcast %cst_67 : f32 to vector<8x128xf32>
    %212 = arith.addf %211, %210 : vector<8x128xf32>
    %213 = arith.divf %211, %212 : vector<8x128xf32>
    %214 = arith.mulf %205, %181 : vector<8x128xf32>
    %215 = arith.mulf %199, %207 : vector<8x128xf32>
    %216 = arith.addf %214, %215 : vector<8x128xf32>
    %217 = math.tanh %216 : vector<8x128xf32>
    %218 = arith.mulf %213, %217 : vector<8x128xf32>
    %219 = arith.index_cast %187 : i32 to index
    %c0_68 = arith.constant 0 : index
    %220 = vector.load %arg7[%219, %c0_68] : memref<72x128xf32, #tpu.memory_space<vmem>>, vector<8x128xf32>
    tpu.vector_store %arg7[%219, %c0_68], %218 {strides = array<i32>} : memref<72x128xf32, #tpu.memory_space<vmem>>, vector<8x128xf32>,
    %c6_i32 = arith.constant 6 : i32
    %c8_i32_69 = arith.constant 8 : i32
    %221 = arith.muli %c6_i32, %c8_i32_69 : i32
    %222 = tpu.assume_multiple %221, 8 : i32
    %223 = arith.index_cast %222 : i32 to index
    %c0_70 = arith.constant 0 : index
    %224 = vector.load %arg8[%223, %c0_70] : memref<72x512xf32, #tpu.memory_space<vmem>>, vector<8x512xf32>
    %c0_71 = arith.constant 0 : index
    %c0_72 = arith.constant 0 : index
    %c0_73 = arith.constant 0 : index
    %225 = vector.load %arg2[%c0_71, %c0_72, %c0_73] : memref<2x128x512xf32, #tpu.memory_space<vmem>>, vector<1x128x512xf32>
    %226 = vector.shape_cast %225 : vector<1x128x512xf32> to vector<128x512xf32>
    %cst_74 = arith.constant dense<0.000000e+00> : vector<8x512xf32>
    %227 = tpu.matmul %218, %226, %cst_74 {dimension_numbers = #tpu.dot_dimension_numbers<[1], [0], [0], [1], [0, 0, 1, 1], [], []>} : vector<8x128xf32>, vector<128x512xf32>, vector<8x512xf32> -> vector<8x512xf32>
    %228 = arith.addf %224, %227 : vector<8x512xf32>
    %229 = vector.extract_strided_slice %228 {offsets = [0, 0], sizes = [8, 128], strides = [1, 1]} : vector<8x512xf32> to vector<8x128xf32>
    %230 = arith.negf %229 : vector<8x128xf32>
    %231 = math.exp %230 : vector<8x128xf32>
    %cst_75 = arith.constant 1.000000e+00 : f32
    %232 = vector.broadcast %cst_75 : f32 to vector<8x128xf32>
    %233 = arith.addf %232, %231 : vector<8x128xf32>
    %234 = arith.divf %232, %233 : vector<8x128xf32>
    %235 = vector.extract_strided_slice %228 {offsets = [0, 128], sizes = [8, 128], strides = [1, 1]} : vector<8x512xf32> to vector<8x128xf32>
    %236 = arith.negf %235 : vector<8x128xf32>
    %237 = math.exp %236 : vector<8x128xf32>
    %cst_76 = arith.constant 1.000000e+00 : f32
    %238 = vector.broadcast %cst_76 : f32 to vector<8x128xf32>
    %239 = arith.addf %238, %237 : vector<8x128xf32>
    %240 = arith.divf %238, %239 : vector<8x128xf32>
    %241 = vector.extract_strided_slice %228 {offsets = [0, 256], sizes = [8, 128], strides = [1, 1]} : vector<8x512xf32> to vector<8x128xf32>
    %242 = math.tanh %241 : vector<8x128xf32>
    %243 = vector.extract_strided_slice %228 {offsets = [0, 384], sizes = [8, 128], strides = [1, 1]} : vector<8x512xf32> to vector<8x128xf32>
    %244 = arith.negf %243 : vector<8x128xf32>
    %245 = math.exp %244 : vector<8x128xf32>
    %cst_77 = arith.constant 1.000000e+00 : f32
    %246 = vector.broadcast %cst_77 : f32 to vector<8x128xf32>
    %247 = arith.addf %246, %245 : vector<8x128xf32>
    %248 = arith.divf %246, %247 : vector<8x128xf32>
    %249 = arith.mulf %240, %216 : vector<8x128xf32>
    %250 = arith.mulf %234, %242 : vector<8x128xf32>
    %251 = arith.addf %249, %250 : vector<8x128xf32>
    %252 = math.tanh %251 : vector<8x128xf32>
    %253 = arith.mulf %248, %252 : vector<8x128xf32>
    %254 = arith.index_cast %222 : i32 to index
    %c0_78 = arith.constant 0 : index
    %255 = vector.load %arg7[%254, %c0_78] : memref<72x128xf32, #tpu.memory_space<vmem>>, vector<8x128xf32>
    tpu.vector_store %arg7[%254, %c0_78], %253 {strides = array<i32>} : memref<72x128xf32, #tpu.memory_space<vmem>>, vector<8x128xf32>,
    %c7_i32 = arith.constant 7 : i32
    %c8_i32_79 = arith.constant 8 : i32
    %256 = arith.muli %c7_i32, %c8_i32_79 : i32
    %257 = tpu.assume_multiple %256, 8 : i32
    %258 = arith.index_cast %257 : i32 to index
    %c0_80 = arith.constant 0 : index
    %259 = vector.load %arg8[%258, %c0_80] : memref<72x512xf32, #tpu.memory_space<vmem>>, vector<8x512xf32>
    %c0_81 = arith.constant 0 : index
    %c0_82 = arith.constant 0 : index
    %c0_83 = arith.constant 0 : index
    %260 = vector.load %arg2[%c0_81, %c0_82, %c0_83] : memref<2x128x512xf32, #tpu.memory_space<vmem>>, vector<1x128x512xf32>
    %261 = vector.shape_cast %260 : vector<1x128x512xf32> to vector<128x512xf32>
    %cst_84 = arith.constant dense<0.000000e+00> : vector<8x512xf32>
    %262 = tpu.matmul %253, %261, %cst_84 {dimension_numbers = #tpu.dot_dimension_numbers<[1], [0], [0], [1], [0, 0, 1, 1], [], []>} : vector<8x128xf32>, vector<128x512xf32>, vector<8x512xf32> -> vector<8x512xf32>
    %263 = arith.addf %259, %262 : vector<8x512xf32>
    %264 = vector.extract_strided_slice %263 {offsets = [0, 0], sizes = [8, 128], strides = [1, 1]} : vector<8x512xf32> to vector<8x128xf32>
    %265 = arith.negf %264 : vector<8x128xf32>
    %266 = math.exp %265 : vector<8x128xf32>
    %cst_85 = arith.constant 1.000000e+00 : f32
    %267 = vector.broadcast %cst_85 : f32 to vector<8x128xf32>
    %268 = arith.addf %267, %266 : vector<8x128xf32>
    %269 = arith.divf %267, %268 : vector<8x128xf32>
    %270 = vector.extract_strided_slice %263 {offsets = [0, 128], sizes = [8, 128], strides = [1, 1]} : vector<8x512xf32> to vector<8x128xf32>
    %271 = arith.negf %270 : vector<8x128xf32>
    %272 = math.exp %271 : vector<8x128xf32>
    %cst_86 = arith.constant 1.000000e+00 : f32
    %273 = vector.broadcast %cst_86 : f32 to vector<8x128xf32>
    %274 = arith.addf %273, %272 : vector<8x128xf32>
    %275 = arith.divf %273, %274 : vector<8x128xf32>
    %276 = vector.extract_strided_slice %263 {offsets = [0, 256], sizes = [8, 128], strides = [1, 1]} : vector<8x512xf32> to vector<8x128xf32>
    %277 = math.tanh %276 : vector<8x128xf32>
    %278 = vector.extract_strided_slice %263 {offsets = [0, 384], sizes = [8, 128], strides = [1, 1]} : vector<8x512xf32> to vector<8x128xf32>
    %279 = arith.negf %278 : vector<8x128xf32>
    %280 = math.exp %279 : vector<8x128xf32>
    %cst_87 = arith.constant 1.000000e+00 : f32
    %281 = vector.broadcast %cst_87 : f32 to vector<8x128xf32>
    %282 = arith.addf %281, %280 : vector<8x128xf32>
    %283 = arith.divf %281, %282 : vector<8x128xf32>
    %284 = arith.mulf %275, %251 : vector<8x128xf32>
    %285 = arith.mulf %269, %277 : vector<8x128xf32>
    %286 = arith.addf %284, %285 : vector<8x128xf32>
    %287 = math.tanh %286 : vector<8x128xf32>
    %288 = arith.mulf %283, %287 : vector<8x128xf32>
    %289 = arith.index_cast %257 : i32 to index
    %c0_88 = arith.constant 0 : index
    %290 = vector.load %arg7[%289, %c0_88] : memref<72x128xf32, #tpu.memory_space<vmem>>, vector<8x128xf32>
    tpu.vector_store %arg7[%289, %c0_88], %288 {strides = array<i32>} : memref<72x128xf32, #tpu.memory_space<vmem>>, vector<8x128xf32>,
    %c8_i32_89 = arith.constant 8 : i32
    %c8_i32_90 = arith.constant 8 : i32
    %291 = arith.muli %c8_i32_89, %c8_i32_90 : i32
    %292 = tpu.assume_multiple %291, 8 : i32
    %293 = arith.index_cast %292 : i32 to index
    %c0_91 = arith.constant 0 : index
    %294 = vector.load %arg8[%293, %c0_91] : memref<72x512xf32, #tpu.memory_space<vmem>>, vector<8x512xf32>
    %c0_92 = arith.constant 0 : index
    %c0_93 = arith.constant 0 : index
    %c0_94 = arith.constant 0 : index
    %295 = vector.load %arg2[%c0_92, %c0_93, %c0_94] : memref<2x128x512xf32, #tpu.memory_space<vmem>>, vector<1x128x512xf32>
    %296 = vector.shape_cast %295 : vector<1x128x512xf32> to vector<128x512xf32>
    %cst_95 = arith.constant dense<0.000000e+00> : vector<8x512xf32>
    %297 = tpu.matmul %288, %296, %cst_95 {dimension_numbers = #tpu.dot_dimension_numbers<[1], [0], [0], [1], [0, 0, 1, 1], [], []>} : vector<8x128xf32>, vector<128x512xf32>, vector<8x512xf32> -> vector<8x512xf32>
    %298 = arith.addf %294, %297 : vector<8x512xf32>
    %299 = vector.extract_strided_slice %298 {offsets = [0, 0], sizes = [8, 128], strides = [1, 1]} : vector<8x512xf32> to vector<8x128xf32>
    %300 = arith.negf %299 : vector<8x128xf32>
    %301 = math.exp %300 : vector<8x128xf32>
    %cst_96 = arith.constant 1.000000e+00 : f32
    %302 = vector.broadcast %cst_96 : f32 to vector<8x128xf32>
    %303 = arith.addf %302, %301 : vector<8x128xf32>
    %304 = arith.divf %302, %303 : vector<8x128xf32>
    %305 = vector.extract_strided_slice %298 {offsets = [0, 128], sizes = [8, 128], strides = [1, 1]} : vector<8x512xf32> to vector<8x128xf32>
    %306 = arith.negf %305 : vector<8x128xf32>
    %307 = math.exp %306 : vector<8x128xf32>
    %cst_97 = arith.constant 1.000000e+00 : f32
    %308 = vector.broadcast %cst_97 : f32 to vector<8x128xf32>
    %309 = arith.addf %308, %307 : vector<8x128xf32>
    %310 = arith.divf %308, %309 : vector<8x128xf32>
    %311 = vector.extract_strided_slice %298 {offsets = [0, 256], sizes = [8, 128], strides = [1, 1]} : vector<8x512xf32> to vector<8x128xf32>
    %312 = math.tanh %311 : vector<8x128xf32>
    %313 = vector.extract_strided_slice %298 {offsets = [0, 384], sizes = [8, 128], strides = [1, 1]} : vector<8x512xf32> to vector<8x128xf32>
    %314 = arith.negf %313 : vector<8x128xf32>
    %315 = math.exp %314 : vector<8x128xf32>
    %cst_98 = arith.constant 1.000000e+00 : f32
    %316 = vector.broadcast %cst_98 : f32 to vector<8x128xf32>
    %317 = arith.addf %316, %315 : vector<8x128xf32>
    %318 = arith.divf %316, %317 : vector<8x128xf32>
    %319 = arith.mulf %310, %286 : vector<8x128xf32>
    %320 = arith.mulf %304, %312 : vector<8x128xf32>
    %321 = arith.addf %319, %320 : vector<8x128xf32>
    %322 = math.tanh %321 : vector<8x128xf32>
    %323 = arith.mulf %318, %322 : vector<8x128xf32>
    %324 = arith.index_cast %292 : i32 to index
    %c0_99 = arith.constant 0 : index
    %325 = vector.load %arg7[%324, %c0_99] : memref<72x128xf32, #tpu.memory_space<vmem>>, vector<8x128xf32>
    tpu.vector_store %arg7[%324, %c0_99], %323 {strides = array<i32>} : memref<72x128xf32, #tpu.memory_space<vmem>>, vector<8x128xf32>,
    %c9_i32 = arith.constant 9 : i32
    %c0_100 = arith.constant 0 : index
    %c0_101 = arith.constant 0 : index
    %326 = vector.load %arg7[%c0_100, %c0_101] : memref<72x128xf32, #tpu.memory_space<vmem>>, vector<72x128xf32>
    %c1 = arith.constant 1 : index
    %c0_102 = arith.constant 0 : index
    %c0_103 = arith.constant 0 : index
    %327 = vector.load %arg1[%c1, %c0_102, %c0_103] : memref<2x128x512xf32, #tpu.memory_space<vmem>>, vector<1x128x512xf32>
    %328 = vector.shape_cast %327 : vector<1x128x512xf32> to vector<128x512xf32>
    %cst_104 = arith.constant dense<0.000000e+00> : vector<72x512xf32>
    %329 = tpu.matmul %326, %328, %cst_104 {dimension_numbers = #tpu.dot_dimension_numbers<[1], [0], [0], [1], [0, 0, 1, 1], [], []>} : vector<72x128xf32>, vector<128x512xf32>, vector<72x512xf32> -> vector<72x512xf32>
    %c1_105 = arith.constant 1 : index
    %c0_106 = arith.constant 0 : index
    %c0_107 = arith.constant 0 : index
    %330 = vector.load %arg3[%c1_105, %c0_106, %c0_107] : memref<2x1x512xf32, #tpu.memory_space<vmem>>, vector<1x1x512xf32>
    %331 = vector.shape_cast %330 : vector<1x1x512xf32> to vector<1x512xf32>
    %332 = vector.shape_cast %331 : vector<1x512xf32> to vector<1x512xf32>
    %333 = vector.broadcast %332 : vector<1x512xf32> to vector<72x512xf32>
    %334 = arith.addf %329, %333 : vector<72x512xf32>
    %c0_108 = arith.constant 0 : index
    %c0_109 = arith.constant 0 : index
    %335 = vector.load %arg8[%c0_108, %c0_109] : memref<72x512xf32, #tpu.memory_space<vmem>>, vector<72x512xf32>
    tpu.vector_store %arg8[%c0_108, %c0_109], %334 {strides = array<i32>} : memref<72x512xf32, #tpu.memory_space<vmem>>, vector<72x512xf32>,
    %cst_110 = arith.constant 0.000000e+00 : f32
    %336 = vector.broadcast %cst_110 : f32 to vector<8x128xf32>
    %c0_i32_111 = arith.constant 0 : i32
    %c8_i32_112 = arith.constant 8 : i32
    %337 = arith.muli %c0_i32_111, %c8_i32_112 : i32
    %338 = tpu.assume_multiple %337, 8 : i32
    %339 = arith.index_cast %338 : i32 to index
    %c0_113 = arith.constant 0 : index
    %340 = vector.load %arg8[%339, %c0_113] : memref<72x512xf32, #tpu.memory_space<vmem>>, vector<8x512xf32>
    %c1_114 = arith.constant 1 : index
    %c0_115 = arith.constant 0 : index
    %c0_116 = arith.constant 0 : index
    %341 = vector.load %arg2[%c1_114, %c0_115, %c0_116] : memref<2x128x512xf32, #tpu.memory_space<vmem>>, vector<1x128x512xf32>
    %342 = vector.shape_cast %341 : vector<1x128x512xf32> to vector<128x512xf32>
    %cst_117 = arith.constant dense<0.000000e+00> : vector<8x512xf32>
    %343 = tpu.matmul %336, %342, %cst_117 {dimension_numbers = #tpu.dot_dimension_numbers<[1], [0], [0], [1], [0, 0, 1, 1], [], []>} : vector<8x128xf32>, vector<128x512xf32>, vector<8x512xf32> -> vector<8x512xf32>
    %344 = arith.addf %340, %343 : vector<8x512xf32>
    %345 = vector.extract_strided_slice %344 {offsets = [0, 0], sizes = [8, 128], strides = [1, 1]} : vector<8x512xf32> to vector<8x128xf32>
    %346 = arith.negf %345 : vector<8x128xf32>
    %347 = math.exp %346 : vector<8x128xf32>
    %cst_118 = arith.constant 1.000000e+00 : f32
    %348 = vector.broadcast %cst_118 : f32 to vector<8x128xf32>
    %349 = arith.addf %348, %347 : vector<8x128xf32>
    %350 = arith.divf %348, %349 : vector<8x128xf32>
    %351 = vector.extract_strided_slice %344 {offsets = [0, 128], sizes = [8, 128], strides = [1, 1]} : vector<8x512xf32> to vector<8x128xf32>
    %352 = arith.negf %351 : vector<8x128xf32>
    %353 = math.exp %352 : vector<8x128xf32>
    %cst_119 = arith.constant 1.000000e+00 : f32
    %354 = vector.broadcast %cst_119 : f32 to vector<8x128xf32>
    %355 = arith.addf %354, %353 : vector<8x128xf32>
    %356 = arith.divf %354, %355 : vector<8x128xf32>
    %357 = vector.extract_strided_slice %344 {offsets = [0, 256], sizes = [8, 128], strides = [1, 1]} : vector<8x512xf32> to vector<8x128xf32>
    %358 = math.tanh %357 : vector<8x128xf32>
    %359 = vector.extract_strided_slice %344 {offsets = [0, 384], sizes = [8, 128], strides = [1, 1]} : vector<8x512xf32> to vector<8x128xf32>
    %360 = arith.negf %359 : vector<8x128xf32>
    %361 = math.exp %360 : vector<8x128xf32>
    %cst_120 = arith.constant 1.000000e+00 : f32
    %362 = vector.broadcast %cst_120 : f32 to vector<8x128xf32>
    %363 = arith.addf %362, %361 : vector<8x128xf32>
    %364 = arith.divf %362, %363 : vector<8x128xf32>
    %365 = arith.mulf %356, %336 : vector<8x128xf32>
    %366 = arith.mulf %350, %358 : vector<8x128xf32>
    %367 = arith.addf %365, %366 : vector<8x128xf32>
    %368 = math.tanh %367 : vector<8x128xf32>
    %369 = arith.mulf %364, %368 : vector<8x128xf32>
    %370 = arith.index_cast %338 : i32 to index
    %c0_121 = arith.constant 0 : index
    %371 = vector.load %arg7[%370, %c0_121] : memref<72x128xf32, #tpu.memory_space<vmem>>, vector<8x128xf32>
    tpu.vector_store %arg7[%370, %c0_121], %369 {strides = array<i32>} : memref<72x128xf32, #tpu.memory_space<vmem>>, vector<8x128xf32>,
    %c1_i32_122 = arith.constant 1 : i32
    %c8_i32_123 = arith.constant 8 : i32
    %372 = arith.muli %c1_i32_122, %c8_i32_123 : i32
    %373 = tpu.assume_multiple %372, 8 : i32
    %374 = arith.index_cast %373 : i32 to index
    %c0_124 = arith.constant 0 : index
    %375 = vector.load %arg8[%374, %c0_124] : memref<72x512xf32, #tpu.memory_space<vmem>>, vector<8x512xf32>
    %c1_125 = arith.constant 1 : index
    %c0_126 = arith.constant 0 : index
    %c0_127 = arith.constant 0 : index
    %376 = vector.load %arg2[%c1_125, %c0_126, %c0_127] : memref<2x128x512xf32, #tpu.memory_space<vmem>>, vector<1x128x512xf32>
    %377 = vector.shape_cast %376 : vector<1x128x512xf32> to vector<128x512xf32>
    %cst_128 = arith.constant dense<0.000000e+00> : vector<8x512xf32>
    %378 = tpu.matmul %369, %377, %cst_128 {dimension_numbers = #tpu.dot_dimension_numbers<[1], [0], [0], [1], [0, 0, 1, 1], [], []>} : vector<8x128xf32>, vector<128x512xf32>, vector<8x512xf32> -> vector<8x512xf32>
    %379 = arith.addf %375, %378 : vector<8x512xf32>
    %380 = vector.extract_strided_slice %379 {offsets = [0, 0], sizes = [8, 128], strides = [1, 1]} : vector<8x512xf32> to vector<8x128xf32>
    %381 = arith.negf %380 : vector<8x128xf32>
    %382 = math.exp %381 : vector<8x128xf32>
    %cst_129 = arith.constant 1.000000e+00 : f32
    %383 = vector.broadcast %cst_129 : f32 to vector<8x128xf32>
    %384 = arith.addf %383, %382 : vector<8x128xf32>
    %385 = arith.divf %383, %384 : vector<8x128xf32>
    %386 = vector.extract_strided_slice %379 {offsets = [0, 128], sizes = [8, 128], strides = [1, 1]} : vector<8x512xf32> to vector<8x128xf32>
    %387 = arith.negf %386 : vector<8x128xf32>
    %388 = math.exp %387 : vector<8x128xf32>
    %cst_130 = arith.constant 1.000000e+00 : f32
    %389 = vector.broadcast %cst_130 : f32 to vector<8x128xf32>
    %390 = arith.addf %389, %388 : vector<8x128xf32>
    %391 = arith.divf %389, %390 : vector<8x128xf32>
    %392 = vector.extract_strided_slice %379 {offsets = [0, 256], sizes = [8, 128], strides = [1, 1]} : vector<8x512xf32> to vector<8x128xf32>
    %393 = math.tanh %392 : vector<8x128xf32>
    %394 = vector.extract_strided_slice %379 {offsets = [0, 384], sizes = [8, 128], strides = [1, 1]} : vector<8x512xf32> to vector<8x128xf32>
    %395 = arith.negf %394 : vector<8x128xf32>
    %396 = math.exp %395 : vector<8x128xf32>
    %cst_131 = arith.constant 1.000000e+00 : f32
    %397 = vector.broadcast %cst_131 : f32 to vector<8x128xf32>
    %398 = arith.addf %397, %396 : vector<8x128xf32>
    %399 = arith.divf %397, %398 : vector<8x128xf32>
    %400 = arith.mulf %391, %367 : vector<8x128xf32>
    %401 = arith.mulf %385, %393 : vector<8x128xf32>
    %402 = arith.addf %400, %401 : vector<8x128xf32>
    %403 = math.tanh %402 : vector<8x128xf32>
    %404 = arith.mulf %399, %403 : vector<8x128xf32>
    %405 = arith.index_cast %373 : i32 to index
    %c0_132 = arith.constant 0 : index
    %406 = vector.load %arg7[%405, %c0_132] : memref<72x128xf32, #tpu.memory_space<vmem>>, vector<8x128xf32>
    tpu.vector_store %arg7[%405, %c0_132], %404 {strides = array<i32>} : memref<72x128xf32, #tpu.memory_space<vmem>>, vector<8x128xf32>,
    %c2_i32_133 = arith.constant 2 : i32
    %c8_i32_134 = arith.constant 8 : i32
    %407 = arith.muli %c2_i32_133, %c8_i32_134 : i32
    %408 = tpu.assume_multiple %407, 8 : i32
    %409 = arith.index_cast %408 : i32 to index
    %c0_135 = arith.constant 0 : index
    %410 = vector.load %arg8[%409, %c0_135] : memref<72x512xf32, #tpu.memory_space<vmem>>, vector<8x512xf32>
    %c1_136 = arith.constant 1 : index
    %c0_137 = arith.constant 0 : index
    %c0_138 = arith.constant 0 : index
    %411 = vector.load %arg2[%c1_136, %c0_137, %c0_138] : memref<2x128x512xf32, #tpu.memory_space<vmem>>, vector<1x128x512xf32>
    %412 = vector.shape_cast %411 : vector<1x128x512xf32> to vector<128x512xf32>
    %cst_139 = arith.constant dense<0.000000e+00> : vector<8x512xf32>
    %413 = tpu.matmul %404, %412, %cst_139 {dimension_numbers = #tpu.dot_dimension_numbers<[1], [0], [0], [1], [0, 0, 1, 1], [], []>} : vector<8x128xf32>, vector<128x512xf32>, vector<8x512xf32> -> vector<8x512xf32>
    %414 = arith.addf %410, %413 : vector<8x512xf32>
    %415 = vector.extract_strided_slice %414 {offsets = [0, 0], sizes = [8, 128], strides = [1, 1]} : vector<8x512xf32> to vector<8x128xf32>
    %416 = arith.negf %415 : vector<8x128xf32>
    %417 = math.exp %416 : vector<8x128xf32>
    %cst_140 = arith.constant 1.000000e+00 : f32
    %418 = vector.broadcast %cst_140 : f32 to vector<8x128xf32>
    %419 = arith.addf %418, %417 : vector<8x128xf32>
    %420 = arith.divf %418, %419 : vector<8x128xf32>
    %421 = vector.extract_strided_slice %414 {offsets = [0, 128], sizes = [8, 128], strides = [1, 1]} : vector<8x512xf32> to vector<8x128xf32>
    %422 = arith.negf %421 : vector<8x128xf32>
    %423 = math.exp %422 : vector<8x128xf32>
    %cst_141 = arith.constant 1.000000e+00 : f32
    %424 = vector.broadcast %cst_141 : f32 to vector<8x128xf32>
    %425 = arith.addf %424, %423 : vector<8x128xf32>
    %426 = arith.divf %424, %425 : vector<8x128xf32>
    %427 = vector.extract_strided_slice %414 {offsets = [0, 256], sizes = [8, 128], strides = [1, 1]} : vector<8x512xf32> to vector<8x128xf32>
    %428 = math.tanh %427 : vector<8x128xf32>
    %429 = vector.extract_strided_slice %414 {offsets = [0, 384], sizes = [8, 128], strides = [1, 1]} : vector<8x512xf32> to vector<8x128xf32>
    %430 = arith.negf %429 : vector<8x128xf32>
    %431 = math.exp %430 : vector<8x128xf32>
    %cst_142 = arith.constant 1.000000e+00 : f32
    %432 = vector.broadcast %cst_142 : f32 to vector<8x128xf32>
    %433 = arith.addf %432, %431 : vector<8x128xf32>
    %434 = arith.divf %432, %433 : vector<8x128xf32>
    %435 = arith.mulf %426, %402 : vector<8x128xf32>
    %436 = arith.mulf %420, %428 : vector<8x128xf32>
    %437 = arith.addf %435, %436 : vector<8x128xf32>
    %438 = math.tanh %437 : vector<8x128xf32>
    %439 = arith.mulf %434, %438 : vector<8x128xf32>
    %440 = arith.index_cast %408 : i32 to index
    %c0_143 = arith.constant 0 : index
    %441 = vector.load %arg7[%440, %c0_143] : memref<72x128xf32, #tpu.memory_space<vmem>>, vector<8x128xf32>
    tpu.vector_store %arg7[%440, %c0_143], %439 {strides = array<i32>} : memref<72x128xf32, #tpu.memory_space<vmem>>, vector<8x128xf32>,
    %c3_i32_144 = arith.constant 3 : i32
    %c8_i32_145 = arith.constant 8 : i32
    %442 = arith.muli %c3_i32_144, %c8_i32_145 : i32
    %443 = tpu.assume_multiple %442, 8 : i32
    %444 = arith.index_cast %443 : i32 to index
    %c0_146 = arith.constant 0 : index
    %445 = vector.load %arg8[%444, %c0_146] : memref<72x512xf32, #tpu.memory_space<vmem>>, vector<8x512xf32>
    %c1_147 = arith.constant 1 : index
    %c0_148 = arith.constant 0 : index
    %c0_149 = arith.constant 0 : index
    %446 = vector.load %arg2[%c1_147, %c0_148, %c0_149] : memref<2x128x512xf32, #tpu.memory_space<vmem>>, vector<1x128x512xf32>
    %447 = vector.shape_cast %446 : vector<1x128x512xf32> to vector<128x512xf32>
    %cst_150 = arith.constant dense<0.000000e+00> : vector<8x512xf32>
    %448 = tpu.matmul %439, %447, %cst_150 {dimension_numbers = #tpu.dot_dimension_numbers<[1], [0], [0], [1], [0, 0, 1, 1], [], []>} : vector<8x128xf32>, vector<128x512xf32>, vector<8x512xf32> -> vector<8x512xf32>
    %449 = arith.addf %445, %448 : vector<8x512xf32>
    %450 = vector.extract_strided_slice %449 {offsets = [0, 0], sizes = [8, 128], strides = [1, 1]} : vector<8x512xf32> to vector<8x128xf32>
    %451 = arith.negf %450 : vector<8x128xf32>
    %452 = math.exp %451 : vector<8x128xf32>
    %cst_151 = arith.constant 1.000000e+00 : f32
    %453 = vector.broadcast %cst_151 : f32 to vector<8x128xf32>
    %454 = arith.addf %453, %452 : vector<8x128xf32>
    %455 = arith.divf %453, %454 : vector<8x128xf32>
    %456 = vector.extract_strided_slice %449 {offsets = [0, 128], sizes = [8, 128], strides = [1, 1]} : vector<8x512xf32> to vector<8x128xf32>
    %457 = arith.negf %456 : vector<8x128xf32>
    %458 = math.exp %457 : vector<8x128xf32>
    %cst_152 = arith.constant 1.000000e+00 : f32
    %459 = vector.broadcast %cst_152 : f32 to vector<8x128xf32>
    %460 = arith.addf %459, %458 : vector<8x128xf32>
    %461 = arith.divf %459, %460 : vector<8x128xf32>
    %462 = vector.extract_strided_slice %449 {offsets = [0, 256], sizes = [8, 128], strides = [1, 1]} : vector<8x512xf32> to vector<8x128xf32>
    %463 = math.tanh %462 : vector<8x128xf32>
    %464 = vector.extract_strided_slice %449 {offsets = [0, 384], sizes = [8, 128], strides = [1, 1]} : vector<8x512xf32> to vector<8x128xf32>
    %465 = arith.negf %464 : vector<8x128xf32>
    %466 = math.exp %465 : vector<8x128xf32>
    %cst_153 = arith.constant 1.000000e+00 : f32
    %467 = vector.broadcast %cst_153 : f32 to vector<8x128xf32>
    %468 = arith.addf %467, %466 : vector<8x128xf32>
    %469 = arith.divf %467, %468 : vector<8x128xf32>
    %470 = arith.mulf %461, %437 : vector<8x128xf32>
    %471 = arith.mulf %455, %463 : vector<8x128xf32>
    %472 = arith.addf %470, %471 : vector<8x128xf32>
    %473 = math.tanh %472 : vector<8x128xf32>
    %474 = arith.mulf %469, %473 : vector<8x128xf32>
    %475 = arith.index_cast %443 : i32 to index
    %c0_154 = arith.constant 0 : index
    %476 = vector.load %arg7[%475, %c0_154] : memref<72x128xf32, #tpu.memory_space<vmem>>, vector<8x128xf32>
    tpu.vector_store %arg7[%475, %c0_154], %474 {strides = array<i32>} : memref<72x128xf32, #tpu.memory_space<vmem>>, vector<8x128xf32>,
    %c4_i32_155 = arith.constant 4 : i32
    %c8_i32_156 = arith.constant 8 : i32
    %477 = arith.muli %c4_i32_155, %c8_i32_156 : i32
    %478 = tpu.assume_multiple %477, 8 : i32
    %479 = arith.index_cast %478 : i32 to index
    %c0_157 = arith.constant 0 : index
    %480 = vector.load %arg8[%479, %c0_157] : memref<72x512xf32, #tpu.memory_space<vmem>>, vector<8x512xf32>
    %c1_158 = arith.constant 1 : index
    %c0_159 = arith.constant 0 : index
    %c0_160 = arith.constant 0 : index
    %481 = vector.load %arg2[%c1_158, %c0_159, %c0_160] : memref<2x128x512xf32, #tpu.memory_space<vmem>>, vector<1x128x512xf32>
    %482 = vector.shape_cast %481 : vector<1x128x512xf32> to vector<128x512xf32>
    %cst_161 = arith.constant dense<0.000000e+00> : vector<8x512xf32>
    %483 = tpu.matmul %474, %482, %cst_161 {dimension_numbers = #tpu.dot_dimension_numbers<[1], [0], [0], [1], [0, 0, 1, 1], [], []>} : vector<8x128xf32>, vector<128x512xf32>, vector<8x512xf32> -> vector<8x512xf32>
    %484 = arith.addf %480, %483 : vector<8x512xf32>
    %485 = vector.extract_strided_slice %484 {offsets = [0, 0], sizes = [8, 128], strides = [1, 1]} : vector<8x512xf32> to vector<8x128xf32>
    %486 = arith.negf %485 : vector<8x128xf32>
    %487 = math.exp %486 : vector<8x128xf32>
    %cst_162 = arith.constant 1.000000e+00 : f32
    %488 = vector.broadcast %cst_162 : f32 to vector<8x128xf32>
    %489 = arith.addf %488, %487 : vector<8x128xf32>
    %490 = arith.divf %488, %489 : vector<8x128xf32>
    %491 = vector.extract_strided_slice %484 {offsets = [0, 128], sizes = [8, 128], strides = [1, 1]} : vector<8x512xf32> to vector<8x128xf32>
    %492 = arith.negf %491 : vector<8x128xf32>
    %493 = math.exp %492 : vector<8x128xf32>
    %cst_163 = arith.constant 1.000000e+00 : f32
    %494 = vector.broadcast %cst_163 : f32 to vector<8x128xf32>
    %495 = arith.addf %494, %493 : vector<8x128xf32>
    %496 = arith.divf %494, %495 : vector<8x128xf32>
    %497 = vector.extract_strided_slice %484 {offsets = [0, 256], sizes = [8, 128], strides = [1, 1]} : vector<8x512xf32> to vector<8x128xf32>
    %498 = math.tanh %497 : vector<8x128xf32>
    %499 = vector.extract_strided_slice %484 {offsets = [0, 384], sizes = [8, 128], strides = [1, 1]} : vector<8x512xf32> to vector<8x128xf32>
    %500 = arith.negf %499 : vector<8x128xf32>
    %501 = math.exp %500 : vector<8x128xf32>
    %cst_164 = arith.constant 1.000000e+00 : f32
    %502 = vector.broadcast %cst_164 : f32 to vector<8x128xf32>
    %503 = arith.addf %502, %501 : vector<8x128xf32>
    %504 = arith.divf %502, %503 : vector<8x128xf32>
    %505 = arith.mulf %496, %472 : vector<8x128xf32>
    %506 = arith.mulf %490, %498 : vector<8x128xf32>
    %507 = arith.addf %505, %506 : vector<8x128xf32>
    %508 = math.tanh %507 : vector<8x128xf32>
    %509 = arith.mulf %504, %508 : vector<8x128xf32>
    %510 = arith.index_cast %478 : i32 to index
    %c0_165 = arith.constant 0 : index
    %511 = vector.load %arg7[%510, %c0_165] : memref<72x128xf32, #tpu.memory_space<vmem>>, vector<8x128xf32>
    tpu.vector_store %arg7[%510, %c0_165], %509 {strides = array<i32>} : memref<72x128xf32, #tpu.memory_space<vmem>>, vector<8x128xf32>,
    %c5_i32_166 = arith.constant 5 : i32
    %c8_i32_167 = arith.constant 8 : i32
    %512 = arith.muli %c5_i32_166, %c8_i32_167 : i32
    %513 = tpu.assume_multiple %512, 8 : i32
    %514 = arith.index_cast %513 : i32 to index
    %c0_168 = arith.constant 0 : index
    %515 = vector.load %arg8[%514, %c0_168] : memref<72x512xf32, #tpu.memory_space<vmem>>, vector<8x512xf32>
    %c1_169 = arith.constant 1 : index
    %c0_170 = arith.constant 0 : index
    %c0_171 = arith.constant 0 : index
    %516 = vector.load %arg2[%c1_169, %c0_170, %c0_171] : memref<2x128x512xf32, #tpu.memory_space<vmem>>, vector<1x128x512xf32>
    %517 = vector.shape_cast %516 : vector<1x128x512xf32> to vector<128x512xf32>
    %cst_172 = arith.constant dense<0.000000e+00> : vector<8x512xf32>
    %518 = tpu.matmul %509, %517, %cst_172 {dimension_numbers = #tpu.dot_dimension_numbers<[1], [0], [0], [1], [0, 0, 1, 1], [], []>} : vector<8x128xf32>, vector<128x512xf32>, vector<8x512xf32> -> vector<8x512xf32>
    %519 = arith.addf %515, %518 : vector<8x512xf32>
    %520 = vector.extract_strided_slice %519 {offsets = [0, 0], sizes = [8, 128], strides = [1, 1]} : vector<8x512xf32> to vector<8x128xf32>
    %521 = arith.negf %520 : vector<8x128xf32>
    %522 = math.exp %521 : vector<8x128xf32>
    %cst_173 = arith.constant 1.000000e+00 : f32
    %523 = vector.broadcast %cst_173 : f32 to vector<8x128xf32>
    %524 = arith.addf %523, %522 : vector<8x128xf32>
    %525 = arith.divf %523, %524 : vector<8x128xf32>
    %526 = vector.extract_strided_slice %519 {offsets = [0, 128], sizes = [8, 128], strides = [1, 1]} : vector<8x512xf32> to vector<8x128xf32>
    %527 = arith.negf %526 : vector<8x128xf32>
    %528 = math.exp %527 : vector<8x128xf32>
    %cst_174 = arith.constant 1.000000e+00 : f32
    %529 = vector.broadcast %cst_174 : f32 to vector<8x128xf32>
    %530 = arith.addf %529, %528 : vector<8x128xf32>
    %531 = arith.divf %529, %530 : vector<8x128xf32>
    %532 = vector.extract_strided_slice %519 {offsets = [0, 256], sizes = [8, 128], strides = [1, 1]} : vector<8x512xf32> to vector<8x128xf32>
    %533 = math.tanh %532 : vector<8x128xf32>
    %534 = vector.extract_strided_slice %519 {offsets = [0, 384], sizes = [8, 128], strides = [1, 1]} : vector<8x512xf32> to vector<8x128xf32>
    %535 = arith.negf %534 : vector<8x128xf32>
    %536 = math.exp %535 : vector<8x128xf32>
    %cst_175 = arith.constant 1.000000e+00 : f32
    %537 = vector.broadcast %cst_175 : f32 to vector<8x128xf32>
    %538 = arith.addf %537, %536 : vector<8x128xf32>
    %539 = arith.divf %537, %538 : vector<8x128xf32>
    %540 = arith.mulf %531, %507 : vector<8x128xf32>
    %541 = arith.mulf %525, %533 : vector<8x128xf32>
    %542 = arith.addf %540, %541 : vector<8x128xf32>
    %543 = math.tanh %542 : vector<8x128xf32>
    %544 = arith.mulf %539, %543 : vector<8x128xf32>
    %545 = arith.index_cast %513 : i32 to index
    %c0_176 = arith.constant 0 : index
    %546 = vector.load %arg7[%545, %c0_176] : memref<72x128xf32, #tpu.memory_space<vmem>>, vector<8x128xf32>
    tpu.vector_store %arg7[%545, %c0_176], %544 {strides = array<i32>} : memref<72x128xf32, #tpu.memory_space<vmem>>, vector<8x128xf32>,
    %c6_i32_177 = arith.constant 6 : i32
    %c8_i32_178 = arith.constant 8 : i32
    %547 = arith.muli %c6_i32_177, %c8_i32_178 : i32
    %548 = tpu.assume_multiple %547, 8 : i32
    %549 = arith.index_cast %548 : i32 to index
    %c0_179 = arith.constant 0 : index
    %550 = vector.load %arg8[%549, %c0_179] : memref<72x512xf32, #tpu.memory_space<vmem>>, vector<8x512xf32>
    %c1_180 = arith.constant 1 : index
    %c0_181 = arith.constant 0 : index
    %c0_182 = arith.constant 0 : index
    %551 = vector.load %arg2[%c1_180, %c0_181, %c0_182] : memref<2x128x512xf32, #tpu.memory_space<vmem>>, vector<1x128x512xf32>
    %552 = vector.shape_cast %551 : vector<1x128x512xf32> to vector<128x512xf32>
    %cst_183 = arith.constant dense<0.000000e+00> : vector<8x512xf32>
    %553 = tpu.matmul %544, %552, %cst_183 {dimension_numbers = #tpu.dot_dimension_numbers<[1], [0], [0], [1], [0, 0, 1, 1], [], []>} : vector<8x128xf32>, vector<128x512xf32>, vector<8x512xf32> -> vector<8x512xf32>
    %554 = arith.addf %550, %553 : vector<8x512xf32>
    %555 = vector.extract_strided_slice %554 {offsets = [0, 0], sizes = [8, 128], strides = [1, 1]} : vector<8x512xf32> to vector<8x128xf32>
    %556 = arith.negf %555 : vector<8x128xf32>
    %557 = math.exp %556 : vector<8x128xf32>
    %cst_184 = arith.constant 1.000000e+00 : f32
    %558 = vector.broadcast %cst_184 : f32 to vector<8x128xf32>
    %559 = arith.addf %558, %557 : vector<8x128xf32>
    %560 = arith.divf %558, %559 : vector<8x128xf32>
    %561 = vector.extract_strided_slice %554 {offsets = [0, 128], sizes = [8, 128], strides = [1, 1]} : vector<8x512xf32> to vector<8x128xf32>
    %562 = arith.negf %561 : vector<8x128xf32>
    %563 = math.exp %562 : vector<8x128xf32>
    %cst_185 = arith.constant 1.000000e+00 : f32
    %564 = vector.broadcast %cst_185 : f32 to vector<8x128xf32>
    %565 = arith.addf %564, %563 : vector<8x128xf32>
    %566 = arith.divf %564, %565 : vector<8x128xf32>
    %567 = vector.extract_strided_slice %554 {offsets = [0, 256], sizes = [8, 128], strides = [1, 1]} : vector<8x512xf32> to vector<8x128xf32>
    %568 = math.tanh %567 : vector<8x128xf32>
    %569 = vector.extract_strided_slice %554 {offsets = [0, 384], sizes = [8, 128], strides = [1, 1]} : vector<8x512xf32> to vector<8x128xf32>
    %570 = arith.negf %569 : vector<8x128xf32>
    %571 = math.exp %570 : vector<8x128xf32>
    %cst_186 = arith.constant 1.000000e+00 : f32
    %572 = vector.broadcast %cst_186 : f32 to vector<8x128xf32>
    %573 = arith.addf %572, %571 : vector<8x128xf32>
    %574 = arith.divf %572, %573 : vector<8x128xf32>
    %575 = arith.mulf %566, %542 : vector<8x128xf32>
    %576 = arith.mulf %560, %568 : vector<8x128xf32>
    %577 = arith.addf %575, %576 : vector<8x128xf32>
    %578 = math.tanh %577 : vector<8x128xf32>
    %579 = arith.mulf %574, %578 : vector<8x128xf32>
    %580 = arith.index_cast %548 : i32 to index
    %c0_187 = arith.constant 0 : index
    %581 = vector.load %arg7[%580, %c0_187] : memref<72x128xf32, #tpu.memory_space<vmem>>, vector<8x128xf32>
    tpu.vector_store %arg7[%580, %c0_187], %579 {strides = array<i32>} : memref<72x128xf32, #tpu.memory_space<vmem>>, vector<8x128xf32>,
    %c7_i32_188 = arith.constant 7 : i32
    %c8_i32_189 = arith.constant 8 : i32
    %582 = arith.muli %c7_i32_188, %c8_i32_189 : i32
    %583 = tpu.assume_multiple %582, 8 : i32
    %584 = arith.index_cast %583 : i32 to index
    %c0_190 = arith.constant 0 : index
    %585 = vector.load %arg8[%584, %c0_190] : memref<72x512xf32, #tpu.memory_space<vmem>>, vector<8x512xf32>
    %c1_191 = arith.constant 1 : index
    %c0_192 = arith.constant 0 : index
    %c0_193 = arith.constant 0 : index
    %586 = vector.load %arg2[%c1_191, %c0_192, %c0_193] : memref<2x128x512xf32, #tpu.memory_space<vmem>>, vector<1x128x512xf32>
    %587 = vector.shape_cast %586 : vector<1x128x512xf32> to vector<128x512xf32>
    %cst_194 = arith.constant dense<0.000000e+00> : vector<8x512xf32>
    %588 = tpu.matmul %579, %587, %cst_194 {dimension_numbers = #tpu.dot_dimension_numbers<[1], [0], [0], [1], [0, 0, 1, 1], [], []>} : vector<8x128xf32>, vector<128x512xf32>, vector<8x512xf32> -> vector<8x512xf32>
    %589 = arith.addf %585, %588 : vector<8x512xf32>
    %590 = vector.extract_strided_slice %589 {offsets = [0, 0], sizes = [8, 128], strides = [1, 1]} : vector<8x512xf32> to vector<8x128xf32>
    %591 = arith.negf %590 : vector<8x128xf32>
    %592 = math.exp %591 : vector<8x128xf32>
    %cst_195 = arith.constant 1.000000e+00 : f32
    %593 = vector.broadcast %cst_195 : f32 to vector<8x128xf32>
    %594 = arith.addf %593, %592 : vector<8x128xf32>
    %595 = arith.divf %593, %594 : vector<8x128xf32>
    %596 = vector.extract_strided_slice %589 {offsets = [0, 128], sizes = [8, 128], strides = [1, 1]} : vector<8x512xf32> to vector<8x128xf32>
    %597 = arith.negf %596 : vector<8x128xf32>
    %598 = math.exp %597 : vector<8x128xf32>
    %cst_196 = arith.constant 1.000000e+00 : f32
    %599 = vector.broadcast %cst_196 : f32 to vector<8x128xf32>
    %600 = arith.addf %599, %598 : vector<8x128xf32>
    %601 = arith.divf %599, %600 : vector<8x128xf32>
    %602 = vector.extract_strided_slice %589 {offsets = [0, 256], sizes = [8, 128], strides = [1, 1]} : vector<8x512xf32> to vector<8x128xf32>
    %603 = math.tanh %602 : vector<8x128xf32>
    %604 = vector.extract_strided_slice %589 {offsets = [0, 384], sizes = [8, 128], strides = [1, 1]} : vector<8x512xf32> to vector<8x128xf32>
    %605 = arith.negf %604 : vector<8x128xf32>
    %606 = math.exp %605 : vector<8x128xf32>
    %cst_197 = arith.constant 1.000000e+00 : f32
    %607 = vector.broadcast %cst_197 : f32 to vector<8x128xf32>
    %608 = arith.addf %607, %606 : vector<8x128xf32>
    %609 = arith.divf %607, %608 : vector<8x128xf32>
    %610 = arith.mulf %601, %577 : vector<8x128xf32>
    %611 = arith.mulf %595, %603 : vector<8x128xf32>
    %612 = arith.addf %610, %611 : vector<8x128xf32>
    %613 = math.tanh %612 : vector<8x128xf32>
    %614 = arith.mulf %609, %613 : vector<8x128xf32>
    %615 = arith.index_cast %583 : i32 to index
    %c0_198 = arith.constant 0 : index
    %616 = vector.load %arg7[%615, %c0_198] : memref<72x128xf32, #tpu.memory_space<vmem>>, vector<8x128xf32>
    tpu.vector_store %arg7[%615, %c0_198], %614 {strides = array<i32>} : memref<72x128xf32, #tpu.memory_space<vmem>>, vector<8x128xf32>,
    %c8_i32_199 = arith.constant 8 : i32
    %c8_i32_200 = arith.constant 8 : i32
    %617 = arith.muli %c8_i32_199, %c8_i32_200 : i32
    %618 = tpu.assume_multiple %617, 8 : i32
    %619 = arith.index_cast %618 : i32 to index
    %c0_201 = arith.constant 0 : index
    %620 = vector.load %arg8[%619, %c0_201] : memref<72x512xf32, #tpu.memory_space<vmem>>, vector<8x512xf32>
    %c1_202 = arith.constant 1 : index
    %c0_203 = arith.constant 0 : index
    %c0_204 = arith.constant 0 : index
    %621 = vector.load %arg2[%c1_202, %c0_203, %c0_204] : memref<2x128x512xf32, #tpu.memory_space<vmem>>, vector<1x128x512xf32>
    %622 = vector.shape_cast %621 : vector<1x128x512xf32> to vector<128x512xf32>
    %cst_205 = arith.constant dense<0.000000e+00> : vector<8x512xf32>
    %623 = tpu.matmul %614, %622, %cst_205 {dimension_numbers = #tpu.dot_dimension_numbers<[1], [0], [0], [1], [0, 0, 1, 1], [], []>} : vector<8x128xf32>, vector<128x512xf32>, vector<8x512xf32> -> vector<8x512xf32>
    %624 = arith.addf %620, %623 : vector<8x512xf32>
    %625 = vector.extract_strided_slice %624 {offsets = [0, 0], sizes = [8, 128], strides = [1, 1]} : vector<8x512xf32> to vector<8x128xf32>
    %626 = arith.negf %625 : vector<8x128xf32>
    %627 = math.exp %626 : vector<8x128xf32>
    %cst_206 = arith.constant 1.000000e+00 : f32
    %628 = vector.broadcast %cst_206 : f32 to vector<8x128xf32>
    %629 = arith.addf %628, %627 : vector<8x128xf32>
    %630 = arith.divf %628, %629 : vector<8x128xf32>
    %631 = vector.extract_strided_slice %624 {offsets = [0, 128], sizes = [8, 128], strides = [1, 1]} : vector<8x512xf32> to vector<8x128xf32>
    %632 = arith.negf %631 : vector<8x128xf32>
    %633 = math.exp %632 : vector<8x128xf32>
    %cst_207 = arith.constant 1.000000e+00 : f32
    %634 = vector.broadcast %cst_207 : f32 to vector<8x128xf32>
    %635 = arith.addf %634, %633 : vector<8x128xf32>
    %636 = arith.divf %634, %635 : vector<8x128xf32>
    %637 = vector.extract_strided_slice %624 {offsets = [0, 256], sizes = [8, 128], strides = [1, 1]} : vector<8x512xf32> to vector<8x128xf32>
    %638 = math.tanh %637 : vector<8x128xf32>
    %639 = vector.extract_strided_slice %624 {offsets = [0, 384], sizes = [8, 128], strides = [1, 1]} : vector<8x512xf32> to vector<8x128xf32>
    %640 = arith.negf %639 : vector<8x128xf32>
    %641 = math.exp %640 : vector<8x128xf32>
    %cst_208 = arith.constant 1.000000e+00 : f32
    %642 = vector.broadcast %cst_208 : f32 to vector<8x128xf32>
    %643 = arith.addf %642, %641 : vector<8x128xf32>
    %644 = arith.divf %642, %643 : vector<8x128xf32>
    %645 = arith.mulf %636, %612 : vector<8x128xf32>
    %646 = arith.mulf %630, %638 : vector<8x128xf32>
    %647 = arith.addf %645, %646 : vector<8x128xf32>
    %648 = math.tanh %647 : vector<8x128xf32>
    %649 = arith.mulf %644, %648 : vector<8x128xf32>
    %650 = arith.index_cast %618 : i32 to index
    %c0_209 = arith.constant 0 : index
    %651 = vector.load %arg7[%650, %c0_209] : memref<72x128xf32, #tpu.memory_space<vmem>>, vector<8x128xf32>
    tpu.vector_store %arg7[%650, %c0_209], %649 {strides = array<i32>} : memref<72x128xf32, #tpu.memory_space<vmem>>, vector<8x128xf32>,
    %c9_i32_210 = arith.constant 9 : i32
    %c0_211 = arith.constant 0 : index
    %c0_212 = arith.constant 0 : index
    %652 = vector.load %arg7[%c0_211, %c0_212] : memref<72x128xf32, #tpu.memory_space<vmem>>, vector<72x128xf32>
    %c0_213 = arith.constant 0 : index
    %c0_214 = arith.constant 0 : index
    %653 = vector.load %arg4[%c0_213, %c0_214] : memref<128x128xf32, #tpu.memory_space<vmem>>, vector<128x128xf32>
    %cst_215 = arith.constant dense<0.000000e+00> : vector<72x128xf32>
    %654 = tpu.matmul %652, %653, %cst_215 {dimension_numbers = #tpu.dot_dimension_numbers<[1], [0], [0], [1], [0, 0, 1, 1], [], []>} : vector<72x128xf32>, vector<128x128xf32>, vector<72x128xf32> -> vector<72x128xf32>
    %c0_216 = arith.constant 0 : index
    %c0_217 = arith.constant 0 : index
    %655 = vector.load %arg5[%c0_216, %c0_217] : memref<1x128xf32, #tpu.memory_space<vmem>>, vector<1x128xf32>
    %656 = vector.shape_cast %655 : vector<1x128xf32> to vector<1x128xf32>
    %657 = vector.broadcast %656 : vector<1x128xf32> to vector<72x128xf32>
    %658 = arith.addf %654, %657 : vector<72x128xf32>
    %c0_218 = arith.constant 0 : index
    %c0_219 = arith.constant 0 : index
    %659 = vector.load %arg6[%c0_218, %c0_219] : memref<72x128xf32, #tpu.memory_space<vmem>>, vector<72x128xf32>
    tpu.vector_store %arg6[%c0_218, %c0_219], %658 {strides = array<i32>} : memref<72x128xf32, #tpu.memory_space<vmem>>, vector<72x128xf32>,
    return
  }
}

</mosaic_0001>

<bundles_post_ra>
// kernel: decoder_rnn_forward.1
= control target key start
LH: loop header
LB: loop body
LE: loop exit
PB: predicated region body
PF: predicated region fallthrough
CT: control target
= control target key end

     0   :  { %11 = vsyncpa [#allocation5], 0  ;;  %s8569_s0 = inlined_call_operand.vmem [shape: f32[72,128], index: 0, kind: input, shape index: {}]   ;;  %s8570_s1 = inlined_call_operand.hbm [shape: f32[2,128,512], index: 1, kind: input, shape index: {}]   ;;  %s8571_s2 = inlined_call_operand.hbm [shape: f32[2,128,512], index: 2, kind: input, shape index: {}]   ;;  %s8572_s3 = inlined_call_operand.vmem [shape: f32[2,1,512], index: 3, kind: input, shape index: {}]   ;;  %s8573_s4 = inlined_call_operand.vmem [shape: f32[128,128], index: 4, kind: input, shape index: {}]   ;;  %s8574_s5 = inlined_call_operand.vmem [shape: f32[1,128], index: 5, kind: input, shape index: {}]   ;;  %s8575_s6 = inlined_call_operand.vmem [shape: f32[72,128], index: 6, kind: output, shape index: {}]  }
   0x1   :  { %12 = vsyncpa [#allocation7], 0  ;;  %s7225_s21 = smov [#allocation4]   ;;  %s7177_s25 = scalar_lea.hbm %s8570_s1, 16384 }
   0x2   :  { %s20_s22 = sshll.u32 %s7225_s21, 4  ;;  %p7178_p0 = scmp.ne.s32.totalorder %s8570_s1, %s7177_s25  ;;  %s21_s22 = int_to_ptr.vmem [resolvable:$true] %s20_s22 }
   0x3   :  { %p7181_p1 = scmp.lt.u32.totalorder %s7177_s25, %s8570_s1 }
   0x5   :  { %p7183_p2 = pnand %p7181_p1, %p7178_p0 }
   0x7   :  { %7186 = shalt.err (!%p7183_p2)
}
   0x8   :  { %s7187_s30 = scalar_lea.vmem %s21_s22, 16384  ;;  %p7192_p4 = scmp.lt.s32.totalorder %s21_s22, %s21_s22 }
   0x9   :  { %p7188_p3 = scmp.ne.s32.totalorder %s21_s22, %s7187_s30  ;;  %p7193_p5 = scmp.lt.s32.totalorder %s7187_s30, %s7187_s30 }
   0xb   :  { %p7194_p6 = por %p7193_p5, %p7192_p4 }
   0xd   :  { %p7195_p7 = pnand %p7194_p6, %p7188_p3 }
   0xf   :  { %7198 = shalt.err (!%p7195_p7)
}
  0x10   :  { %s7226_s7 = smov 512   ;;  %s7227_s8 = smov 32  }
  0x11   :  { %26 = dma.hbm_to_vmem [thread:$0]  %s8570_s1, 16384, %s21_s22, [#allocation5], %s7226_s7, %s7226_s7, %s7227_s8  }
  0x12   :  { %s7228_s11 = smov [#allocation6]   ;;  %s7199_s15 = scalar_lea.hbm %s8571_s2, 16384 }
  0x13   :  { %s32_s12 = sshll.u32 %s7228_s11, 4  ;;  %p7200_p8 = scmp.ne.s32.totalorder %s8571_s2, %s7199_s15  ;;  %s33_s12 = int_to_ptr.vmem [resolvable:$true] %s32_s12 }
  0x14   :  { %p7203_p9 = scmp.lt.u32.totalorder %s7199_s15, %s8571_s2 }
  0x16   :  { %p7205_p10 = pnand %p7203_p9, %p7200_p8 }
  0x18   :  { %7208 = shalt.err (!%p7205_p10)
}
  0x19   :  { %s7209_s20 = scalar_lea.vmem %s33_s12, 16384  ;;  %p7214_p12 = scmp.lt.s32.totalorder %s33_s12, %s33_s12 }
  0x1a   :  { %p7210_p11 = scmp.ne.s32.totalorder %s33_s12, %s7209_s20  ;;  %p7215_p13 = scmp.lt.s32.totalorder %s7209_s20, %s7209_s20 }
  0x1c   :  { %p7216_p0 = por %p7215_p13, %p7214_p12 }
  0x1e   :  { %p7217_p1 = pnand %p7216_p0, %p7210_p11 }
  0x20   :  { %7220 = shalt.err (!%p7217_p1)
}
  0x21   :  { %38 = dma.hbm_to_vmem [thread:$0]  %s8571_s2, 16384, %s33_s12, [#allocation7], %s7226_s7, %s7226_s7, %s7227_s8  }
  0x22   :  { %7221 = dma.done.wait [#allocation5], 16384  }
  0x23   :  { %7222 = vsyncadd [#allocation5], 4294950912 }
  0x24   :  { %7223 = dma.done.wait [#allocation7], 16384  }
  0x25   :  { %7224 = vsyncadd [#allocation7], 4294950912  ;;  %v7229_v0 = vmov 0.0   ;;  %v63_v1 = vld [vmem:[#allocation4 + $0x18] sm:$0xff]  ;;  %v62_v3 = vld [vmem:[#allocation4 + $0x10] sm:$0xff]  ;;  %vm7231_vm0 = vmmov 0  }
  0x26   :  { %329 = vmatprep.mubr.f32.mxu1 %v7229_v0  ;;  %210 = vmatprep.mubr.f32.mxu0 %v7229_v0  ;;  %v67_v2 = vld [vmem:[#allocation4 + $0x38] sm:$0xff]  ;;  %v66_v5 = vld [vmem:[#allocation4 + $0x30] sm:$0xff]  ;;  %v61_v28 = vld [vmem:[#allocation4 + $0x8] sm:$0xff] }
  0x27   :  { %v5466_v4 = vpack.c.bf16 %v67_v2, %v63_v1  ;;  %v71_v6 = vld [vmem:[#allocation4 + $0x58] sm:$0xff]  ;;  %v5468_v8 = vpack.c.bf16 %v66_v5, %v62_v3  ;;  %v70_v10 = vld [vmem:[#allocation4 + $0x50] sm:$0xff]  ;;  %v65_v29 = vld [vmem:[#allocation4 + $0x28] sm:$0xff] }
  0x28   :  { %v75_v7 = vld [vmem:[#allocation4 + $0x78] sm:$0xff]  ;;  %v74_v11 = vld [vmem:[#allocation4 + $0x70] sm:$0xff]  ;;  %v5434_v32 = vpack.c.bf16 %v65_v29, %v61_v28  ;;  %v60_v33 = vld [vmem:[#allocation4] sm:$0xff] }
  0x29   :  { %v5470_v9 = vpack.c.bf16 %v75_v7, %v71_v6  ;;  %v79_v12 = vld [vmem:[#allocation4 + $0x98] sm:$0xff]  ;;  %5467 = vmatprep.subr.bf16.mxu1 %v5466_v4  ;;  %v5472_v14 = vpack.c.bf16 %v74_v11, %v70_v10  ;;  %v78_v16 = vld [vmem:[#allocation4 + $0x90] sm:$0xff]  ;;  %v64_v34 = vld [vmem:[#allocation4 + $0x20] sm:$0xff] }
  0x2a   :  { %v83_v13 = vld [vmem:[#allocation4 + $0xb8] sm:$0xff]  ;;  %5469 = vmatpush1.bf16.msra.mxu1 %v5468_v8  ;;  %v82_v17 = vld [vmem:[#allocation4 + $0xb0] sm:$0xff]  ;;  %v5436_v37 = vpack.c.bf16 %v64_v34, %v60_v33  ;;  %v69_v38 = vld [vmem:[#allocation4 + $0x48] sm:$0xff]  ;;  %5435 = vmatprep.subr.bf16.mxu0 %v5434_v32 }
  0x2b   :  { %5471 = vmatprep.subr.bf16.mxu1 %v5470_v9  ;;  %v5474_v15 = vpack.c.bf16 %v83_v13, %v79_v12  ;;  %v87_v18 = vld [vmem:[#allocation4 + $0xd8] sm:$0xff]  ;;  %v5476_v20 = vpack.c.bf16 %v82_v17, %v78_v16  ;;  %v86_v22 = vld [vmem:[#allocation4 + $0xd0] sm:$0xff]  ;;  %v73_v39 = vld [vmem:[#allocation4 + $0x68] sm:$0xff] }
  0x2c   :  { %v91_v19 = vld [vmem:[#allocation4 + $0xf8] sm:$0xff]  ;;  %v90_v23 = vld [vmem:[#allocation4 + $0xf0] sm:$0xff]  ;;  %5437 = vmatpush1.bf16.msra.mxu0 %v5436_v37  ;;  %v5438_v41 = vpack.c.bf16 %v73_v39, %v69_v38  ;;  %v68_v42 = vld [vmem:[#allocation4 + $0x40] sm:$0xff] }
  0x2d   :  { %v5478_v21 = vpack.c.bf16 %v91_v19, %v87_v18  ;;  %v95_v24 = vld [vmem:[#allocation4 + $0x118] sm:$0xff]  ;;  %v5480_v26 = vpack.c.bf16 %v90_v23, %v86_v22  ;;  %v94_v27 = vld [vmem:[#allocation4 + $0x110] sm:$0xff]  ;;  %v72_v43 = vld [vmem:[#allocation4 + $0x60] sm:$0xff] }
  0x2e   :  { %5473 = vmatpush1.bf16.msra.mxu1 %v5472_v14  ;;  %v99_v25 = vld [vmem:[#allocation4 + $0x138] sm:$0xff]  ;;  %v98_v31 = vld [vmem:[#allocation4 + $0x130] sm:$0xff]  ;;  %v5440_v47 = vpack.c.bf16 %v72_v43, %v68_v42  ;;  %v77_v48 = vld [vmem:[#allocation4 + $0x88] sm:$0xff]  ;;  %5439 = vmatprep.subr.bf16.mxu0 %v5438_v41 }
  0x2f   :  { %5475 = vmatprep.subr.bf16.mxu1 %v5474_v15  ;;  %v5482_v30 = vpack.c.bf16 %v99_v25, %v95_v24  ;;  %v103_v35 = vld [vmem:[#allocation4 + $0x158] sm:$0xff]  ;;  %v5484_v40 = vpack.c.bf16 %v98_v31, %v94_v27  ;;  %v102_v45 = vld [vmem:[#allocation4 + $0x150] sm:$0xff]  ;;  %v81_v51 = vld [vmem:[#allocation4 + $0xa8] sm:$0xff] }
  0x30   :  { %v107_v36 = vld [vmem:[#allocation4 + $0x178] sm:$0xff]  ;;  %v106_v46 = vld [vmem:[#allocation4 + $0x170] sm:$0xff]  ;;  %v5442_v52 = vpack.c.bf16 %v81_v51, %v77_v48  ;;  %v76_v53 = vld [vmem:[#allocation4 + $0x80] sm:$0xff]  ;;  %5441 = vmatpush1.bf16.msra.mxu0 %v5440_v47 }
  0x31   :  { %v5486_v44 = vpack.c.bf16 %v107_v36, %v103_v35  ;;  %v111_v49 = vld [vmem:[#allocation4 + $0x198] sm:$0xff]  ;;  %v80_v54 = vld [vmem:[#allocation4 + $0xa0] sm:$0xff]  ;;  %v5488_v55 = vpack.c.bf16 %v106_v46, %v102_v45  ;;  %v110_v56 = vld [vmem:[#allocation4 + $0x190] sm:$0xff] }
  0x32   :  { %5477 = vmatpush1.bf16.msra.mxu1 %v5476_v20  ;;  %v115_v50 = vld [vmem:[#allocation4 + $0x1b8] sm:$0xff]  ;;  %v5444_v57 = vpack.c.bf16 %v80_v54, %v76_v53  ;;  %v85_v58 = vld [vmem:[#allocation4 + $0xc8] sm:$0xff]  ;;  %v114_v61 = vld [vmem:[#allocation4 + $0x1b0] sm:$0xff]  ;;  %5443 = vmatprep.subr.bf16.mxu0 %v5442_v52 }
  0x33   :  { %5479 = vmatprep.subr.bf16.mxu1 %v5478_v21  ;;  %v89_v59 = vld [vmem:[#allocation4 + $0xe8] sm:$0xff]  ;;  %v5490_v60 = vpack.c.bf16 %v115_v50, %v111_v49  ;;  %v84_v63 = vld [vmem:[#allocation4 + $0xc0] sm:$0xff]  ;;  %v119_v2 = vld [vmem:[#allocation4 + $0x1d8] sm:$0xff]  ;;  %v5492_v6 = vpack.c.bf16 %v114_v61, %v110_v56 }
  0x34   :  { %v5446_v62 = vpack.c.bf16 %v89_v59, %v85_v58  ;;  %v88_v1 = vld [vmem:[#allocation4 + $0xe0] sm:$0xff]  ;;  %v123_v3 = vld [vmem:[#allocation4 + $0x1f8] sm:$0xff]  ;;  %v93_v4 = vld [vmem:[#allocation4 + $0x108] sm:$0xff]  ;;  %5445 = vmatpush1.bf16.msra.mxu0 %v5444_v57 }
  0x35   :  { %v97_v5 = vld [vmem:[#allocation4 + $0x128] sm:$0xff]  ;;  %v118_v7 = vld [vmem:[#allocation4 + $0x1d0] sm:$0xff]  ;;  %v5448_v9 = vpack.c.bf16 %v88_v1, %v84_v63  ;;  %v5494_v10 = vpack.c.bf16 %v123_v3, %v119_v2  ;;  %v92_v13 = vld [vmem:[#allocation4 + $0x100] sm:$0xff] }
  0x36   :  { %5481 = vmatpush1.bf16.msra.mxu1 %v5480_v26  ;;  %v122_v8 = vld [vmem:[#allocation4 + $0x1f0] sm:$0xff]  ;;  %v428_v11 = vld [vmem:[#allocation6 + $0x8] sm:$0xff]  ;;  %5447 = vmatprep.subr.bf16.mxu0 %v5446_v62  ;;  %v5450_v12 = vpack.c.bf16 %v97_v5, %v93_v4  ;;  %v96_v14 = vld [vmem:[#allocation4 + $0x120] sm:$0xff] }
  0x37   :  { %5483 = vmatprep.subr.bf16.mxu1 %v5482_v30  ;;  %v432_v15 = vld [vmem:[#allocation6 + $0x28] sm:$0xff]  ;;  %v5496_v18 = vpack.c.bf16 %v122_v8, %v118_v7  ;;  %v5452_v19 = vpack.c.bf16 %v96_v14, %v92_v13  ;;  %v427_v21 = vld [vmem:[#allocation6] sm:$0xff]  ;;  %v53_v54 = vld [vmem:[%s8569_s0 + $0x10] sm:$0xff] }
  0x38   :  { %v101_v16 = vld [vmem:[#allocation4 + $0x148] sm:$0xff]  ;;  %5449 = vmatpush1.bf16.msra.mxu0 %v5448_v9  ;;  %v7293_v20 = vpack.c.bf16 %v432_v15, %v428_v11  ;;  %v431_v22 = vld [vmem:[#allocation6 + $0x20] sm:$0xff]  ;;  %v54_v62 = vld [vmem:[%s8569_s0 + $0x18] sm:$0xff] }
  0x39   :  { %v105_v17 = vld [vmem:[#allocation4 + $0x168] sm:$0xff]  ;;  %5451 = vmatprep.subr.bf16.mxu0 %v5450_v12  ;;  %v100_v26 = vld [vmem:[#allocation4 + $0x140] sm:$0xff]  ;;  %v7300_v31 = vpack.c.bf16 %v431_v22, %v427_v21  ;;  %v57_v21 = vld [vmem:[%s8569_s0 + $0x30] sm:$0xff] }
  0x3a   :  { %5485 = vmatpush1.bf16.msra.mxu1 %v5484_v40  ;;  %v436_v23 = vld [vmem:[#allocation6 + $0x48] sm:$0xff]  ;;  %v5454_v24 = vpack.c.bf16 %v105_v17, %v101_v16  ;;  %v104_v27 = vld [vmem:[#allocation4 + $0x160] sm:$0xff] }
  0x3b   :  { %5487 = vmatprep.subr.bf16.mxu1 %v5486_v44  ;;  %v440_v25 = vld [vmem:[#allocation6 + $0x68] sm:$0xff]  ;;  %v7298_v30 = vld [vmem:[%s8569_s0] sm:$0xff]  ;;  %v5456_v36 = vpack.c.bf16 %v104_v27, %v100_v26  ;;  %v430_v26 = vld [vmem:[#allocation6 + $0x18] sm:$0xff] }
  0x3c   :  { %v109_v28 = vld [vmem:[#allocation4 + $0x188] sm:$0xff]  ;;  %5453 = vmatpush1.bf16.msra.mxu0 %v5452_v19  ;;  %v7303_v32 = vpack.c.bf16 %v440_v25, %v436_v23  ;;  %v435_v33 = vld [vmem:[#allocation6 + $0x40] sm:$0xff]  ;;  %v434_v27 = vld [vmem:[#allocation6 + $0x38] sm:$0xff] }
  0x3d   :  { %v113_v29 = vld [vmem:[#allocation4 + $0x1a8] sm:$0xff]  ;;  %v439_v34 = vld [vmem:[#allocation6 + $0x60] sm:$0xff]  ;;  %5455 = vmatprep.subr.bf16.mxu0 %v5454_v24 }
  0x3e   :  { %5489 = vmatpush1.bf16.msra.mxu1 %v5488_v55  ;;  %v444_v35 = vld [vmem:[#allocation6 + $0x88] sm:$0xff]  ;;  %v5458_v38 = vpack.c.bf16 %v113_v29, %v109_v28  ;;  %v108_v39 = vld [vmem:[#allocation4 + $0x180] sm:$0xff]  ;;  %v7313_v44 = vpack.c.bf16 %v439_v34, %v435_v33  ;;  %v58_v28 = vld [vmem:[%s8569_s0 + $0x38] sm:$0xff] }
  0x3f   :  { %5491 = vmatprep.subr.bf16.mxu1 %v5490_v60  ;;  %v448_v37 = vld [vmem:[#allocation6 + $0xa8] sm:$0xff]  ;;  %v112_v40 = vld [vmem:[#allocation4 + $0x1a0] sm:$0xff]  ;;  %v429_v34 = vld [vmem:[#allocation6 + $0x10] sm:$0xff] }
  0x40   :  { %v117_v41 = vld [vmem:[#allocation4 + $0x1c8] sm:$0xff]  ;;  %v7316_v45 = vpack.c.bf16 %v448_v37, %v444_v35  ;;  %v443_v46 = vld [vmem:[#allocation6 + $0x80] sm:$0xff]  ;;  %5457 = vmatpush1.bf16.msra.mxu0 %v5456_v36  ;;  %v5460_v49 = vpack.c.bf16 %v112_v40, %v108_v39  ;;  %v433_v35 = vld [vmem:[#allocation6 + $0x30] sm:$0xff] }
  0x41   :  { %v121_v42 = vld [vmem:[#allocation4 + $0x1e8] sm:$0xff]  ;;  %v447_v47 = vld [vmem:[#allocation6 + $0xa0] sm:$0xff]  ;;  %5459 = vmatprep.subr.bf16.mxu0 %v5458_v38  ;;  %v438_v36 = vld [vmem:[#allocation6 + $0x58] sm:$0xff]  ;;  %v7404_v38 = vpack.c.bf16 %v433_v35, %v429_v34  ;;  %v126_v34 = vlaneseq }
  0x42   :  { %5493 = vmatpush1.bf16.msra.mxu1 %v5492_v6  ;;  %v7311_v43 = vld [vmem:[%s8569_s0 + $0x8] sm:$0xff]  ;;  %v5462_v51 = vpack.c.bf16 %v121_v42, %v117_v41  ;;  %v116_v52 = vld [vmem:[#allocation4 + $0x1c0] sm:$0xff]  ;;  %v7324_v55 = vpack.c.bf16 %v447_v47, %v443_v46  ;;  %v442_v37 = vld [vmem:[#allocation6 + $0x78] sm:$0xff] }
  0x43   :  { %5495 = vmatprep.subr.bf16.mxu1 %v5494_v10  ;;  %v452_v48 = vld [vmem:[#allocation6 + $0xc8] sm:$0xff]  ;;  %v120_v53 = vld [vmem:[#allocation4 + $0x1e0] sm:$0xff]  ;;  %v7406_v39 = vpack.c.bf16 %v442_v37, %v438_v36  ;;  %v437_v40 = vld [vmem:[#allocation6 + $0x50] sm:$0xff]  ;;  %v7480_v35 = vshrl.u32 %v126_v34, 7 }
  0x44   :  { %v456_v50 = vld [vmem:[#allocation6 + $0xe8] sm:$0xff]  ;;  %v451_v57 = vld [vmem:[#allocation6 + $0xc0] sm:$0xff]  ;;  %5461 = vmatpush1.bf16.msra.mxu0 %v5460_v49  ;;  %v5464_v59 = vpack.c.bf16 %v120_v53, %v116_v52  ;;  %v441_v41 = vld [vmem:[#allocation6 + $0x70] sm:$0xff] }
  0x45   :  { %v7327_v56 = vpack.c.bf16 %v456_v50, %v452_v48  ;;  %v455_v58 = vld [vmem:[#allocation6 + $0xe0] sm:$0xff]  ;;  %v460_v60 = vld [vmem:[#allocation6 + $0x108] sm:$0xff]  ;;  %5463 = vmatprep.subr.bf16.mxu0 %v5462_v51  ;;  %v446_v42 = vld [vmem:[#allocation6 + $0x98] sm:$0xff]  ;;  %v7413_v46 = vpack.c.bf16 %v441_v41, %v437_v40  ;;  %v128_v36 = vsub.s32 0, %v7480_v35  ;;  %v132_v40 = vsub.s32 1, %v7480_v35 }
  0x46   :  { %5497 = vmatpush1.bf16.msra.mxu1 %v5496_v18  ;;  %v464_v61 = vld [vmem:[#allocation6 + $0x128] sm:$0xff]  ;;  %v7334_v63 = vpack.c.bf16 %v455_v58, %v451_v57  ;;  %v459_v2 = vld [vmem:[#allocation6 + $0x100] sm:$0xff]  ;;  %v445_v48 = vld [vmem:[#allocation6 + $0x90] sm:$0xff] }
  0x47   :  { %5499 = vmatprep.subr.bf16.mxu1 %v7293_v20  ;;  %v7337_v1 = vpack.c.bf16 %v464_v61, %v460_v60  ;;  %v463_v3 = vld [vmem:[#allocation6 + $0x120] sm:$0xff]  ;;  %v468_v4 = vld [vmem:[#allocation6 + $0x148] sm:$0xff]  ;;  %v449_v49 = vld [vmem:[#allocation6 + $0xb0] sm:$0xff] }
  0x48   :  { %5465 = vmatpush1.bf16.msra.mxu0 %v5464_v59  ;;  %v472_v5 = vld [vmem:[#allocation6 + $0x168] sm:$0xff]  ;;  %v55_v6 = vld [vmem:[%s8569_s0 + $0x20] sm:$0xff]  ;;  %v7345_v7 = vpack.c.bf16 %v463_v3, %v459_v2  ;;  %v454_v50 = vld [vmem:[#allocation6 + $0xd8] sm:$0xff]  ;;  %v7423_v52 = vpack.c.bf16 %v449_v49, %v445_v48 }
  0x49   :  { %330 = vmatmul.mubr.f32.vlgmr.msra.gmra.mrb[0].mxu1 %v7298_v30  ;;  %5563 = vmatprep.subr.bf16.mxu0 %v7293_v20  ;;  %v7348_v8 = vpack.c.bf16 %v472_v5, %v468_v4  ;;  %v467_v9 = vld [vmem:[#allocation6 + $0x140] sm:$0xff]  ;;  %v476_v11 = vld [vmem:[#allocation6 + $0x188] sm:$0xff]  ;;  %v458_v51 = vld [vmem:[#allocation6 + $0xf8] sm:$0xff] }
  0x4a   :  { %5501 = vmatpush1.bf16.msra.mxu1 %v7300_v31  ;;  %335 = vmatprep.mubr.f32.mxu1 %v7229_v0  ;;  %v471_v10 = vld [vmem:[#allocation6 + $0x160] sm:$0xff]  ;;  %v480_v12 = vld [vmem:[#allocation6 + $0x1a8] sm:$0xff]  ;;  %v7426_v53 = vpack.c.bf16 %v458_v51, %v454_v50  ;;  %v457_v57 = vld [vmem:[#allocation6 + $0xf0] sm:$0xff] }
  0x4b   :  { %5503 = vmatprep.subr.bf16.mxu1 %v7303_v32  ;;  %211 = vmatmul.mubr.f32.vlgmr.msra.gmra.mrb[0].mxu0 %v7298_v30  ;;  %v56_v13 = vld [vmem:[%s8569_s0 + $0x28] sm:$0xff]  ;;  %v7359_v14 = vpack.c.bf16 %v471_v10, %v467_v9  ;;  %v7362_v15 = vpack.c.bf16 %v480_v12, %v476_v11  ;;  %v475_v16 = vld [vmem:[#allocation6 + $0x180] sm:$0xff]  ;;  %v7389_v30 = vpack.c.bf16 %v434_v27, %v430_v26  ;;  %v462_v58 = vld [vmem:[#allocation6 + $0x118] sm:$0xff] }
  0x4c   :  { %5565 = vmatpush1.bf16.msra.mxu0 %v7300_v31  ;;  %216 = vmatprep.mubr.f32.mxu0 %v7229_v0  ;;  %v479_v17 = vld [vmem:[#allocation6 + $0x1a0] sm:$0xff]  ;;  %v484_v18 = vld [vmem:[#allocation6 + $0x1c8] sm:$0xff]  ;;  %v466_v59 = vld [vmem:[#allocation6 + $0x138] sm:$0xff] }
  0x4d   :  { %336 = vmatmul.mubr.f32.gmra.mrb[2].mxu1 %v7311_v43  ;;  %5567 = vmatprep.subr.bf16.mxu0 %v7303_v32  ;;  %v488_v19 = vld [vmem:[#allocation6 + $0x1e8] sm:$0xff]  ;;  %v7373_v22 = vpack.c.bf16 %v479_v17, %v475_v16  ;;  %v483_v24 = vld [vmem:[#allocation6 + $0x1c0] sm:$0xff]  ;;  %v7435_v61 = vpack.c.bf16 %v466_v59, %v462_v58  ;;  %v465_v2 = vld [vmem:[#allocation6 + $0x130] sm:$0xff]  ;;  %v136_v59 = vsub.s32 2, %v7480_v35 }
  0x4e   :  { %5505 = vmatpush1.bf16.msra.mxu1 %v7313_v44  ;;  %341 = vmatprep.mubr.f32.mxu1 %v7229_v0  ;;  %v7376_v23 = vpack.c.bf16 %v488_v19, %v484_v18  ;;  %v487_v25 = vld [vmem:[#allocation6 + $0x1e0] sm:$0xff]  ;;  %v470_v3 = vld [vmem:[#allocation6 + $0x158] sm:$0xff]  ;;  %v473_v9 = vld [vmem:[#allocation6 + $0x170] sm:$0xff] }
  0x4f   :  { %5507 = vmatprep.subr.bf16.mxu1 %v7316_v45  ;;  %217 = vmatmul.mubr.f32.gmra.mrb[2].mxu0 %v7311_v43  ;;  %v7386_v29 = vpack.c.bf16 %v487_v25, %v483_v24  ;;  %v59_v33 = vld [vmem:[%s8569_s0 + $0x40] sm:$0xff]  ;;  %v450_v43 = vld [vmem:[#allocation6 + $0xb8] sm:$0xff]  ;;  %v477_v16 = vld [vmem:[#allocation6 + $0x190] sm:$0xff] }
  0x50   :  { %5569 = vmatpush1.bf16.msra.mxu0 %v7313_v44  ;;  %222 = vmatprep.mubr.f32.mxu0 %v7229_v0  ;;  %v7417_v47 = vpack.c.bf16 %v450_v43, %v446_v42  ;;  %v474_v4 = vld [vmem:[#allocation6 + $0x178] sm:$0xff]  ;;  %v481_v17 = vld [vmem:[#allocation6 + $0x1b0] sm:$0xff]  ;;  %v124_v37 = vld [vmem:[%s8572_s3] sm:$0xf] }
  0x51   :  { %342 = vmatmul.mubr.f32.gmra.mrb[4].mxu1 %v53_v54  ;;  %5571 = vmatprep.subr.bf16.mxu0 %v7316_v45  ;;  %v478_v10 = vld [vmem:[#allocation6 + $0x198] sm:$0xff]  ;;  %v485_v25 = vld [vmem:[#allocation6 + $0x1d0] sm:$0xff]  ;;  %v7489_v41 = vrot.slane %v124_v37, %v128_v36  ;;  %v7493_v42 = vrot.slane %v124_v37, %v132_v40 }
  0x52   :  { %5509 = vmatpush1.bf16.msra.mxu1 %v7324_v55  ;;  %347 = vmatprep.mubr.f32.mxu1 %v7229_v0  ;;  %v482_v11 = vld [vmem:[#allocation6 + $0x1b8] sm:$0xff]  ;;  %v489_v26 = vld [vmem:[#allocation6 + $0x1f0] sm:$0xff] }
  0x53   :  { %5511 = vmatprep.subr.bf16.mxu1 %v7327_v56  ;;  %223 = vmatmul.mubr.f32.gmra.mrb[4].mxu0 %v53_v54  ;;  %v453_v54 = vld [vmem:[#allocation6 + $0xd0] sm:$0xff]  ;;  %v486_v18 = vld [vmem:[#allocation6 + $0x1d8] sm:$0xff]  ;;  %v7457_v27 = vpack.c.bf16 %v489_v26, %v485_v25 }
  0x54   :  { %5573 = vmatpush1.bf16.msra.mxu0 %v7324_v55  ;;  %228 = vmatprep.mubr.f32.mxu0 %v7229_v0  ;;  %v7432_v60 = vpack.c.bf16 %v457_v57, %v453_v54  ;;  %v490_v19 = vld [vmem:[#allocation6 + $0x1f8] sm:$0xff] }
  0x55   :  { %348 = vmatmul.mubr.f32.gmra.mrb[6].mxu1 %v54_v62  ;;  %5575 = vmatprep.subr.bf16.mxu0 %v7327_v56  ;;  %v7454_v24 = vpack.c.bf16 %v490_v19, %v486_v18 }
  0x56   :  { %353 = vmatprep.mubr.f32.mxu1 %v7229_v0  ;;  %5513 = vmatpush1.bf16.msra.mxu1 %v7334_v63 }
  0x57   :  { %5515 = vmatprep.subr.bf16.mxu1 %v7337_v1  ;;  %229 = vmatmul.mubr.f32.gmra.mrb[6].mxu0 %v54_v62  ;;  %v461_v62 = vld [vmem:[#allocation6 + $0x110] sm:$0xff] }
  0x58   :  { %234 = vmatprep.mubr.f32.mxu0 %v7229_v0  ;;  %5577 = vmatpush1.bf16.msra.mxu0 %v7334_v63  ;;  %v7439_v5 = vpack.c.bf16 %v465_v2, %v461_v62  ;;  %v140_v2 = vsub.s32 3, %v7480_v35 }
  0x59   :  { %354 = vmatmul.mubr.f32.gmra.mrb[8].mxu1 %v55_v6  ;;  %5579 = vmatprep.subr.bf16.mxu0 %v7337_v1 }
  0x5a   :  { %359 = vmatprep.mubr.f32.mxu1 %v7229_v0  ;;  %5517 = vmatpush1.bf16.msra.mxu1 %v7345_v7 }
  0x5b   :  { %5519 = vmatprep.subr.bf16.mxu1 %v7348_v8  ;;  %235 = vmatmul.mubr.f32.gmra.mrb[8].mxu0 %v55_v6  ;;  %v469_v6 = vld [vmem:[#allocation6 + $0x150] sm:$0xff] }
  0x5c   :  { %240 = vmatprep.mubr.f32.mxu0 %v7229_v0  ;;  %5581 = vmatpush1.bf16.msra.mxu0 %v7345_v7  ;;  %v7445_v12 = vpack.c.bf16 %v473_v9, %v469_v6  ;;  %v7501_v6 = vrot.slane %v124_v37, %v136_v59 }
  0x5d   :  { %360 = vmatmul.mubr.f32.gmra.mrb[10].mxu1 %v56_v13  ;;  %5583 = vmatprep.subr.bf16.mxu0 %v7348_v8 }
  0x5e   :  { %365 = vmatprep.mubr.f32.mxu1 %v7229_v0  ;;  %5521 = vmatpush1.bf16.msra.mxu1 %v7359_v14 }
  0x5f   :  { %5523 = vmatprep.subr.bf16.mxu1 %v7362_v15  ;;  %241 = vmatmul.mubr.f32.gmra.mrb[10].mxu0 %v56_v13  ;;  %v7448_v13 = vpack.c.bf16 %v482_v11, %v478_v10  ;;  %v7505_v10 = vrot.slane %v124_v37, %v140_v2 }
  0x60   :  { %246 = vmatprep.mubr.f32.mxu0 %v7229_v0  ;;  %5585 = vmatpush1.bf16.msra.mxu0 %v7359_v14 }
  0x61   :  { %366 = vmatmul.mubr.f32.gmra.mrb[12].mxu1 %v57_v21  ;;  %5587 = vmatprep.subr.bf16.mxu0 %v7362_v15 }
  0x62   :  { %371 = vmatprep.mubr.f32.mxu1 %v7229_v0  ;;  %5525 = vmatpush1.bf16.msra.mxu1 %v7373_v22 }
  0x63   :  { %5527 = vmatprep.subr.bf16.mxu1 %v7376_v23  ;;  %247 = vmatmul.mubr.f32.gmra.mrb[12].mxu0 %v57_v21  ;;  %v7451_v21 = vpack.c.bf16 %v481_v17, %v477_v16 }
  0x64   :  { %252 = vmatprep.mubr.f32.mxu0 %v7229_v0  ;;  %5589 = vmatpush1.bf16.msra.mxu0 %v7373_v22 }
  0x65   :  { %372 = vmatmul.mubr.f32.gmra.mrb[14].mxu1 %v58_v28  ;;  %5591 = vmatprep.subr.bf16.mxu0 %v7376_v23 }
  0x66   :  { %377 = vmatprep.mubr.f32.mxu1 %v7229_v0  ;;  %5529 = vmatpush1.bf16.msra.mxu1 %v7386_v29 }
  0x67   :  { %5531 = vmatprep.subr.bf16.mxu1 %v7389_v30  ;;  %253 = vmatmul.mubr.f32.gmra.mrb[14].mxu0 %v58_v28 }
  0x68   :  { %258 = vmatprep.mubr.f32.mxu0 %v7229_v0  ;;  %5593 = vmatpush1.bf16.msra.mxu0 %v7386_v29 }
  0x69   :  { %378 = vmatmul.mubr.f32.gmra.mrb[16].mxu1 %v59_v33  ;;  %5627 = vmatprep.subr.bf16.mxu0 %v7293_v20  ;;  %v7442_v20 = vpack.c.bf16 %v474_v4, %v470_v3 }
  0x6a   :  { %555 = vmatprep.mubr.f32.mxu1 %v7229_v0 }
  0x6b   :  { %259 = vmatmul.mubr.f32.gmra.mrb[16].mxu0 %v59_v33 }
  0x6c   :  { %797 = vmatprep.mubr.f32.mxu0 %v7229_v0 }
  0x6d   :  { %556 = vmatmul.mubr.f32.vlgmr.msra.gmra.mrb[18].mxu1 %v7229_v0 }
  0x6e   :  { %5533 = vmatpush1.bf16.msra.mxu1 %v7404_v38  ;;  %626 = vmatprep.mubr.f32.mxu1 %v7229_v0 }
  0x6f   :  { %5535 = vmatprep.subr.bf16.mxu1 %v7406_v39 }
  0x72   :  { %5537 = vmatpush1.bf16.msra.mxu1 %v7413_v46 }
  0x73   :  { %5539 = vmatprep.subr.bf16.mxu1 %v7417_v47 }
  0x76   :  { %5541 = vmatpush1.bf16.msra.mxu1 %v7423_v52 }
  0x77   :  { %5543 = vmatprep.subr.bf16.mxu1 %v7426_v53 }
  0x7a   :  { %5545 = vmatpush1.bf16.msra.mxu1 %v7432_v60 }
  0x7b   :  { %5547 = vmatprep.subr.bf16.mxu1 %v7435_v61 }
  0x7e   :  { %5549 = vmatpush1.bf16.msra.mxu1 %v7439_v5 }
  0x7f   :  { %5551 = vmatprep.subr.bf16.mxu1 %v7442_v20 }
  0x82   :  { %5553 = vmatpush1.bf16.msra.mxu1 %v7445_v12 }
  0x83   :  { %5555 = vmatprep.subr.bf16.mxu1 %v7448_v13 }
  0x86   :  { %5557 = vmatpush1.bf16.msra.mxu1 %v7451_v21 }
  0x87   :  { %5559 = vmatprep.subr.bf16.mxu1 %v7454_v24 }
  0x8a   :  { %5561 = vmatpush1.bf16.msra.mxu1 %v7457_v27 }
  0x8b   :  { %5595 = vmatprep.subr.bf16.mxu1 %v7389_v30 }
  0x8d   :  { %627 = vmatmul.mubr.f32.vlgmr.msra.gmra.mrb[0].mxu1 %v7229_v0 }
  0x8e   :  { %5597 = vmatpush1.bf16.msra.mxu1 %v7404_v38  ;;  %868 = vmatprep.mubr.f32.mxu1 %v7229_v0 }
  0x8f   :  { %5599 = vmatprep.subr.bf16.mxu1 %v7406_v39 }
  0x92   :  { %5601 = vmatpush1.bf16.msra.mxu1 %v7413_v46 }
  0x93   :  { %5603 = vmatprep.subr.bf16.mxu1 %v7417_v47 }
  0x96   :  { %5605 = vmatpush1.bf16.msra.mxu1 %v7423_v52 }
  0x97   :  { %5607 = vmatprep.subr.bf16.mxu1 %v7426_v53 }
  0x9a   :  { %5609 = vmatpush1.bf16.msra.mxu1 %v7432_v60 }
  0x9b   :  { %5611 = vmatprep.subr.bf16.mxu1 %v7435_v61 }
  0x9e   :  { %5613 = vmatpush1.bf16.msra.mxu1 %v7439_v5 }
  0x9f   :  { %5615 = vmatprep.subr.bf16.mxu1 %v7442_v20 }
  0xa2   :  { %5617 = vmatpush1.bf16.msra.mxu1 %v7445_v12 }
  0xa3   :  { %5619 = vmatprep.subr.bf16.mxu1 %v7448_v13 }
  0xa6   :  { %5621 = vmatpush1.bf16.msra.mxu1 %v7451_v21 }
  0xa7   :  { %5623 = vmatprep.subr.bf16.mxu1 %v7454_v24 }
  0xaa   :  { %5625 = vmatpush1.bf16.msra.mxu1 %v7457_v27 }
  0xab   :  { %5659 = vmatprep.subr.bf16.mxu1 %v7389_v30 }
 0x11e   :  { %v212_v28 = vpop.f32.mrb[0].mxu0 }
 0x11f   :  { %v214_v33 = vpop.f32.mrb[1].mxu0  ;;  %v213_v43 = vadd.f32 %v212_v28, %v7489_v41 }
 0x120   :  { %v215_v48 = vadd.f32 %v214_v33, %v7493_v42 }
 0x140   :  { %v557_v49 = vpop.f32.mrb[18].mxu1 }
 0x141   :  { %v633_v50 = vadd.f32 %v557_v49, %v213_v43  ;;  %v559_v51 = vpop.f32.mrb[19].mxu1 }
 0x142   :  { %v634_v54 = vadd.f32 %v559_v51, %v215_v48 }
 0x143   :  { %v5294_v58 = vmul.f32 -1.442695, %v633_v50 }
 0x144   :  { %v5295_v57 = vmul.f32 -1.442695, %v634_v54 }
 0x146   :  { %6889 = vpow2.f32 %v5295_v57 }
 0x147   :  { %6891 = vpow2.f32 %v5294_v58 }
 0x150   :  { %v6890_v62 = vpop.eup %6889 }
 0x151   :  { %v6892_v3 = vpop.eup %6891  ;;  %v646_v4 = vadd.f32 1.0, %v6890_v62 }
 0x152   :  { %v640_v9 = vadd.f32 1.0, %v6892_v3 }
 0x153   :  { %6893 = vrcp.f32 %v646_v4 }
 0x154   :  { %6895 = vrcp.f32 %v640_v9 }
 0x15d   :  { %v6894_v25 = vpop.eup %6893 }
 0x15e   :  { %v6896_v26 = vpop.eup %6895  ;;  %v656_v33 = vmul.f32 0.0, %v6894_v25 }
 0x160   :  { %v628_v11 = vpop.f32.mrb[0].mxu1 }
 0x161   :  { %v6758_v16 = vadd.f32 %v628_v11, %v7501_v6  ;;  %v630_v17 = vpop.f32.mrb[1].mxu1 }
 0x162   :  { %v6759_v18 = vadd.f32 %v630_v17, %v7505_v10 }
 0x163   :  { %6897 = vtanh.f32 %v6758_v16 }
 0x164   :  { %v5296_v19 = vmul.f32 -1.442695, %v6759_v18  ;;  %v1171_v18 = vld [vmem:[#allocation6 + $0x80] sm:$0xff] }
 0x166   :  { %6899 = vpow2.f32 %v5296_v19  ;;  %v1175_v19 = vld [vmem:[#allocation6 + $0xa0] sm:$0xff] }
 0x167   :  { %v7592_v25 = vpack.c.bf16 %v1175_v19, %v1171_v18 }
 0x16d   :  { %v6898_v28 = vpop.eup %6897 }
 0x16e   :  { %v657_v34 = vmul.f32 %v6898_v28, %v6896_v26  ;;  %v1180_v26 = vld [vmem:[#allocation6 + $0xc8] sm:$0xff] }
 0x16f   :  { %v1184_v28 = vld [vmem:[#allocation6 + $0xe8] sm:$0xff] }
 0x170   :  { %v6900_v43 = vpop.eup %6899  ;;  %v7509_v48 = vadd.f32 %v657_v34, %v656_v33  ;;  %v7596_v33 = vpack.c.bf16 %v1184_v28, %v1180_v26  ;;  %v1179_v34 = vld [vmem:[#allocation6 + $0xc0] sm:$0xff] }
 0x171   :  { %v653_v37 = vadd.f32 1.0, %v6900_v43  ;;  %v1183_v43 = vld [vmem:[#allocation6 + $0xe0] sm:$0xff] }
 0x172   :  { %6901 = vtanh.f32 %v7509_v48 }
 0x173   :  { %6903 = vrcp.f32 %v653_v37  ;;  %v1188_v37 = vld [vmem:[#allocation6 + $0x108] sm:$0xff] }
 0x17c   :  { %v6902_v49 = vpop.eup %6901 }
 0x17d   :  { %v6904_v50 = vpop.eup %6903 }
 0x17e   :  { %v7512_v51 = vmul.f32 %v6904_v50, %v6902_v49  ;;  %v1192_v49 = vld [vmem:[#allocation6 + $0x128] sm:$0xff] }
 0x17f   :  { %v7602_v50 = vpack.c.bf16 %v1192_v49, %v1188_v37 }
 0x180   :  { %798 = vmatmul.mubr.f32.vlgmr.msra.gmra.mrb[2].mxu0 %v7512_v51  ;;  %869 = vmatmul.mubr.f32.vlgmr.msra.gmra.mrb[2].mxu1 %v7512_v51 }
 0x181   :  { %5629 = vmatpush1.bf16.msra.mxu0 %v7300_v31  ;;  %5661 = vmatpush1.bf16.msra.mxu1 %v7404_v38 }
 0x182   :  { %5631 = vmatprep.subr.bf16.mxu0 %v7303_v32  ;;  %5663 = vmatprep.subr.bf16.mxu1 %v7406_v39 }
 0x183   :  { %1040 = vmatprep.mubr.f32.mxu0 %v7229_v0  ;;  %1111 = vmatprep.mubr.f32.mxu1 %v7229_v0 }
 0x185   :  { %5633 = vmatpush1.bf16.msra.mxu0 %v7313_v44  ;;  %5665 = vmatpush1.bf16.msra.mxu1 %v7413_v46 }
 0x186   :  { %5635 = vmatprep.subr.bf16.mxu0 %v7316_v45  ;;  %5667 = vmatprep.subr.bf16.mxu1 %v7417_v47 }
 0x189   :  { %5637 = vmatpush1.bf16.msra.mxu0 %v7324_v55  ;;  %5669 = vmatpush1.bf16.msra.mxu1 %v7423_v52 }
 0x18a   :  { %5639 = vmatprep.subr.bf16.mxu0 %v7327_v56  ;;  %5671 = vmatprep.subr.bf16.mxu1 %v7426_v53 }
 0x18d   :  { %5641 = vmatpush1.bf16.msra.mxu0 %v7334_v63  ;;  %5673 = vmatpush1.bf16.msra.mxu1 %v7432_v60 }
 0x18e   :  { %5643 = vmatprep.subr.bf16.mxu0 %v7337_v1  ;;  %5675 = vmatprep.subr.bf16.mxu1 %v7435_v61 }
 0x191   :  { %5645 = vmatpush1.bf16.msra.mxu0 %v7345_v7  ;;  %5677 = vmatpush1.bf16.msra.mxu1 %v7439_v5 }
 0x192   :  { %5647 = vmatprep.subr.bf16.mxu0 %v7348_v8  ;;  %5679 = vmatprep.subr.bf16.mxu1 %v7442_v20 }
 0x195   :  { %5649 = vmatpush1.bf16.msra.mxu0 %v7359_v14  ;;  %5681 = vmatpush1.bf16.msra.mxu1 %v7445_v12 }
 0x196   :  { %5651 = vmatprep.subr.bf16.mxu0 %v7362_v15  ;;  %5683 = vmatprep.subr.bf16.mxu1 %v7448_v13 }
 0x199   :  { %5653 = vmatpush1.bf16.msra.mxu0 %v7373_v22  ;;  %5685 = vmatpush1.bf16.msra.mxu1 %v7451_v21 }
 0x19a   :  { %5655 = vmatprep.subr.bf16.mxu0 %v7376_v23  ;;  %5687 = vmatprep.subr.bf16.mxu1 %v7454_v24 }
 0x19d   :  { %5657 = vmatpush1.bf16.msra.mxu0 %v7386_v29  ;;  %5689 = vmatpush1.bf16.msra.mxu1 %v7457_v27 }
 0x19e   :  { %5723 = vmatprep.subr.bf16.mxu1 %v7389_v30 }
 0x253   :  { %v799_v31 = vpop.f32.mrb[2].mxu0  ;;  %v870_v32 = vpop.f32.mrb[2].mxu1 }
 0x254   :  { %v6742_v44 = vadd.f32 %v799_v31, %v7489_v41  ;;  %v801_v45 = vpop.f32.mrb[3].mxu0  ;;  %v872_v55 = vpop.f32.mrb[3].mxu1  ;;  %v6760_v14 = vadd.f32 %v870_v32, %v7501_v6  ;;  %v1187_v31 = vld [vmem:[#allocation6 + $0x100] sm:$0xff] }
 0x255   :  { %v6743_v56 = vadd.f32 %v801_v45, %v7493_v42  ;;  %v6761_v7 = vadd.f32 %v872_v55, %v7505_v10  ;;  %v1191_v32 = vld [vmem:[#allocation6 + $0x120] sm:$0xff]  ;;  %v1196_v45 = vld [vmem:[#allocation6 + $0x148] sm:$0xff] }
 0x256   :  { %v5297_v63 = vmul.f32 -1.442695, %v6742_v44  ;;  %v7604_v44 = vpack.c.bf16 %v1191_v32, %v1187_v31  ;;  %v1200_v55 = vld [vmem:[#allocation6 + $0x168] sm:$0xff] }
 0x257   :  { %v5298_v1 = vmul.f32 -1.442695, %v6743_v56  ;;  %v5299_v8 = vmul.f32 -1.442695, %v6761_v7  ;;  %v1195_v56 = vld [vmem:[#allocation6 + $0x140] sm:$0xff]  ;;  %v1204_v7 = vld [vmem:[#allocation6 + $0x188] sm:$0xff] }
 0x258   :  { %6905 = vpow2.f32 %v5297_v63  ;;  %v7608_v63 = vpack.c.bf16 %v1200_v55, %v1196_v45 }
 0x259   :  { %6907 = vpow2.f32 %v5298_v1  ;;  %v1199_v1 = vld [vmem:[#allocation6 + $0x160] sm:$0xff] }
 0x25a   :  { %6909 = vpow2.f32 %v5299_v8  ;;  %v1208_v8 = vld [vmem:[#allocation6 + $0x1a8] sm:$0xff] }
 0x25b   :  { %6911 = vtanh.f32 %v6760_v14  ;;  %v7610_v14 = vpack.c.bf16 %v1199_v1, %v1195_v56  ;;  %v1405_v1 = vld [vmem:[#allocation6 + $0x38] sm:$0xff] }
 0x262   :  { %v6906_v15 = vpop.eup %6905 }
 0x263   :  { %v6908_v22 = vpop.eup %6907  ;;  %v882_v23 = vadd.f32 1.0, %v6906_v15  ;;  %v7612_v15 = vpack.c.bf16 %v1208_v8, %v1204_v7  ;;  %v1400_v8 = vld [vmem:[#allocation6 + $0x10] sm:$0xff] }
 0x264   :  { %v888_v29 = vadd.f32 1.0, %v6908_v22  ;;  %v6910_v30 = vpop.eup %6909  ;;  %v1203_v22 = vld [vmem:[#allocation6 + $0x180] sm:$0xff] }
 0x265   :  { %6913 = vrcp.f32 %v882_v23  ;;  %v6912_v54 = vpop.eup %6911  ;;  %v895_v3 = vadd.f32 1.0, %v6910_v30  ;;  %v1207_v23 = vld [vmem:[#allocation6 + $0x1a0] sm:$0xff]  ;;  %v1216_v30 = vld [vmem:[#allocation6 + $0x1e8] sm:$0xff] }
 0x266   :  { %6915 = vrcp.f32 %v888_v29  ;;  %v1212_v29 = vld [vmem:[#allocation6 + $0x1c8] sm:$0xff] }
 0x267   :  { %6917 = vrcp.f32 %v895_v3 }
 0x26f   :  { %v6914_v57 = vpop.eup %6913 }
 0x270   :  { %v6916_v58 = vpop.eup %6915  ;;  %v899_v62 = vmul.f32 %v6914_v57, %v6912_v54  ;;  %v7616_v54 = vpack.c.bf16 %v1207_v23, %v1203_v22  ;;  %v7619_v57 = vpack.c.bf16 %v1216_v30, %v1212_v29  ;;  %v1404_v22 = vld [vmem:[#allocation6 + $0x30] sm:$0xff]  ;;  %v1409_v29 = vld [vmem:[#allocation6 + $0x58] sm:$0xff] }
 0x271   :  { %v898_v4 = vmul.f32 %v6916_v58, %v7509_v48  ;;  %v6918_v11 = vpop.eup %6917  ;;  %v7598_v48 = vpack.c.bf16 %v1183_v43, %v1179_v34  ;;  %v1211_v58 = vld [vmem:[#allocation6 + $0x1c0] sm:$0xff]  ;;  %v7659_v23 = vpack.c.bf16 %v1404_v22, %v1400_v8  ;;  %v1413_v30 = vld [vmem:[#allocation6 + $0x78] sm:$0xff] }
 0x272   :  { %v1453_v8 = vld [vmem:[#allocation6 + $0x1b8] sm:$0xff] }
 0x273   :  { %v7554_v9 = vadd.f32 %v899_v62, %v898_v4  ;;  %v1215_v62 = vld [vmem:[#allocation6 + $0x1e0] sm:$0xff] }
 0x274   :  { %v7622_v3 = vpack.c.bf16 %v1215_v62, %v1211_v58  ;;  %v7663_v58 = vpack.c.bf16 %v1413_v30, %v1409_v29  ;;  %v1408_v62 = vld [vmem:[#allocation6 + $0x50] sm:$0xff] }
 0x275   :  { %6919 = vtanh.f32 %v7554_v9  ;;  %v1448_v30 = vld [vmem:[#allocation6 + $0x190] sm:$0xff] }
 0x27f   :  { %v6920_v16 = vpop.eup %6919 }
 0x280   :  { %v7557_v17 = vmul.f32 %v6920_v16, %v6918_v11 }
 0x282   :  { %1041 = vmatmul.mubr.f32.vlgmr.msra.gmra.mrb[4].mxu0 %v7557_v17  ;;  %1112 = vmatmul.mubr.f32.vlgmr.msra.gmra.mrb[4].mxu1 %v7557_v17 }
 0x283   :  { %5725 = vmatpush1.bf16.msra.mxu1 %v7404_v38  ;;  %1283 = vmatprep.mubr.f32.mxu0 %v7229_v0  ;;  %v1156_v38 = vld [vmem:[#allocation6 + $0x8] sm:$0xff] }
 0x284   :  { %5727 = vmatprep.subr.bf16.mxu1 %v7406_v39  ;;  %1354 = vmatprep.mubr.f32.mxu1 %v7229_v0  ;;  %v1160_v39 = vld [vmem:[#allocation6 + $0x28] sm:$0xff] }
 0x287   :  { %5729 = vmatpush1.bf16.msra.mxu1 %v7413_v46  ;;  %v7578_v46 = vpack.c.bf16 %v1160_v39, %v1156_v38 }
 0x288   :  { %5731 = vmatprep.subr.bf16.mxu1 %v7417_v47  ;;  %v1155_v47 = vld [vmem:[#allocation6] sm:$0xff] }
 0x289   :  { %5691 = vmatprep.subr.bf16.mxu0 %v7578_v46 }
 0x28b   :  { %5733 = vmatpush1.bf16.msra.mxu1 %v7423_v52  ;;  %v1159_v52 = vld [vmem:[#allocation6 + $0x20] sm:$0xff] }
 0x28c   :  { %5735 = vmatprep.subr.bf16.mxu1 %v7426_v53  ;;  %v7580_v53 = vpack.c.bf16 %v1159_v52, %v1155_v47 }
 0x28e   :  { %5693 = vmatpush1.bf16.msra.mxu0 %v7580_v53 }
 0x28f   :  { %5737 = vmatpush1.bf16.msra.mxu1 %v7432_v60  ;;  %v1164_v60 = vld [vmem:[#allocation6 + $0x48] sm:$0xff] }
 0x290   :  { %5739 = vmatprep.subr.bf16.mxu1 %v7435_v61  ;;  %v1168_v61 = vld [vmem:[#allocation6 + $0x68] sm:$0xff] }
 0x293   :  { %5741 = vmatpush1.bf16.msra.mxu1 %v7439_v5  ;;  %v7584_v5 = vpack.c.bf16 %v1168_v61, %v1164_v60 }
 0x294   :  { %5743 = vmatprep.subr.bf16.mxu1 %v7442_v20  ;;  %v1163_v20 = vld [vmem:[#allocation6 + $0x40] sm:$0xff] }
 0x295   :  { %5695 = vmatprep.subr.bf16.mxu0 %v7584_v5 }
 0x297   :  { %5745 = vmatpush1.bf16.msra.mxu1 %v7445_v12  ;;  %v1167_v12 = vld [vmem:[#allocation6 + $0x60] sm:$0xff] }
 0x298   :  { %5747 = vmatprep.subr.bf16.mxu1 %v7448_v13  ;;  %v7586_v13 = vpack.c.bf16 %v1167_v12, %v1163_v20 }
 0x29a   :  { %5697 = vmatpush1.bf16.msra.mxu0 %v7586_v13 }
 0x29b   :  { %5749 = vmatpush1.bf16.msra.mxu1 %v7451_v21  ;;  %v1172_v21 = vld [vmem:[#allocation6 + $0x88] sm:$0xff] }
 0x29c   :  { %5751 = vmatprep.subr.bf16.mxu1 %v7454_v24  ;;  %v1176_v24 = vld [vmem:[#allocation6 + $0xa8] sm:$0xff] }
 0x29f   :  { %5753 = vmatpush1.bf16.msra.mxu1 %v7457_v27  ;;  %v7590_v27 = vpack.c.bf16 %v1176_v24, %v1172_v21 }
 0x2a1   :  { %5699 = vmatprep.subr.bf16.mxu0 %v7590_v27 }
 0x2a2   :  { %5701 = vmatpush1.bf16.msra.mxu0 %v7592_v25 }
 0x2a3   :  { %5703 = vmatprep.subr.bf16.mxu0 %v7596_v33 }
 0x2a6   :  { %5705 = vmatpush1.bf16.msra.mxu0 %v7598_v48 }
 0x2a7   :  { %5707 = vmatprep.subr.bf16.mxu0 %v7602_v50 }
 0x2aa   :  { %5709 = vmatpush1.bf16.msra.mxu0 %v7604_v44 }
 0x2ab   :  { %5711 = vmatprep.subr.bf16.mxu0 %v7608_v63 }
 0x2ae   :  { %5713 = vmatpush1.bf16.msra.mxu0 %v7610_v14 }
 0x2af   :  { %5715 = vmatprep.subr.bf16.mxu0 %v7612_v15 }
 0x2b2   :  { %5717 = vmatpush1.bf16.msra.mxu0 %v7616_v54 }
 0x2b3   :  { %5719 = vmatprep.subr.bf16.mxu0 %v7619_v57 }
 0x2b6   :  { %5721 = vmatpush1.bf16.msra.mxu0 %v7622_v3 }
 0x2b7   :  { %5755 = vmatprep.subr.bf16.mxu0 %v7578_v46 }
 0x355   :  { %v1042_v4 = vpop.f32.mrb[4].mxu0  ;;  %v1113_v11 = vpop.f32.mrb[4].mxu1 }
 0x356   :  { %v6744_v16 = vadd.f32 %v1042_v4, %v7489_v41  ;;  %v1044_v38 = vpop.f32.mrb[5].mxu0  ;;  %v1115_v39 = vpop.f32.mrb[5].mxu1  ;;  %v6762_v12 = vadd.f32 %v1113_v11, %v7501_v6  ;;  %v1412_v4 = vld [vmem:[#allocation6 + $0x70] sm:$0xff] }
 0x357   :  { %v6745_v47 = vadd.f32 %v1044_v38, %v7493_v42  ;;  %v6763_v61 = vadd.f32 %v1115_v39, %v7505_v10  ;;  %v7665_v11 = vpack.c.bf16 %v1412_v4, %v1408_v62  ;;  %v1421_v38 = vld [vmem:[#allocation6 + $0xb8] sm:$0xff]  ;;  %v1452_v62 = vld [vmem:[#allocation6 + $0x1b0] sm:$0xff] }
 0x358   :  { %v5300_v52 = vmul.f32 -1.442695, %v6744_v16  ;;  %v1417_v16 = vld [vmem:[#allocation6 + $0x98] sm:$0xff] }
 0x359   :  { %v5301_v60 = vmul.f32 -1.442695, %v6745_v47  ;;  %v5302_v20 = vmul.f32 -1.442695, %v6763_v61  ;;  %v7669_v39 = vpack.c.bf16 %v1421_v38, %v1417_v16  ;;  %v1416_v47 = vld [vmem:[#allocation6 + $0x90] sm:$0xff]  ;;  %v1425_v61 = vld [vmem:[#allocation6 + $0xd8] sm:$0xff]  ;;  %v7695_v38 = vpack.c.bf16 %v1452_v62, %v1448_v30 }
 0x35a   :  { %6921 = vpow2.f32 %v5300_v52  ;;  %v1420_v52 = vld [vmem:[#allocation6 + $0xb0] sm:$0xff]  ;;  %v1457_v4 = vld [vmem:[#allocation6 + $0x1d8] sm:$0xff] }
 0x35b   :  { %6923 = vpow2.f32 %v5301_v60  ;;  %v7671_v60 = vpack.c.bf16 %v1420_v52, %v1416_v47  ;;  %v1461_v16 = vld [vmem:[#allocation6 + $0x1f8] sm:$0xff]  ;;  %v1456_v52 = vld [vmem:[#allocation6 + $0x1d0] sm:$0xff] }
 0x35c   :  { %6925 = vpow2.f32 %v5302_v20  ;;  %v1429_v20 = vld [vmem:[#allocation6 + $0xf8] sm:$0xff]  ;;  %v7698_v47 = vpack.c.bf16 %v1461_v16, %v1457_v4 }
 0x35d   :  { %6927 = vtanh.f32 %v6762_v12  ;;  %v7675_v12 = vpack.c.bf16 %v1429_v20, %v1425_v61  ;;  %v1460_v61 = vld [vmem:[#allocation6 + $0x1f0] sm:$0xff] }
 0x35e   :  { %v7701_v20 = vpack.c.bf16 %v1460_v61, %v1456_v52 }
 0x364   :  { %v6922_v21 = vpop.eup %6921 }
 0x365   :  { %v6924_v24 = vpop.eup %6923  ;;  %v1125_v18 = vadd.f32 1.0, %v6922_v21  ;;  %v1424_v21 = vld [vmem:[#allocation6 + $0xd0] sm:$0xff] }
 0x366   :  { %v1131_v19 = vadd.f32 1.0, %v6924_v24  ;;  %v6926_v26 = vpop.eup %6925  ;;  %v1428_v24 = vld [vmem:[#allocation6 + $0xf0] sm:$0xff] }
 0x367   :  { %6929 = vrcp.f32 %v1125_v18  ;;  %v6928_v28 = vpop.eup %6927  ;;  %v1138_v49 = vadd.f32 1.0, %v6926_v26  ;;  %v7677_v18 = vpack.c.bf16 %v1428_v24, %v1424_v21  ;;  %v1437_v26 = vld [vmem:[#allocation6 + $0x138] sm:$0xff] }
 0x368   :  { %6931 = vrcp.f32 %v1131_v19  ;;  %v1433_v19 = vld [vmem:[#allocation6 + $0x118] sm:$0xff] }
 0x369   :  { %6933 = vrcp.f32 %v1138_v49  ;;  %v1441_v49 = vld [vmem:[#allocation6 + $0x158] sm:$0xff] }
 0x371   :  { %v6930_v34 = vpop.eup %6929 }
 0x372   :  { %v6932_v43 = vpop.eup %6931  ;;  %v1142_v37 = vmul.f32 %v6930_v34, %v6928_v28  ;;  %v7681_v28 = vpack.c.bf16 %v1437_v26, %v1433_v19  ;;  %v1432_v34 = vld [vmem:[#allocation6 + $0x110] sm:$0xff] }
 0x373   :  { %v1141_v31 = vmul.f32 %v6932_v43, %v7554_v9  ;;  %v6934_v45 = vpop.eup %6933  ;;  %v1401_v9 = vld [vmem:[#allocation6 + $0x18] sm:$0xff]  ;;  %v1436_v43 = vld [vmem:[#allocation6 + $0x130] sm:$0xff] }
 0x374   :  { %v7657_v7 = vpack.c.bf16 %v1405_v1, %v1401_v9  ;;  %v1444_v9 = vld [vmem:[#allocation6 + $0x170] sm:$0xff]  ;;  %v1449_v1 = vld [vmem:[#allocation6 + $0x198] sm:$0xff] }
 0x375   :  { %v7632_v32 = vadd.f32 %v1142_v37, %v1141_v31  ;;  %v7683_v37 = vpack.c.bf16 %v1436_v43, %v1432_v34  ;;  %v1445_v31 = vld [vmem:[#allocation6 + $0x178] sm:$0xff]  ;;  %v7691_v29 = vpack.c.bf16 %v1453_v8, %v1449_v1 }
 0x376   :  { %5787 = vmatprep.subr.bf16.mxu1 %v7657_v7 }
 0x377   :  { %6935 = vtanh.f32 %v7632_v32 }
 0x381   :  { %v6936_v55 = vpop.eup %6935 }
 0x382   :  { %v7635_v56 = vmul.f32 %v6936_v55, %v6934_v45  ;;  %v1440_v45 = vld [vmem:[#allocation6 + $0x150] sm:$0xff]  ;;  %v7687_v55 = vpack.c.bf16 %v1445_v31, %v1441_v49 }
 0x383   :  { %v7689_v22 = vpack.c.bf16 %v1444_v9, %v1440_v45 }
 0x384   :  { %1284 = vmatmul.mubr.f32.vlgmr.msra.gmra.mrb[6].mxu0 %v7635_v56  ;;  %1355 = vmatmul.mubr.f32.vlgmr.msra.gmra.mrb[6].mxu1 %v7635_v56 }
 0x385   :  { %5757 = vmatpush1.bf16.msra.mxu0 %v7580_v53  ;;  %1526 = vmatprep.mubr.f32.mxu0 %v7229_v0 }
 0x386   :  { %5759 = vmatprep.subr.bf16.mxu0 %v7584_v5  ;;  %1597 = vmatprep.mubr.f32.mxu1 %v7229_v0 }
 0x387   :  { %5789 = vmatpush1.bf16.msra.mxu1 %v7659_v23 }
 0x388   :  { %5791 = vmatprep.subr.bf16.mxu1 %v7663_v58 }
 0x389   :  { %5761 = vmatpush1.bf16.msra.mxu0 %v7586_v13 }
 0x38a   :  { %5763 = vmatprep.subr.bf16.mxu0 %v7590_v27 }
 0x38b   :  { %5793 = vmatpush1.bf16.msra.mxu1 %v7665_v11 }
 0x38c   :  { %5795 = vmatprep.subr.bf16.mxu1 %v7669_v39 }
 0x38d   :  { %5765 = vmatpush1.bf16.msra.mxu0 %v7592_v25 }
 0x38e   :  { %5767 = vmatprep.subr.bf16.mxu0 %v7596_v33 }
 0x38f   :  { %5797 = vmatpush1.bf16.msra.mxu1 %v7671_v60 }
 0x390   :  { %5799 = vmatprep.subr.bf16.mxu1 %v7675_v12 }
 0x391   :  { %5769 = vmatpush1.bf16.msra.mxu0 %v7598_v48 }
 0x392   :  { %5771 = vmatprep.subr.bf16.mxu0 %v7602_v50 }
 0x393   :  { %5801 = vmatpush1.bf16.msra.mxu1 %v7677_v18 }
 0x394   :  { %5803 = vmatprep.subr.bf16.mxu1 %v7681_v28 }
 0x395   :  { %5773 = vmatpush1.bf16.msra.mxu0 %v7604_v44 }
 0x396   :  { %5775 = vmatprep.subr.bf16.mxu0 %v7608_v63 }
 0x397   :  { %5805 = vmatpush1.bf16.msra.mxu1 %v7683_v37 }
 0x398   :  { %5807 = vmatprep.subr.bf16.mxu1 %v7687_v55 }
 0x399   :  { %5777 = vmatpush1.bf16.msra.mxu0 %v7610_v14 }
 0x39a   :  { %5779 = vmatprep.subr.bf16.mxu0 %v7612_v15 }
 0x39b   :  { %5809 = vmatpush1.bf16.msra.mxu1 %v7689_v22 }
 0x39c   :  { %5811 = vmatprep.subr.bf16.mxu1 %v7691_v29 }
 0x39d   :  { %5781 = vmatpush1.bf16.msra.mxu0 %v7616_v54 }
 0x39e   :  { %5783 = vmatprep.subr.bf16.mxu0 %v7619_v57 }
 0x39f   :  { %5813 = vmatpush1.bf16.msra.mxu1 %v7695_v38 }
 0x3a0   :  { %5815 = vmatprep.subr.bf16.mxu1 %v7698_v47 }
 0x3a1   :  { %5785 = vmatpush1.bf16.msra.mxu0 %v7622_v3 }
 0x3a2   :  { %5819 = vmatprep.subr.bf16.mxu0 %v7578_v46 }
 0x3a3   :  { %5817 = vmatpush1.bf16.msra.mxu1 %v7701_v20 }
 0x3a4   :  { %5851 = vmatprep.subr.bf16.mxu1 %v7657_v7 }
 0x457   :  { %v1285_v21 = vpop.f32.mrb[6].mxu0  ;;  %v1356_v24 = vpop.f32.mrb[6].mxu1 }
 0x458   :  { %v6746_v19 = vadd.f32 %v1285_v21, %v7489_v41  ;;  %v1287_v26 = vpop.f32.mrb[7].mxu0  ;;  %v1358_v34 = vpop.f32.mrb[7].mxu1  ;;  %v6764_v1 = vadd.f32 %v1356_v24, %v7501_v6 }
 0x459   :  { %v6747_v43 = vadd.f32 %v1287_v26, %v7493_v42  ;;  %v6765_v45 = vadd.f32 %v1358_v34, %v7505_v10 }
 0x45a   :  { %v5303_v49 = vmul.f32 -1.442695, %v6746_v19 }
 0x45b   :  { %v5304_v31 = vmul.f32 -1.442695, %v6747_v43  ;;  %v5305_v9 = vmul.f32 -1.442695, %v6765_v45 }
 0x45c   :  { %6937 = vpow2.f32 %v5303_v49 }
 0x45d   :  { %6939 = vpow2.f32 %v5304_v31 }
 0x45e   :  { %6941 = vpow2.f32 %v5305_v9 }
 0x45f   :  { %6943 = vtanh.f32 %v6764_v1 }
 0x466   :  { %v6938_v8 = vpop.eup %6937 }
 0x467   :  { %v6940_v30 = vpop.eup %6939  ;;  %v1368_v62 = vadd.f32 1.0, %v6938_v8 }
 0x468   :  { %v1374_v4 = vadd.f32 1.0, %v6940_v30  ;;  %v6942_v16 = vpop.eup %6941 }
 0x469   :  { %6945 = vrcp.f32 %v1368_v62  ;;  %v6944_v52 = vpop.eup %6943  ;;  %v1381_v26 = vadd.f32 1.0, %v6942_v16 }
 0x46a   :  { %6947 = vrcp.f32 %v1374_v4 }
 0x46b   :  { %6949 = vrcp.f32 %v1381_v26 }
 0x473   :  { %v6946_v61 = vpop.eup %6945 }
 0x474   :  { %v6948_v21 = vpop.eup %6947  ;;  %v1385_v19 = vmul.f32 %v6946_v61, %v6944_v52 }
 0x475   :  { %v1384_v43 = vmul.f32 %v6948_v21, %v7632_v32  ;;  %v6950_v24 = vpop.eup %6949 }
 0x477   :  { %v7711_v34 = vadd.f32 %v1385_v19, %v1384_v43 }
 0x479   :  { %6951 = vtanh.f32 %v7711_v34 }
 0x483   :  { %v6952_v49 = vpop.eup %6951 }
 0x484   :  { %v7714_v31 = vmul.f32 %v6952_v49, %v6950_v24 }
 0x486   :  { %1527 = vmatmul.mubr.f32.vlgmr.msra.gmra.mrb[8].mxu0 %v7714_v31  ;;  %1598 = vmatmul.mubr.f32.vlgmr.msra.gmra.mrb[8].mxu1 %v7714_v31 }
 0x487   :  { %5821 = vmatpush1.bf16.msra.mxu0 %v7580_v53  ;;  %5853 = vmatpush1.bf16.msra.mxu1 %v7659_v23 }
 0x488   :  { %5823 = vmatprep.subr.bf16.mxu0 %v7584_v5  ;;  %5855 = vmatprep.subr.bf16.mxu1 %v7663_v58 }
 0x489   :  { %1769 = vmatprep.mubr.f32.mxu0 %v7229_v0  ;;  %1840 = vmatprep.mubr.f32.mxu1 %v7229_v0 }
 0x48b   :  { %5825 = vmatpush1.bf16.msra.mxu0 %v7586_v13  ;;  %5857 = vmatpush1.bf16.msra.mxu1 %v7665_v11 }
 0x48c   :  { %5827 = vmatprep.subr.bf16.mxu0 %v7590_v27  ;;  %5859 = vmatprep.subr.bf16.mxu1 %v7669_v39 }
 0x48f   :  { %5829 = vmatpush1.bf16.msra.mxu0 %v7592_v25  ;;  %5861 = vmatpush1.bf16.msra.mxu1 %v7671_v60 }
 0x490   :  { %5831 = vmatprep.subr.bf16.mxu0 %v7596_v33  ;;  %5863 = vmatprep.subr.bf16.mxu1 %v7675_v12 }
 0x493   :  { %5833 = vmatpush1.bf16.msra.mxu0 %v7598_v48  ;;  %5865 = vmatpush1.bf16.msra.mxu1 %v7677_v18 }
 0x494   :  { %5835 = vmatprep.subr.bf16.mxu0 %v7602_v50  ;;  %5867 = vmatprep.subr.bf16.mxu1 %v7681_v28 }
 0x497   :  { %5837 = vmatpush1.bf16.msra.mxu0 %v7604_v44  ;;  %5869 = vmatpush1.bf16.msra.mxu1 %v7683_v37 }
 0x498   :  { %5839 = vmatprep.subr.bf16.mxu0 %v7608_v63  ;;  %5871 = vmatprep.subr.bf16.mxu1 %v7687_v55 }
 0x49b   :  { %5841 = vmatpush1.bf16.msra.mxu0 %v7610_v14  ;;  %5873 = vmatpush1.bf16.msra.mxu1 %v7689_v22 }
 0x49c   :  { %5843 = vmatprep.subr.bf16.mxu0 %v7612_v15  ;;  %5875 = vmatprep.subr.bf16.mxu1 %v7691_v29 }
 0x49f   :  { %5845 = vmatpush1.bf16.msra.mxu0 %v7616_v54  ;;  %5877 = vmatpush1.bf16.msra.mxu1 %v7695_v38 }
 0x4a0   :  { %5847 = vmatprep.subr.bf16.mxu0 %v7619_v57  ;;  %5879 = vmatprep.subr.bf16.mxu1 %v7698_v47 }
 0x4a3   :  { %5849 = vmatpush1.bf16.msra.mxu0 %v7622_v3  ;;  %5881 = vmatpush1.bf16.msra.mxu1 %v7701_v20 }
 0x4a4   :  { %5883 = vmatprep.subr.bf16.mxu0 %v7578_v46  ;;  %5915 = vmatprep.subr.bf16.mxu1 %v7657_v7 }
 0x559   :  { %v1528_v32 = vpop.f32.mrb[8].mxu0  ;;  %v1599_v45 = vpop.f32.mrb[8].mxu1 }
 0x55a   :  { %v6748_v9 = vadd.f32 %v1528_v32, %v7489_v41  ;;  %v1530_v1 = vpop.f32.mrb[9].mxu0  ;;  %v1601_v8 = vpop.f32.mrb[9].mxu1  ;;  %v6766_v61 = vadd.f32 %v1599_v45, %v7501_v6 }
 0x55b   :  { %v6749_v30 = vadd.f32 %v1530_v1, %v7493_v42  ;;  %v6767_v16 = vadd.f32 %v1601_v8, %v7505_v10 }
 0x55c   :  { %v5306_v62 = vmul.f32 -1.442695, %v6748_v9 }
 0x55d   :  { %v5307_v4 = vmul.f32 -1.442695, %v6749_v30  ;;  %v5308_v52 = vmul.f32 -1.442695, %v6767_v16 }
 0x55e   :  { %6953 = vpow2.f32 %v5306_v62 }
 0x55f   :  { %6955 = vpow2.f32 %v5307_v4 }
 0x560   :  { %6957 = vpow2.f32 %v5308_v52 }
 0x561   :  { %6959 = vtanh.f32 %v6766_v61 }
 0x568   :  { %v6954_v46 = vpop.eup %6953 }
 0x569   :  { %v6956_v21 = vpop.eup %6955  ;;  %v1611_v19 = vadd.f32 1.0, %v6954_v46 }
 0x56a   :  { %v1617_v26 = vadd.f32 1.0, %v6956_v21  ;;  %v6958_v43 = vpop.eup %6957 }
 0x56b   :  { %6961 = vrcp.f32 %v1611_v19  ;;  %v6960_v24 = vpop.eup %6959  ;;  %v1624_v1 = vadd.f32 1.0, %v6958_v43 }
 0x56c   :  { %6963 = vrcp.f32 %v1617_v26 }
 0x56d   :  { %6965 = vrcp.f32 %v1624_v1  ;;  %v2152_v1 = vld [vmem:[#allocation6 + $0xc8] sm:$0xff] }
 0x575   :  { %v6962_v49 = vpop.eup %6961 }
 0x576   :  { %v6964_v32 = vpop.eup %6963  ;;  %v1628_v9 = vmul.f32 %v6962_v49, %v6960_v24  ;;  %v2143_v49 = vld [vmem:[#allocation6 + $0x80] sm:$0xff] }
 0x577   :  { %v1627_v30 = vmul.f32 %v6964_v32, %v7711_v34  ;;  %v6966_v45 = vpop.eup %6965  ;;  %v2147_v32 = vld [vmem:[#allocation6 + $0xa0] sm:$0xff] }
 0x579   :  { %v7757_v8 = vadd.f32 %v1628_v9, %v1627_v30  ;;  %v7837_v9 = vpack.c.bf16 %v2147_v32, %v2143_v49  ;;  %v2156_v30 = vld [vmem:[#allocation6 + $0xe8] sm:$0xff] }
 0x57b   :  { %6967 = vtanh.f32 %v7757_v8 }
 0x585   :  { %v6968_v62 = vpop.eup %6967 }
 0x586   :  { %v7760_v4 = vmul.f32 %v6968_v62, %v6966_v45  ;;  %v2151_v45 = vld [vmem:[#allocation6 + $0xc0] sm:$0xff] }
 0x587   :  { %v2155_v62 = vld [vmem:[#allocation6 + $0xe0] sm:$0xff] }
 0x588   :  { %1770 = vmatmul.mubr.f32.vlgmr.msra.gmra.mrb[10].mxu0 %v7760_v4  ;;  %1841 = vmatmul.mubr.f32.vlgmr.msra.gmra.mrb[10].mxu1 %v7760_v4 }
 0x589   :  { %5885 = vmatpush1.bf16.msra.mxu0 %v7580_v53  ;;  %5917 = vmatpush1.bf16.msra.mxu1 %v7659_v23 }
 0x58a   :  { %5887 = vmatprep.subr.bf16.mxu0 %v7584_v5  ;;  %5919 = vmatprep.subr.bf16.mxu1 %v7663_v58 }
 0x58b   :  { %2012 = vmatprep.mubr.f32.mxu0 %v7229_v0  ;;  %2083 = vmatprep.mubr.f32.mxu1 %v7229_v0 }
 0x58d   :  { %5889 = vmatpush1.bf16.msra.mxu0 %v7586_v13  ;;  %5921 = vmatpush1.bf16.msra.mxu1 %v7665_v11 }
 0x58e   :  { %5891 = vmatprep.subr.bf16.mxu0 %v7590_v27  ;;  %5923 = vmatprep.subr.bf16.mxu1 %v7669_v39 }
 0x591   :  { %5893 = vmatpush1.bf16.msra.mxu0 %v7592_v25  ;;  %5925 = vmatpush1.bf16.msra.mxu1 %v7671_v60 }
 0x592   :  { %5895 = vmatprep.subr.bf16.mxu0 %v7596_v33  ;;  %5927 = vmatprep.subr.bf16.mxu1 %v7675_v12 }
 0x595   :  { %5897 = vmatpush1.bf16.msra.mxu0 %v7598_v48  ;;  %5929 = vmatpush1.bf16.msra.mxu1 %v7677_v18 }
 0x596   :  { %5899 = vmatprep.subr.bf16.mxu0 %v7602_v50  ;;  %5931 = vmatprep.subr.bf16.mxu1 %v7681_v28 }
 0x599   :  { %5901 = vmatpush1.bf16.msra.mxu0 %v7604_v44  ;;  %5933 = vmatpush1.bf16.msra.mxu1 %v7683_v37 }
 0x59a   :  { %5903 = vmatprep.subr.bf16.mxu0 %v7608_v63  ;;  %5935 = vmatprep.subr.bf16.mxu1 %v7687_v55 }
 0x59d   :  { %5905 = vmatpush1.bf16.msra.mxu0 %v7610_v14  ;;  %5937 = vmatpush1.bf16.msra.mxu1 %v7689_v22 }
 0x59e   :  { %5907 = vmatprep.subr.bf16.mxu0 %v7612_v15  ;;  %5939 = vmatprep.subr.bf16.mxu1 %v7691_v29 }
 0x5a1   :  { %5909 = vmatpush1.bf16.msra.mxu0 %v7616_v54  ;;  %5941 = vmatpush1.bf16.msra.mxu1 %v7695_v38 }
 0x5a2   :  { %5911 = vmatprep.subr.bf16.mxu0 %v7619_v57  ;;  %5943 = vmatprep.subr.bf16.mxu1 %v7698_v47 }
 0x5a5   :  { %5913 = vmatpush1.bf16.msra.mxu0 %v7622_v3  ;;  %5945 = vmatpush1.bf16.msra.mxu1 %v7701_v20 }
 0x5a6   :  { %5979 = vmatprep.subr.bf16.mxu1 %v7657_v7 }
 0x65b   :  { %v1771_v53 = vpop.f32.mrb[10].mxu0  ;;  %v1842_v5 = vpop.f32.mrb[10].mxu1 }
 0x65c   :  { %v6750_v13 = vadd.f32 %v1771_v53, %v7489_v41  ;;  %v1773_v27 = vpop.f32.mrb[11].mxu0  ;;  %v1844_v25 = vpop.f32.mrb[11].mxu1  ;;  %v6768_v14 = vadd.f32 %v1842_v5, %v7501_v6  ;;  %v7843_v53 = vpack.c.bf16 %v2155_v62, %v2151_v45  ;;  %v2160_v5 = vld [vmem:[#allocation6 + $0x108] sm:$0xff] }
 0x65d   :  { %v6751_v33 = vadd.f32 %v1773_v27, %v7493_v42  ;;  %v6769_v44 = vadd.f32 %v1844_v25, %v7505_v10  ;;  %v2159_v25 = vld [vmem:[#allocation6 + $0x100] sm:$0xff] }
 0x65e   :  { %v5309_v48 = vmul.f32 -1.442695, %v6750_v13  ;;  %v2164_v13 = vld [vmem:[#allocation6 + $0x128] sm:$0xff] }
 0x65f   :  { %v5310_v50 = vmul.f32 -1.442695, %v6751_v33  ;;  %v5311_v63 = vmul.f32 -1.442695, %v6769_v44  ;;  %v7847_v27 = vpack.c.bf16 %v2164_v13, %v2160_v5  ;;  %v2163_v33 = vld [vmem:[#allocation6 + $0x120] sm:$0xff]  ;;  %v2172_v44 = vld [vmem:[#allocation6 + $0x168] sm:$0xff] }
 0x660   :  { %6969 = vpow2.f32 %v5309_v48  ;;  %v7849_v48 = vpack.c.bf16 %v2163_v33, %v2159_v25 }
 0x661   :  { %6971 = vpow2.f32 %v5310_v50  ;;  %v2168_v50 = vld [vmem:[#allocation6 + $0x148] sm:$0xff] }
 0x662   :  { %6973 = vpow2.f32 %v5311_v63  ;;  %v2167_v63 = vld [vmem:[#allocation6 + $0x140] sm:$0xff] }
 0x663   :  { %6975 = vtanh.f32 %v6768_v14  ;;  %v7853_v14 = vpack.c.bf16 %v2172_v44, %v2168_v50 }
 0x66a   :  { %v6970_v15 = vpop.eup %6969 }
 0x66b   :  { %v6972_v54 = vpop.eup %6971  ;;  %v1854_v57 = vadd.f32 1.0, %v6970_v15  ;;  %v2171_v15 = vld [vmem:[#allocation6 + $0x160] sm:$0xff] }
 0x66c   :  { %v1860_v3 = vadd.f32 1.0, %v6972_v54  ;;  %v6974_v7 = vpop.eup %6973  ;;  %v2176_v54 = vld [vmem:[#allocation6 + $0x188] sm:$0xff] }
 0x66d   :  { %6977 = vrcp.f32 %v1854_v57  ;;  %v6976_v34 = vpop.eup %6975  ;;  %v1867_v46 = vadd.f32 1.0, %v6974_v7  ;;  %v2180_v57 = vld [vmem:[#allocation6 + $0x1a8] sm:$0xff] }
 0x66e   :  { %6979 = vrcp.f32 %v1860_v3  ;;  %v7855_v3 = vpack.c.bf16 %v2171_v15, %v2167_v63  ;;  %v7857_v7 = vpack.c.bf16 %v2180_v57, %v2176_v54 }
 0x66f   :  { %6981 = vrcp.f32 %v1867_v46 }
 0x677   :  { %v6978_v16 = vpop.eup %6977 }
 0x678   :  { %v6980_v52 = vpop.eup %6979  ;;  %v1871_v61 = vmul.f32 %v6978_v16, %v6976_v34  ;;  %v2175_v34 = vld [vmem:[#allocation6 + $0x180] sm:$0xff] }
 0x679   :  { %v1870_v21 = vmul.f32 %v6980_v52, %v7757_v8  ;;  %v6982_v26 = vpop.eup %6981  ;;  %v7841_v8 = vpack.c.bf16 %v2156_v30, %v2152_v1  ;;  %v2179_v16 = vld [vmem:[#allocation6 + $0x1a0] sm:$0xff]  ;;  %v2184_v52 = vld [vmem:[#allocation6 + $0x1c8] sm:$0xff] }
 0x67a   :  { %v5972_v46 = vpack.c.bf16 %v2179_v16, %v2175_v34 }
 0x67b   :  { %v7802_v19 = vadd.f32 %v1871_v61, %v1870_v21  ;;  %v2188_v61 = vld [vmem:[#allocation6 + $0x1e8] sm:$0xff] }
 0x67c   :  { %v5974_v21 = vpack.c.bf16 %v2188_v61, %v2184_v52  ;;  %v2388_v52 = vld [vmem:[#allocation6 + $0x90] sm:$0xff] }
 0x67d   :  { %6983 = vtanh.f32 %v7802_v19  ;;  %v2392_v61 = vld [vmem:[#allocation6 + $0xb0] sm:$0xff] }
 0x687   :  { %v6984_v43 = vpop.eup %6983 }
 0x688   :  { %v7805_v24 = vmul.f32 %v6984_v43, %v6982_v26  ;;  %v2183_v26 = vld [vmem:[#allocation6 + $0x1c0] sm:$0xff] }
 0x689   :  { %v2187_v43 = vld [vmem:[#allocation6 + $0x1e0] sm:$0xff] }
 0x68a   :  { %2013 = vmatmul.mubr.f32.vlgmr.msra.gmra.mrb[12].mxu0 %v7805_v24  ;;  %2084 = vmatmul.mubr.f32.vlgmr.msra.gmra.mrb[12].mxu1 %v7805_v24 }
 0x68b   :  { %5981 = vmatpush1.bf16.msra.mxu1 %v7659_v23  ;;  %2255 = vmatprep.mubr.f32.mxu0 %v7229_v0  ;;  %v2128_v23 = vld [vmem:[#allocation6 + $0x8] sm:$0xff] }
 0x68c   :  { %5983 = vmatprep.subr.bf16.mxu1 %v7663_v58  ;;  %2326 = vmatprep.mubr.f32.mxu1 %v7229_v0  ;;  %v2132_v58 = vld [vmem:[#allocation6 + $0x28] sm:$0xff] }
 0x68f   :  { %5985 = vmatpush1.bf16.msra.mxu1 %v7665_v11  ;;  %v5946_v11 = vpack.c.bf16 %v2132_v58, %v2128_v23  ;;  %v5976_v23 = vpack.c.bf16 %v2187_v43, %v2183_v26  ;;  %v2401_v26 = vld [vmem:[#allocation6 + $0xf8] sm:$0xff] }
 0x690   :  { %5987 = vmatprep.subr.bf16.mxu1 %v7669_v39  ;;  %v2127_v39 = vld [vmem:[#allocation6] sm:$0xff] }
 0x691   :  { %5947 = vmatprep.subr.bf16.mxu0 %v5946_v11 }
 0x693   :  { %5989 = vmatpush1.bf16.msra.mxu1 %v7671_v60  ;;  %v2131_v60 = vld [vmem:[#allocation6 + $0x20] sm:$0xff] }
 0x694   :  { %5991 = vmatprep.subr.bf16.mxu1 %v7675_v12  ;;  %v7826_v12 = vpack.c.bf16 %v2131_v60, %v2127_v39 }
 0x696   :  { %5949 = vmatpush1.bf16.msra.mxu0 %v7826_v12 }
 0x697   :  { %5993 = vmatpush1.bf16.msra.mxu1 %v7677_v18  ;;  %v2136_v18 = vld [vmem:[#allocation6 + $0x48] sm:$0xff] }
 0x698   :  { %5995 = vmatprep.subr.bf16.mxu1 %v7681_v28  ;;  %v2140_v28 = vld [vmem:[#allocation6 + $0x68] sm:$0xff] }
 0x69b   :  { %5997 = vmatpush1.bf16.msra.mxu1 %v7683_v37  ;;  %v7829_v37 = vpack.c.bf16 %v2140_v28, %v2136_v18 }
 0x69c   :  { %5999 = vmatprep.subr.bf16.mxu1 %v7687_v55  ;;  %v2135_v55 = vld [vmem:[#allocation6 + $0x40] sm:$0xff] }
 0x69d   :  { %5951 = vmatprep.subr.bf16.mxu0 %v7829_v37 }
 0x69f   :  { %6001 = vmatpush1.bf16.msra.mxu1 %v7689_v22  ;;  %v2139_v22 = vld [vmem:[#allocation6 + $0x60] sm:$0xff] }
 0x6a0   :  { %6003 = vmatprep.subr.bf16.mxu1 %v7691_v29  ;;  %v7831_v29 = vpack.c.bf16 %v2139_v22, %v2135_v55 }
 0x6a2   :  { %5953 = vmatpush1.bf16.msra.mxu0 %v7831_v29 }
 0x6a3   :  { %6005 = vmatpush1.bf16.msra.mxu1 %v7695_v38  ;;  %v2144_v38 = vld [vmem:[#allocation6 + $0x88] sm:$0xff] }
 0x6a4   :  { %6007 = vmatprep.subr.bf16.mxu1 %v7698_v47  ;;  %v2148_v47 = vld [vmem:[#allocation6 + $0xa8] sm:$0xff] }
 0x6a7   :  { %6009 = vmatpush1.bf16.msra.mxu1 %v7701_v20  ;;  %v7835_v20 = vpack.c.bf16 %v2148_v47, %v2144_v38 }
 0x6a9   :  { %5955 = vmatprep.subr.bf16.mxu0 %v7835_v20 }
 0x6aa   :  { %5957 = vmatpush1.bf16.msra.mxu0 %v7837_v9 }
 0x6ab   :  { %5959 = vmatprep.subr.bf16.mxu0 %v7841_v8 }
 0x6ae   :  { %5961 = vmatpush1.bf16.msra.mxu0 %v7843_v53 }
 0x6af   :  { %5963 = vmatprep.subr.bf16.mxu0 %v7847_v27 }
 0x6b2   :  { %5965 = vmatpush1.bf16.msra.mxu0 %v7849_v48 }
 0x6b3   :  { %5967 = vmatprep.subr.bf16.mxu0 %v7853_v14 }
 0x6b6   :  { %5969 = vmatpush1.bf16.msra.mxu0 %v7855_v3 }
 0x6b7   :  { %5971 = vmatprep.subr.bf16.mxu0 %v7857_v7 }
 0x6ba   :  { %5973 = vmatpush1.bf16.msra.mxu0 %v5972_v46 }
 0x6bb   :  { %5975 = vmatprep.subr.bf16.mxu0 %v5974_v21 }
 0x6be   :  { %5977 = vmatpush1.bf16.msra.mxu0 %v5976_v23 }
 0x6bf   :  { %6011 = vmatprep.subr.bf16.mxu0 %v5946_v11 }
 0x75d   :  { %v2014_v58 = vpop.f32.mrb[12].mxu0  ;;  %v2085_v39 = vpop.f32.mrb[12].mxu1 }
 0x75e   :  { %v6752_v60 = vadd.f32 %v2014_v58, %v7489_v41  ;;  %v2016_v18 = vpop.f32.mrb[13].mxu0  ;;  %v2087_v28 = vpop.f32.mrb[13].mxu1  ;;  %v6770_v32 = vadd.f32 %v2085_v39, %v7501_v6  ;;  %v2400_v58 = vld [vmem:[#allocation6 + $0xf0] sm:$0xff] }
 0x75f   :  { %v6753_v55 = vadd.f32 %v2016_v18, %v7493_v42  ;;  %v6771_v47 = vadd.f32 %v2087_v28, %v7505_v10  ;;  %v2409_v18 = vld [vmem:[#allocation6 + $0x138] sm:$0xff] }
 0x760   :  { %v5312_v22 = vmul.f32 -1.442695, %v6752_v60  ;;  %v2405_v60 = vld [vmem:[#allocation6 + $0x118] sm:$0xff] }
 0x761   :  { %v5313_v38 = vmul.f32 -1.442695, %v6753_v55  ;;  %v5314_v49 = vmul.f32 -1.442695, %v6771_v47  ;;  %v6058_v28 = vpack.c.bf16 %v2409_v18, %v2405_v60  ;;  %v2404_v55 = vld [vmem:[#allocation6 + $0x110] sm:$0xff]  ;;  %v2413_v47 = vld [vmem:[#allocation6 + $0x158] sm:$0xff] }
 0x762   :  { %6985 = vpow2.f32 %v5312_v22  ;;  %v2408_v22 = vld [vmem:[#allocation6 + $0x130] sm:$0xff] }
 0x763   :  { %6987 = vpow2.f32 %v5313_v38  ;;  %v6060_v38 = vpack.c.bf16 %v2408_v22, %v2404_v55 }
 0x764   :  { %6989 = vpow2.f32 %v5314_v49  ;;  %v2417_v49 = vld [vmem:[#allocation6 + $0x178] sm:$0xff] }
 0x765   :  { %6991 = vtanh.f32 %v6770_v32  ;;  %v2412_v32 = vld [vmem:[#allocation6 + $0x150] sm:$0xff] }
 0x76c   :  { %v6986_v1 = vpop.eup %6985 }
 0x76d   :  { %v6988_v30 = vpop.eup %6987  ;;  %v2097_v11 = vadd.f32 1.0, %v6986_v1  ;;  %v6062_v1 = vpack.c.bf16 %v2417_v49, %v2413_v47  ;;  %v2616_v49 = vld [vmem:[#allocation4 + $0x200] sm:$0xff] }
 0x76e   :  { %v2103_v45 = vadd.f32 1.0, %v6988_v30  ;;  %v6990_v62 = vpop.eup %6989  ;;  %v2416_v30 = vld [vmem:[#allocation6 + $0x170] sm:$0xff] }
 0x76f   :  { %6993 = vrcp.f32 %v2097_v11  ;;  %v6992_v5 = vpop.eup %6991  ;;  %v2110_v50 = vadd.f32 1.0, %v6990_v62  ;;  %v2421_v11 = vld [vmem:[#allocation6 + $0x198] sm:$0xff]  ;;  %v6064_v62 = vpack.c.bf16 %v2416_v30, %v2412_v32  ;;  %v2620_v32 = vld [vmem:[#allocation4 + $0x220] sm:$0xff]  ;;  %v2622_v30 = vld [vmem:[#allocation4 + $0x230] sm:$0xff] }
 0x770   :  { %6995 = vrcp.f32 %v2103_v45  ;;  %v2425_v45 = vld [vmem:[#allocation6 + $0x1b8] sm:$0xff] }
 0x771   :  { %6997 = vrcp.f32 %v2110_v50  ;;  %v2433_v50 = vld [vmem:[#allocation6 + $0x1f8] sm:$0xff] }
 0x779   :  { %v6994_v13 = vpop.eup %6993 }
 0x77a   :  { %v6996_v25 = vpop.eup %6995  ;;  %v2114_v33 = vmul.f32 %v6994_v13, %v6992_v5  ;;  %v6066_v5 = vpack.c.bf16 %v2425_v45, %v2421_v11  ;;  %v2420_v13 = vld [vmem:[#allocation6 + $0x190] sm:$0xff]  ;;  %v2625_v11 = vld [vmem:[#allocation4 + $0x248] sm:$0xff] }
 0x77b   :  { %v2113_v44 = vmul.f32 %v6996_v25, %v7802_v19  ;;  %v6998_v15 = vpop.eup %6997  ;;  %v2373_v19 = vld [vmem:[#allocation6 + $0x18] sm:$0xff]  ;;  %v2424_v25 = vld [vmem:[#allocation6 + $0x1b0] sm:$0xff]  ;;  %v2629_v45 = vld [vmem:[#allocation4 + $0x268] sm:$0xff] }
 0x77d   :  { %v7867_v63 = vadd.f32 %v2114_v33, %v2113_v44  ;;  %v2429_v33 = vld [vmem:[#allocation6 + $0x1d8] sm:$0xff]  ;;  %v6068_v44 = vpack.c.bf16 %v2424_v25, %v2420_v13 }
 0x77f   :  { %6999 = vtanh.f32 %v7867_v63 }
 0x789   :  { %v7000_v54 = vpop.eup %6999 }
 0x78a   :  { %v7870_v57 = vmul.f32 %v7000_v54, %v6998_v15  ;;  %v2617_v15 = vld [vmem:[#allocation4 + $0x208] sm:$0xff] }
 0x78b   :  { %v2621_v54 = vld [vmem:[#allocation4 + $0x228] sm:$0xff] }
 0x78c   :  { %2256 = vmatmul.mubr.f32.vlgmr.msra.gmra.mrb[14].mxu0 %v7870_v57  ;;  %2327 = vmatmul.mubr.f32.vlgmr.msra.gmra.mrb[14].mxu1 %v7870_v57 }
 0x78d   :  { %6013 = vmatpush1.bf16.msra.mxu0 %v7826_v12  ;;  %2498 = vmatprep.mubr.f32.mxu0 %v7229_v0  ;;  %v2377_v12 = vld [vmem:[#allocation6 + $0x38] sm:$0xff] }
 0x78e   :  { %6015 = vmatprep.subr.bf16.mxu0 %v7829_v37  ;;  %2569 = vmatprep.mubr.f32.mxu1 %v7229_v0  ;;  %v6042_v37 = vpack.c.bf16 %v2377_v12, %v2373_v19  ;;  %v6070_v19 = vpack.c.bf16 %v2433_v50, %v2429_v33  ;;  %v2428_v12 = vld [vmem:[#allocation6 + $0x1d0] sm:$0xff]  ;;  %v6076_v33 = vpack.c.bf16 %v2620_v32, %v2616_v49  ;;  %v2655_v49 = vld [vmem:[#allocation4 + $0x338] sm:$0xff] }
 0x790   :  { %6043 = vmatprep.subr.bf16.mxu1 %v6042_v37  ;;  %v2432_v37 = vld [vmem:[#allocation6 + $0x1f0] sm:$0xff] }
 0x791   :  { %6017 = vmatpush1.bf16.msra.mxu0 %v7831_v29  ;;  %v2372_v29 = vld [vmem:[#allocation6 + $0x10] sm:$0xff] }
 0x792   :  { %6019 = vmatprep.subr.bf16.mxu0 %v7835_v20  ;;  %v2376_v20 = vld [vmem:[#allocation6 + $0x30] sm:$0xff] }
 0x795   :  { %6021 = vmatpush1.bf16.msra.mxu0 %v7837_v9  ;;  %v6044_v9 = vpack.c.bf16 %v2376_v20, %v2372_v29  ;;  %v6074_v29 = vpack.c.bf16 %v2621_v54, %v2617_v15  ;;  %v2619_v20 = vld [vmem:[#allocation4 + $0x218] sm:$0xff]  ;;  %v2628_v15 = vld [vmem:[#allocation4 + $0x260] sm:$0xff]  ;;  %v6078_v54 = vpack.c.bf16 %v2629_v45, %v2625_v11 }
 0x796   :  { %6023 = vmatprep.subr.bf16.mxu0 %v7841_v8  ;;  %v2381_v8 = vld [vmem:[#allocation6 + $0x58] sm:$0xff]  ;;  %v2652_v11 = vld [vmem:[#allocation4 + $0x320] sm:$0xff] }
 0x797   :  { %6045 = vmatpush1.bf16.msra.mxu1 %v6044_v9  ;;  %v2623_v9 = vld [vmem:[#allocation4 + $0x238] sm:$0xff] }
 0x799   :  { %6025 = vmatpush1.bf16.msra.mxu0 %v7843_v53  ;;  %v2385_v53 = vld [vmem:[#allocation6 + $0x78] sm:$0xff] }
 0x79a   :  { %6027 = vmatprep.subr.bf16.mxu0 %v7847_v27  ;;  %v6046_v27 = vpack.c.bf16 %v2385_v53, %v2381_v8  ;;  %v6072_v8 = vpack.c.bf16 %v2432_v37, %v2428_v12  ;;  %v6106_v53 = vpack.c.bf16 %v2623_v9, %v2619_v20  ;;  %v2626_v12 = vld [vmem:[#allocation4 + $0x250] sm:$0xff]  ;;  %v2637_v20 = vld [vmem:[#allocation4 + $0x2a8] sm:$0xff]  ;;  %v2635_v9 = vld [vmem:[#allocation4 + $0x298] sm:$0xff] }
 0x79b   :  { %v2630_v37 = vld [vmem:[#allocation4 + $0x270] sm:$0xff] }
 0x79c   :  { %6047 = vmatprep.subr.bf16.mxu1 %v6046_v27 }
 0x79d   :  { %6029 = vmatpush1.bf16.msra.mxu0 %v7849_v48  ;;  %v2380_v48 = vld [vmem:[#allocation6 + $0x50] sm:$0xff] }
 0x79e   :  { %6031 = vmatprep.subr.bf16.mxu0 %v7853_v14  ;;  %v2384_v14 = vld [vmem:[#allocation6 + $0x70] sm:$0xff] }
 0x79f   :  { %v6048_v34 = vpack.c.bf16 %v2384_v14, %v2380_v48 }
 0x7a1   :  { %6033 = vmatpush1.bf16.msra.mxu0 %v7855_v3  ;;  %6049 = vmatpush1.bf16.msra.mxu1 %v6048_v34  ;;  %v2389_v3 = vld [vmem:[#allocation6 + $0x98] sm:$0xff] }
 0x7a2   :  { %6035 = vmatprep.subr.bf16.mxu0 %v7857_v7  ;;  %v2393_v7 = vld [vmem:[#allocation6 + $0xb8] sm:$0xff] }
 0x7a3   :  { %v6050_v16 = vpack.c.bf16 %v2393_v7, %v2389_v3 }
 0x7a5   :  { %6037 = vmatpush1.bf16.msra.mxu0 %v5972_v46  ;;  %v6052_v46 = vpack.c.bf16 %v2392_v61, %v2388_v52  ;;  %6051 = vmatprep.subr.bf16.mxu1 %v6050_v16 }
 0x7a6   :  { %6039 = vmatprep.subr.bf16.mxu0 %v5974_v21  ;;  %v2397_v21 = vld [vmem:[#allocation6 + $0xd8] sm:$0xff] }
 0x7a7   :  { %6053 = vmatpush1.bf16.msra.mxu1 %v6052_v46  ;;  %v6054_v43 = vpack.c.bf16 %v2401_v26, %v2397_v21 }
 0x7a9   :  { %6041 = vmatpush1.bf16.msra.mxu0 %v5976_v23  ;;  %v2396_v23 = vld [vmem:[#allocation6 + $0xd0] sm:$0xff]  ;;  %6055 = vmatprep.subr.bf16.mxu1 %v6054_v43 }
 0x7aa   :  { %v6056_v39 = vpack.c.bf16 %v2400_v58, %v2396_v23  ;;  %6075 = vmatprep.subr.bf16.mxu0 %v6074_v29  ;;  %v2633_v29 = vld [vmem:[#allocation4 + $0x288] sm:$0xff] }
 0x7ac   :  { %6057 = vmatpush1.bf16.msra.mxu1 %v6056_v39 }
 0x7ad   :  { %6059 = vmatprep.subr.bf16.mxu1 %v6058_v28 }
 0x7b0   :  { %6061 = vmatpush1.bf16.msra.mxu1 %v6060_v38 }
 0x7b1   :  { %6063 = vmatprep.subr.bf16.mxu1 %v6062_v1  ;;  %v2618_v1 = vld [vmem:[#allocation4 + $0x210] sm:$0xff] }
 0x7b2   :  { %v6108_v50 = vpack.c.bf16 %v2622_v30, %v2618_v1  ;;  %v2648_v30 = vld [vmem:[#allocation4 + $0x300] sm:$0xff] }
 0x7b4   :  { %6065 = vmatpush1.bf16.msra.mxu1 %v6064_v62  ;;  %v2627_v62 = vld [vmem:[#allocation4 + $0x258] sm:$0xff] }
 0x7b5   :  { %6067 = vmatprep.subr.bf16.mxu1 %v6066_v5  ;;  %v2631_v5 = vld [vmem:[#allocation4 + $0x278] sm:$0xff] }
 0x7b8   :  { %6069 = vmatpush1.bf16.msra.mxu1 %v6068_v44  ;;  %v2624_v44 = vld [vmem:[#allocation4 + $0x240] sm:$0xff] }
 0x7b9   :  { %6071 = vmatprep.subr.bf16.mxu1 %v6070_v19  ;;  %v6110_v19 = vpack.c.bf16 %v2631_v5, %v2627_v62  ;;  %v2650_v5 = vld [vmem:[#allocation4 + $0x310] sm:$0xff] }
 0x7bc   :  { %6073 = vmatpush1.bf16.msra.mxu1 %v6072_v8  ;;  %v2639_v8 = vld [vmem:[#allocation4 + $0x2b8] sm:$0xff] }
 0x7bd   :  { %6107 = vmatprep.subr.bf16.mxu1 %v6106_v53  ;;  %v6080_v53 = vpack.c.bf16 %v2628_v15, %v2624_v44  ;;  %v2663_v44 = vld [vmem:[#allocation4 + $0x378] sm:$0xff]  ;;  %v6092_v15 = vpack.c.bf16 %v2652_v11, %v2648_v30  ;;  %v2984_v11 = vld [vmem:[#allocation6 + $0x210] sm:$0xff] }
 0x85f   :  { %v2257_v27 = vpop.f32.mrb[14].mxu0  ;;  %v2328_v48 = vpop.f32.mrb[14].mxu1 }
 0x860   :  { %v6754_v14 = vadd.f32 %v2257_v27, %v7489_v41  ;;  %v2259_v34 = vpop.f32.mrb[15].mxu0  ;;  %v2330_v3 = vpop.f32.mrb[15].mxu1  ;;  %v6772_v21 = vadd.f32 %v2328_v48, %v7501_v6  ;;  %v6112_v27 = vpack.c.bf16 %v2630_v37, %v2626_v12  ;;  %v2632_v48 = vld [vmem:[#allocation4 + $0x280] sm:$0xff] }
 0x861   :  { %v6755_v7 = vadd.f32 %v2259_v34, %v7493_v42  ;;  %v6773_v61 = vadd.f32 %v2330_v3, %v7505_v10  ;;  %v6082_v34 = vpack.c.bf16 %v2637_v20, %v2633_v29  ;;  %v6114_v3 = vpack.c.bf16 %v2639_v8, %v2635_v9  ;;  %v2660_v12 = vld [vmem:[#allocation4 + $0x360] sm:$0xff]  ;;  %v2658_v20 = vld [vmem:[#allocation4 + $0x350] sm:$0xff]  ;;  %v2665_v8 = vld [vmem:[#allocation4 + $0x388] sm:$0xff] }
 0x862   :  { %v5315_v16 = vmul.f32 -1.442695, %v6754_v14  ;;  %v2636_v14 = vld [vmem:[#allocation4 + $0x2a0] sm:$0xff]  ;;  %v2662_v9 = vld [vmem:[#allocation4 + $0x370] sm:$0xff] }
 0x863   :  { %v5316_v52 = vmul.f32 -1.442695, %v6755_v7  ;;  %v5317_v46 = vmul.f32 -1.442695, %v6773_v61  ;;  %v2634_v7 = vld [vmem:[#allocation4 + $0x290] sm:$0xff]  ;;  %v2645_v61 = vld [vmem:[#allocation4 + $0x2e8] sm:$0xff] }
 0x864   :  { %7001 = vpow2.f32 %v5315_v16  ;;  %v2638_v16 = vld [vmem:[#allocation4 + $0x2b0] sm:$0xff] }
 0x865   :  { %7003 = vpow2.f32 %v5316_v52  ;;  %v2641_v52 = vld [vmem:[#allocation4 + $0x2c8] sm:$0xff] }
 0x866   :  { %7005 = vpow2.f32 %v5317_v46  ;;  %v2643_v46 = vld [vmem:[#allocation4 + $0x2d8] sm:$0xff] }
 0x867   :  { %7007 = vtanh.f32 %v6772_v21  ;;  %v2647_v21 = vld [vmem:[#allocation4 + $0x2f8] sm:$0xff] }
 0x86e   :  { %v7002_v26 = vpop.eup %7001 }
 0x86f   :  { %v7004_v43 = vpop.eup %7003  ;;  %v2340_v23 = vadd.f32 1.0, %v7002_v26  ;;  %v6084_v26 = vpack.c.bf16 %v2636_v14, %v2632_v48  ;;  %v2671_v48 = vld [vmem:[#allocation4 + $0x3b8] sm:$0xff] }
 0x870   :  { %v2346_v58 = vadd.f32 1.0, %v7004_v43  ;;  %v7006_v39 = vpop.eup %7005  ;;  %v6116_v43 = vpack.c.bf16 %v2638_v16, %v2634_v7  ;;  %v2668_v7 = vld [vmem:[#allocation4 + $0x3a0] sm:$0xff] }
 0x871   :  { %7009 = vrcp.f32 %v2340_v23  ;;  %v7008_v60 = vpop.eup %7007  ;;  %v2353_v22 = vadd.f32 1.0, %v7006_v39  ;;  %v2640_v23 = vld [vmem:[#allocation4 + $0x2c0] sm:$0xff]  ;;  %v6086_v39 = vpack.c.bf16 %v2645_v61, %v2641_v52  ;;  %v2666_v61 = vld [vmem:[#allocation4 + $0x390] sm:$0xff] }
 0x872   :  { %7011 = vrcp.f32 %v2346_v58  ;;  %v2644_v58 = vld [vmem:[#allocation4 + $0x2e0] sm:$0xff] }
 0x873   :  { %7013 = vrcp.f32 %v2353_v22  ;;  %v2653_v22 = vld [vmem:[#allocation4 + $0x328] sm:$0xff]  ;;  %v6088_v32 = vpack.c.bf16 %v2644_v58, %v2640_v23  ;;  %v2679_v23 = vld [vmem:[#allocation4 + $0x3f8] sm:$0xff] }
 0x87b   :  { %v7010_v18 = vpop.eup %7009 }
 0x87c   :  { %v7012_v28 = vpop.eup %7011  ;;  %v2357_v55 = vmul.f32 %v7010_v18, %v7008_v60  ;;  %v6118_v60 = vpack.c.bf16 %v2647_v21, %v2643_v46  ;;  %v2642_v18 = vld [vmem:[#allocation4 + $0x2d0] sm:$0xff]  ;;  %v2673_v21 = vld [vmem:[#allocation4 + $0x3c8] sm:$0xff] }
 0x87d   :  { %v2356_v38 = vmul.f32 %v7012_v28, %v7867_v63  ;;  %v7014_v13 = vpop.eup %7013  ;;  %v2646_v28 = vld [vmem:[#allocation4 + $0x2f0] sm:$0xff] }
 0x87e   :  { %v6120_v1 = vpack.c.bf16 %v2646_v28, %v2642_v18  ;;  %v2670_v46 = vld [vmem:[#allocation4 + $0x3b0] sm:$0xff] }
 0x87f   :  { %v7893_v47 = vadd.f32 %v2357_v55, %v2356_v38  ;;  %v2649_v55 = vld [vmem:[#allocation4 + $0x308] sm:$0xff]  ;;  %v2651_v38 = vld [vmem:[#allocation4 + $0x318] sm:$0xff] }
 0x880   :  { %v6090_v45 = vpack.c.bf16 %v2653_v22, %v2649_v55  ;;  %v6122_v62 = vpack.c.bf16 %v2655_v49, %v2651_v38  ;;  %v2676_v55 = vld [vmem:[#allocation4 + $0x3e0] sm:$0xff]  ;;  %v2674_v22 = vld [vmem:[#allocation4 + $0x3d0] sm:$0xff] }
 0x881   :  { %7015 = vtanh.f32 %v7893_v47  ;;  %v2678_v38 = vld [vmem:[#allocation4 + $0x3f0] sm:$0xff] }
 0x88b   :  { %v7016_v25 = vpop.eup %7015 }
 0x88c   :  { %v7896_v63 = vmul.f32 %v7016_v25, %v7014_v13  ;;  %v2654_v13 = vld [vmem:[#allocation4 + $0x330] sm:$0xff]  ;;  %v2657_v25 = vld [vmem:[#allocation4 + $0x348] sm:$0xff] }
 0x88e   :  { %2499 = vmatmul.mubr.f32.vlgmr.msra.gmra.mrb[16].mxu0 %v7896_v63  ;;  %2570 = vmatmul.mubr.f32.vlgmr.msra.gmra.mrb[16].mxu1 %v7896_v63 }
 0x88f   :  { %6077 = vmatpush1.bf16.msra.mxu0 %v6076_v33  ;;  %6109 = vmatpush1.bf16.msra.mxu1 %v6108_v50  ;;  %v2661_v33 = vld [vmem:[#allocation4 + $0x368] sm:$0xff]  ;;  %v2659_v50 = vld [vmem:[#allocation4 + $0x358] sm:$0xff] }
 0x890   :  { %6079 = vmatprep.subr.bf16.mxu0 %v6078_v54  ;;  %6111 = vmatprep.subr.bf16.mxu1 %v6110_v19  ;;  %v6124_v54 = vpack.c.bf16 %v2654_v13, %v2650_v5  ;;  %v2656_v19 = vld [vmem:[#allocation4 + $0x340] sm:$0xff]  ;;  %v6094_v37 = vpack.c.bf16 %v2661_v33, %v2657_v25  ;;  %v6126_v29 = vpack.c.bf16 %v2663_v44, %v2659_v50  ;;  %v2995_v5 = vld [vmem:[#allocation6 + $0x268] sm:$0xff]  ;;  %v2993_v13 = vld [vmem:[#allocation6 + $0x258] sm:$0xff] }
 0x891   :  { %2767 = vmatprep.mubr.f32.mxu0 %v7229_v0  ;;  %2886 = vmatprep.mubr.f32.mxu1 %v7229_v0  ;;  %v6096_v14 = vpack.c.bf16 %v2660_v12, %v2656_v19  ;;  %v2990_v33 = vld [vmem:[#allocation6 + $0x240] sm:$0xff]  ;;  %v2997_v44 = vld [vmem:[#allocation6 + $0x278] sm:$0xff]  ;;  %v2992_v19 = vld [vmem:[#allocation6 + $0x250] sm:$0xff] }
 0x892   :  { %v2994_v50 = vld [vmem:[#allocation6 + $0x260] sm:$0xff]  ;;  %v2996_v12 = vld [vmem:[#allocation6 + $0x270] sm:$0xff] }
 0x893   :  { %6081 = vmatpush1.bf16.msra.mxu0 %v6080_v53  ;;  %6113 = vmatpush1.bf16.msra.mxu1 %v6112_v27  ;;  %v2669_v53 = vld [vmem:[#allocation4 + $0x3a8] sm:$0xff]  ;;  %v2667_v27 = vld [vmem:[#allocation4 + $0x398] sm:$0xff] }
 0x894   :  { %6083 = vmatprep.subr.bf16.mxu0 %v6082_v34  ;;  %6115 = vmatprep.subr.bf16.mxu1 %v6114_v3  ;;  %v6128_v34 = vpack.c.bf16 %v2662_v9, %v2658_v20  ;;  %v2664_v3 = vld [vmem:[#allocation4 + $0x380] sm:$0xff]  ;;  %v6098_v16 = vpack.c.bf16 %v2669_v53, %v2665_v8  ;;  %v6130_v52 = vpack.c.bf16 %v2671_v48, %v2667_v27  ;;  %v3003_v20 = vld [vmem:[#allocation6 + $0x2a8] sm:$0xff]  ;;  %v3001_v9 = vld [vmem:[#allocation6 + $0x298] sm:$0xff] }
 0x895   :  { %v6100_v58 = vpack.c.bf16 %v2668_v7, %v2664_v3  ;;  %v2998_v53 = vld [vmem:[#allocation6 + $0x280] sm:$0xff]  ;;  %v3005_v48 = vld [vmem:[#allocation6 + $0x2b8] sm:$0xff]  ;;  %v3000_v3 = vld [vmem:[#allocation6 + $0x290] sm:$0xff] }
 0x896   :  { %v3002_v27 = vld [vmem:[#allocation6 + $0x2a0] sm:$0xff]  ;;  %v3004_v7 = vld [vmem:[#allocation6 + $0x2b0] sm:$0xff] }
 0x897   :  { %6085 = vmatpush1.bf16.msra.mxu0 %v6084_v26  ;;  %6117 = vmatpush1.bf16.msra.mxu1 %v6116_v43  ;;  %v2677_v26 = vld [vmem:[#allocation4 + $0x3e8] sm:$0xff]  ;;  %v2675_v43 = vld [vmem:[#allocation4 + $0x3d8] sm:$0xff] }
 0x898   :  { %6087 = vmatprep.subr.bf16.mxu0 %v6086_v39  ;;  %6119 = vmatprep.subr.bf16.mxu1 %v6118_v60  ;;  %v6132_v39 = vpack.c.bf16 %v2670_v46, %v2666_v61  ;;  %v2672_v60 = vld [vmem:[#allocation4 + $0x3c0] sm:$0xff]  ;;  %v6102_v18 = vpack.c.bf16 %v2677_v26, %v2673_v21  ;;  %v6134_v28 = vpack.c.bf16 %v2679_v23, %v2675_v43  ;;  %v3011_v61 = vld [vmem:[#allocation6 + $0x2e8] sm:$0xff]  ;;  %v3009_v46 = vld [vmem:[#allocation6 + $0x2d8] sm:$0xff] }
 0x899   :  { %v6104_v49 = vpack.c.bf16 %v2676_v55, %v2672_v60  ;;  %v3006_v26 = vld [vmem:[#allocation6 + $0x2c0] sm:$0xff]  ;;  %v3013_v23 = vld [vmem:[#allocation6 + $0x2f8] sm:$0xff]  ;;  %v3008_v60 = vld [vmem:[#allocation6 + $0x2d0] sm:$0xff] }
 0x89a   :  { %v3010_v43 = vld [vmem:[#allocation6 + $0x2e0] sm:$0xff] }
 0x89b   :  { %6089 = vmatpush1.bf16.msra.mxu0 %v6088_v32  ;;  %6121 = vmatpush1.bf16.msra.mxu1 %v6120_v1  ;;  %v6136_v32 = vpack.c.bf16 %v2678_v38, %v2674_v22  ;;  %v3019_v22 = vld [vmem:[#allocation6 + $0x328] sm:$0xff]  ;;  %v3014_v38 = vld [vmem:[#allocation6 + $0x300] sm:$0xff] }
 0x89c   :  { %6091 = vmatprep.subr.bf16.mxu0 %v6090_v45  ;;  %6123 = vmatprep.subr.bf16.mxu1 %v6122_v62  ;;  %v2988_v45 = vld [vmem:[#allocation6 + $0x230] sm:$0xff]  ;;  %v2991_v62 = vld [vmem:[#allocation6 + $0x248] sm:$0xff] }
 0x89d   :  { %v7945_v25 = vpack.c.bf16 %v2995_v5, %v2991_v62 }
 0x89f   :  { %6093 = vmatpush1.bf16.msra.mxu0 %v6092_v15  ;;  %6125 = vmatpush1.bf16.msra.mxu1 %v6124_v54  ;;  %v7948_v15 = vpack.c.bf16 %v2994_v50, %v2990_v33  ;;  %v7950_v54 = vpack.c.bf16 %v2997_v44, %v2993_v13  ;;  %v3022_v13 = vld [vmem:[#allocation6 + $0x340] sm:$0xff]  ;;  %v3025_v50 = vld [vmem:[#allocation6 + $0x358] sm:$0xff] }
 0x8a0   :  { %6095 = vmatprep.subr.bf16.mxu0 %v6094_v37  ;;  %6127 = vmatprep.subr.bf16.mxu1 %v6126_v29  ;;  %v7953_v37 = vpack.c.bf16 %v2996_v12, %v2992_v19  ;;  %v2999_v29 = vld [vmem:[#allocation6 + $0x288] sm:$0xff]  ;;  %v3026_v33 = vld [vmem:[#allocation6 + $0x360] sm:$0xff]  ;;  %v3029_v44 = vld [vmem:[#allocation6 + $0x378] sm:$0xff] }
 0x8a1   :  { %v7957_v8 = vpack.c.bf16 %v3003_v20, %v2999_v29  ;;  %v3024_v19 = vld [vmem:[#allocation6 + $0x350] sm:$0xff]  ;;  %v7995_v29 = vpack.c.bf16 %v3026_v33, %v3022_v13  ;;  %v7997_v20 = vpack.c.bf16 %v3029_v44, %v3025_v50 }
 0x8a2   :  { %v3028_v12 = vld [vmem:[#allocation6 + $0x370] sm:$0xff] }
 0x8a3   :  { %6097 = vmatpush1.bf16.msra.mxu0 %v6096_v14  ;;  %6129 = vmatpush1.bf16.msra.mxu1 %v6128_v34  ;;  %v7960_v14 = vpack.c.bf16 %v3002_v27, %v2998_v53  ;;  %v7962_v34 = vpack.c.bf16 %v3005_v48, %v3001_v9  ;;  %v3031_v9 = vld [vmem:[#allocation6 + $0x388] sm:$0xff]  ;;  %v3030_v27 = vld [vmem:[#allocation6 + $0x380] sm:$0xff]  ;;  %v8001_v48 = vpack.c.bf16 %v3028_v12, %v3024_v19 }
 0x8a4   :  { %6099 = vmatprep.subr.bf16.mxu0 %v6098_v16  ;;  %6131 = vmatprep.subr.bf16.mxu1 %v6130_v52  ;;  %v7965_v16 = vpack.c.bf16 %v3004_v7, %v3000_v3  ;;  %v3007_v52 = vld [vmem:[#allocation6 + $0x2c8] sm:$0xff]  ;;  %v3034_v7 = vld [vmem:[#allocation6 + $0x3a0] sm:$0xff] }
 0x8a5   :  { %v7970_v21 = vpack.c.bf16 %v3011_v61, %v3007_v52  ;;  %v3035_v53 = vld [vmem:[#allocation6 + $0x3a8] sm:$0xff]  ;;  %v3033_v52 = vld [vmem:[#allocation6 + $0x398] sm:$0xff] }
 0x8a6   :  { %v8003_v3 = vpack.c.bf16 %v3035_v53, %v3031_v9  ;;  %v3037_v61 = vld [vmem:[#allocation6 + $0x3b8] sm:$0xff] }
 0x8a7   :  { %6101 = vmatpush1.bf16.msra.mxu0 %v6100_v58  ;;  %6133 = vmatpush1.bf16.msra.mxu1 %v6132_v39  ;;  %v7972_v58 = vpack.c.bf16 %v3010_v43, %v3006_v26  ;;  %v7974_v39 = vpack.c.bf16 %v3013_v23, %v3009_v46  ;;  %v8006_v46 = vpack.c.bf16 %v3037_v61, %v3033_v52  ;;  %v3032_v26 = vld [vmem:[#allocation6 + $0x390] sm:$0xff] }
 0x8a8   :  { %6103 = vmatprep.subr.bf16.mxu0 %v6102_v18  ;;  %6135 = vmatprep.subr.bf16.mxu1 %v6134_v28  ;;  %v3012_v18 = vld [vmem:[#allocation6 + $0x2f0] sm:$0xff]  ;;  %v3015_v28 = vld [vmem:[#allocation6 + $0x308] sm:$0xff]  ;;  %v8009_v23 = vpack.c.bf16 %v3034_v7, %v3030_v27 }
 0x8a9   :  { %v7977_v55 = vpack.c.bf16 %v3012_v18, %v3008_v60  ;;  %v3036_v43 = vld [vmem:[#allocation6 + $0x3b0] sm:$0xff]  ;;  %v3039_v18 = vld [vmem:[#allocation6 + $0x3c8] sm:$0xff] }
 0x8aa   :  { %v8013_v60 = vpack.c.bf16 %v3036_v43, %v3032_v26 }
 0x8ab   :  { %6105 = vmatpush1.bf16.msra.mxu0 %v6104_v49  ;;  %6137 = vmatpush1.bf16.msra.mxu1 %v6136_v32  ;;  %v3018_v49 = vld [vmem:[#allocation6 + $0x320] sm:$0xff]  ;;  %v7981_v32 = vpack.c.bf16 %v3019_v22, %v3015_v28  ;;  %v3043_v28 = vld [vmem:[#allocation6 + $0x3e8] sm:$0xff]  ;;  %v3041_v22 = vld [vmem:[#allocation6 + $0x3d8] sm:$0xff] }
 0x8ae   :  { %2768 = vmatmul.mubr.f32.vlgmr.msra.gmra.mrb[18].mxu0 %v7512_v51  ;;  %2887 = vmatmul.mubr.f32.vlgmr.msra.gmra.mrb[20].mxu1 %v7512_v51  ;;  %v2983_v51 = vld [vmem:[#allocation6 + $0x208] sm:$0xff] }
 0x8af   :  { %2773 = vmatprep.mubr.f32.mxu0 %v7229_v0  ;;  %2892 = vmatprep.mubr.f32.mxu1 %v7229_v0 }
 0x8b2   :  { %2774 = vmatmul.mubr.f32.gmra.mrb[20].mxu0 %v7557_v17  ;;  %2893 = vmatmul.mubr.f32.gmra.mrb[22].mxu1 %v7557_v17  ;;  %v2987_v17 = vld [vmem:[#allocation6 + $0x228] sm:$0xff] }
 0x8b3   :  { %2779 = vmatprep.mubr.f32.mxu0 %v7229_v0  ;;  %2898 = vmatprep.mubr.f32.mxu1 %v7229_v0 }
 0x8b6   :  { %2780 = vmatmul.mubr.f32.gmra.mrb[22].mxu0 %v7635_v56  ;;  %2899 = vmatmul.mubr.f32.gmra.mrb[24].mxu1 %v7635_v56  ;;  %v2985_v56 = vld [vmem:[#allocation6 + $0x218] sm:$0xff] }
 0x8b7   :  { %2785 = vmatprep.mubr.f32.mxu0 %v7229_v0  ;;  %2904 = vmatprep.mubr.f32.mxu1 %v7229_v0 }
 0x8ba   :  { %2786 = vmatmul.mubr.f32.gmra.mrb[24].mxu0 %v7714_v31  ;;  %2905 = vmatmul.mubr.f32.gmra.mrb[26].mxu1 %v7714_v31  ;;  %v7934_v31 = vpack.c.bf16 %v2987_v17, %v2983_v51  ;;  %v7983_v51 = vpack.c.bf16 %v3018_v49, %v3014_v38  ;;  %v3017_v17 = vld [vmem:[#allocation6 + $0x318] sm:$0xff]  ;;  %v8018_v38 = vpack.c.bf16 %v3043_v28, %v3039_v18 }
 0x8bb   :  { %2791 = vmatprep.mubr.f32.mxu0 %v7229_v0  ;;  %2910 = vmatprep.mubr.f32.mxu1 %v7229_v0  ;;  %v3045_v49 = vld [vmem:[#allocation6 + $0x3f8] sm:$0xff] }
 0x8bc   :  { %6139 = vmatprep.subr.bf16.mxu0 %v7934_v31 }
 0x8be   :  { %2792 = vmatmul.mubr.f32.gmra.mrb[26].mxu0 %v7760_v4  ;;  %2911 = vmatmul.mubr.f32.gmra.mrb[28].mxu1 %v7760_v4  ;;  %v2982_v4 = vld [vmem:[#allocation6 + $0x200] sm:$0xff] }
 0x8bf   :  { %2797 = vmatprep.mubr.f32.mxu0 %v7229_v0  ;;  %2916 = vmatprep.mubr.f32.mxu1 %v7229_v0 }
 0x8c2   :  { %2798 = vmatmul.mubr.f32.gmra.mrb[28].mxu0 %v7805_v24  ;;  %2917 = vmatmul.mubr.f32.gmra.mrb[30].mxu1 %v7805_v24  ;;  %v2986_v24 = vld [vmem:[#allocation6 + $0x220] sm:$0xff] }
 0x8c3   :  { %2803 = vmatprep.mubr.f32.mxu0 %v7229_v0  ;;  %2922 = vmatprep.mubr.f32.mxu1 %v7229_v0  ;;  %v7936_v1 = vpack.c.bf16 %v2986_v24, %v2982_v4  ;;  %v3016_v4 = vld [vmem:[#allocation6 + $0x310] sm:$0xff] }
 0x8c5   :  { %6141 = vmatpush1.bf16.msra.mxu0 %v7936_v1 }
 0x8c6   :  { %2804 = vmatmul.mubr.f32.gmra.mrb[30].mxu0 %v7870_v57  ;;  %2923 = vmatmul.mubr.f32.gmra.mrb[32].mxu1 %v7870_v57  ;;  %v2989_v57 = vld [vmem:[#allocation6 + $0x238] sm:$0xff] }
 0x8c7   :  { %2809 = vmatprep.mubr.f32.mxu0 %v7229_v0  ;;  %2928 = vmatprep.mubr.f32.mxu1 %v7229_v0  ;;  %v7938_v30 = vpack.c.bf16 %v2989_v57, %v2985_v56  ;;  %v3021_v56 = vld [vmem:[#allocation6 + $0x338] sm:$0xff]  ;;  %v3020_v57 = vld [vmem:[#allocation6 + $0x330] sm:$0xff] }
 0x8c8   :  { %6143 = vmatprep.subr.bf16.mxu0 %v7945_v25  ;;  %v7986_v24 = vpack.c.bf16 %v3021_v56, %v3017_v17  ;;  %v7989_v62 = vpack.c.bf16 %v3020_v57, %v3016_v4  ;;  %v3038_v17 = vld [vmem:[#allocation6 + $0x3c0] sm:$0xff]  ;;  %v8020_v4 = vpack.c.bf16 %v3045_v49, %v3041_v22 }
 0x8c9   :  { %6171 = vmatprep.subr.bf16.mxu1 %v7938_v30  ;;  %6145 = vmatpush1.bf16.msra.mxu0 %v7948_v15  ;;  %v3042_v56 = vld [vmem:[#allocation6 + $0x3e0] sm:$0xff] }
 0x8ca   :  { %2810 = vmatmul.mubr.f32.gmra.mrb[32].mxu0 %v7896_v63  ;;  %2929 = vmatmul.mubr.f32.gmra.mrb[34].mxu1 %v7896_v63  ;;  %v7941_v63 = vpack.c.bf16 %v2988_v45, %v2984_v11  ;;  %v3023_v11 = vld [vmem:[#allocation6 + $0x348] sm:$0xff]  ;;  %v8022_v57 = vpack.c.bf16 %v3042_v56, %v3038_v17 }
 0x8cb   :  { %2815 = vmatprep.mubr.f32.mxu0 %v7229_v0  ;;  %2934 = vmatprep.mubr.f32.mxu1 %v7229_v0  ;;  %v3027_v45 = vld [vmem:[#allocation6 + $0x368] sm:$0xff] }
 0x8cc   :  { %6173 = vmatpush1.bf16.msra.mxu1 %v7941_v63  ;;  %6147 = vmatprep.subr.bf16.mxu0 %v7957_v8  ;;  %v7991_v5 = vpack.c.bf16 %v3027_v45, %v3023_v11  ;;  %v3040_v11 = vld [vmem:[#allocation6 + $0x3d0] sm:$0xff] }
 0x8cd   :  { %6175 = vmatprep.subr.bf16.mxu1 %v7950_v54  ;;  %6149 = vmatpush1.bf16.msra.mxu0 %v7960_v14  ;;  %v3044_v45 = vld [vmem:[#allocation6 + $0x3f0] sm:$0xff] }
 0x8ce   :  { %6151 = vmatprep.subr.bf16.mxu0 %v7970_v21  ;;  %v8025_v13 = vpack.c.bf16 %v3044_v45, %v3040_v11 }
 0x8d0   :  { %6177 = vmatpush1.bf16.msra.mxu1 %v7953_v37 }
 0x8d1   :  { %6179 = vmatprep.subr.bf16.mxu1 %v7962_v34  ;;  %6153 = vmatpush1.bf16.msra.mxu0 %v7972_v58 }
 0x8d2   :  { %6155 = vmatprep.subr.bf16.mxu0 %v7981_v32 }
 0x8d4   :  { %6181 = vmatpush1.bf16.msra.mxu1 %v7965_v16 }
 0x8d5   :  { %6183 = vmatprep.subr.bf16.mxu1 %v7974_v39  ;;  %6157 = vmatpush1.bf16.msra.mxu0 %v7983_v51 }
 0x8d6   :  { %6159 = vmatprep.subr.bf16.mxu0 %v7991_v5 }
 0x8d8   :  { %6185 = vmatpush1.bf16.msra.mxu1 %v7977_v55 }
 0x8d9   :  { %6187 = vmatprep.subr.bf16.mxu1 %v7986_v24  ;;  %6161 = vmatpush1.bf16.msra.mxu0 %v7995_v29 }
 0x8da   :  { %6163 = vmatprep.subr.bf16.mxu0 %v8003_v3 }
 0x8dc   :  { %6189 = vmatpush1.bf16.msra.mxu1 %v7989_v62 }
 0x8dd   :  { %6191 = vmatprep.subr.bf16.mxu1 %v7997_v20  ;;  %6165 = vmatpush1.bf16.msra.mxu0 %v8009_v23 }
 0x8de   :  { %6167 = vmatprep.subr.bf16.mxu0 %v8018_v38 }
 0x8e0   :  { %6193 = vmatpush1.bf16.msra.mxu1 %v8001_v48 }
 0x8e1   :  { %6195 = vmatprep.subr.bf16.mxu1 %v8006_v46  ;;  %6169 = vmatpush1.bf16.msra.mxu0 %v8022_v57 }
 0x8e2   :  { %6203 = vmatprep.subr.bf16.mxu0 %v7934_v31 }
 0x8e4   :  { %6197 = vmatpush1.bf16.msra.mxu1 %v8013_v60 }
 0x8e5   :  { %6199 = vmatprep.subr.bf16.mxu1 %v8020_v4 }
 0x8e8   :  { %6201 = vmatpush1.bf16.msra.mxu1 %v8025_v13 }
 0x8e9   :  { %6235 = vmatprep.subr.bf16.mxu1 %v7938_v30 }
 0x961   :  { %v2500_v33 = vpop.f32.mrb[16].mxu0  ;;  %v2571_v50 = vpop.f32.mrb[16].mxu1 }
 0x962   :  { %v6756_v44 = vadd.f32 %v2500_v33, %v7489_v41  ;;  %v2502_v19 = vpop.f32.mrb[17].mxu0  ;;  %v2573_v12 = vpop.f32.mrb[17].mxu1  ;;  %v6774_v61 = vadd.f32 %v2571_v50, %v7501_v6 }
 0x963   :  { %v6757_v9 = vadd.f32 %v2502_v19, %v7493_v42  ;;  %v6775_v7 = vadd.f32 %v2573_v12, %v7505_v10 }
 0x964   :  { %v5318_v53 = vmul.f32 -1.442695, %v6756_v44 }
 0x965   :  { %v5319_v27 = vmul.f32 -1.442695, %v6757_v9  ;;  %v5320_v52 = vmul.f32 -1.442695, %v6775_v7 }
 0x966   :  { %7017 = vpow2.f32 %v5318_v53 }
 0x967   :  { %7019 = vpow2.f32 %v5319_v27 }
 0x968   :  { %7021 = vpow2.f32 %v5320_v52 }
 0x969   :  { %7023 = vtanh.f32 %v6774_v61 }
 0x970   :  { %v7018_v26 = vpop.eup %7017 }
 0x971   :  { %v7020_v43 = vpop.eup %7019  ;;  %v2583_v18 = vadd.f32 1.0, %v7018_v26 }
 0x972   :  { %v2589_v28 = vadd.f32 1.0, %v7020_v43  ;;  %v7022_v41 = vpop.eup %7021 }
 0x973   :  { %7025 = vrcp.f32 %v2583_v18  ;;  %v7024_v22 = vpop.eup %7023  ;;  %v2596_v56 = vadd.f32 1.0, %v7022_v41 }
 0x974   :  { %7027 = vrcp.f32 %v2589_v28 }
 0x975   :  { %7029 = vrcp.f32 %v2596_v56 }
 0x97d   :  { %v7026_v42 = vpop.eup %7025 }
 0x97e   :  { %v7028_v49 = vpop.eup %7027  ;;  %v2600_v17 = vmul.f32 %v7026_v42, %v7024_v22 }
 0x97f   :  { %v2599_v11 = vmul.f32 %v7028_v49, %v7893_v47  ;;  %v7030_v6 = vpop.eup %7029  ;;  %v5321_v47 = vld [vmem:[%s8572_s3 + $0x4] sm:$0xf] }
 0x980   :  { %v8080_v50 = vrot.slane %v5321_v47, %v128_v36  ;;  %v8084_v44 = vrot.slane %v5321_v47, %v132_v40  ;;  %v8090_v26 = vrot.slane %v5321_v47, %v140_v2  ;;  %v8095_v40 = vrot.slane %v5321_v47, %v136_v59 }
 0x981   :  { %v2601_v10 = vadd.f32 %v2600_v17, %v2599_v11 }
 0x983   :  { %7031 = vtanh.f32 %v2601_v10 }
 0x98d   :  { %v7032_v45 = vpop.eup %7031 }
 0x98e   :  { %v2603_v33 = vmul.f32 %v7032_v45, %v7030_v6 }
 0x990   :  { %2816 = vmatmul.mubr.f32.gmra.mrb[34].mxu0 %v2603_v33  ;;  %2935 = vmatmul.mubr.f32.gmra.mrb[36].mxu1 %v2603_v33 }
 0x991   :  { %3110 = vmatprep.mubr.f32.mxu0 %v7229_v0  ;;  %3181 = vmatprep.mubr.f32.mxu1 %v7229_v0 }
 0x994   :  { %3111 = vmatmul.mubr.f32.vlgmr.msra.gmra.mrb[18].mxu0 %v7229_v0  ;;  %3182 = vmatmul.mubr.f32.vlgmr.msra.gmra.mrb[20].mxu1 %v7229_v0 }
 0x995   :  { %6205 = vmatpush1.bf16.msra.mxu0 %v7936_v1  ;;  %6237 = vmatpush1.bf16.msra.mxu1 %v7941_v63 }
 0x996   :  { %6207 = vmatprep.subr.bf16.mxu0 %v7945_v25  ;;  %6239 = vmatprep.subr.bf16.mxu1 %v7950_v54 }
 0x997   :  { %3349 = vmatprep.mubr.f32.mxu0 %v7229_v0  ;;  %3420 = vmatprep.mubr.f32.mxu1 %v7229_v0 }
 0x999   :  { %6209 = vmatpush1.bf16.msra.mxu0 %v7948_v15  ;;  %6241 = vmatpush1.bf16.msra.mxu1 %v7953_v37 }
 0x99a   :  { %6211 = vmatprep.subr.bf16.mxu0 %v7957_v8  ;;  %6243 = vmatprep.subr.bf16.mxu1 %v7962_v34 }
 0x99d   :  { %6213 = vmatpush1.bf16.msra.mxu0 %v7960_v14  ;;  %6245 = vmatpush1.bf16.msra.mxu1 %v7965_v16 }
 0x99e   :  { %6215 = vmatprep.subr.bf16.mxu0 %v7970_v21  ;;  %6247 = vmatprep.subr.bf16.mxu1 %v7974_v39 }
 0x9a1   :  { %6217 = vmatpush1.bf16.msra.mxu0 %v7972_v58  ;;  %6249 = vmatpush1.bf16.msra.mxu1 %v7977_v55 }
 0x9a2   :  { %6219 = vmatprep.subr.bf16.mxu0 %v7981_v32  ;;  %6251 = vmatprep.subr.bf16.mxu1 %v7986_v24 }
 0x9a5   :  { %6221 = vmatpush1.bf16.msra.mxu0 %v7983_v51  ;;  %6253 = vmatpush1.bf16.msra.mxu1 %v7989_v62 }
 0x9a6   :  { %6223 = vmatprep.subr.bf16.mxu0 %v7991_v5  ;;  %6255 = vmatprep.subr.bf16.mxu1 %v7997_v20 }
 0x9a9   :  { %6225 = vmatpush1.bf16.msra.mxu0 %v7995_v29  ;;  %6257 = vmatpush1.bf16.msra.mxu1 %v8001_v48 }
 0x9aa   :  { %6227 = vmatprep.subr.bf16.mxu0 %v8003_v3  ;;  %6259 = vmatprep.subr.bf16.mxu1 %v8006_v46 }
 0x9ad   :  { %6229 = vmatpush1.bf16.msra.mxu0 %v8009_v23  ;;  %6261 = vmatpush1.bf16.msra.mxu1 %v8013_v60 }
 0x9ae   :  { %6231 = vmatprep.subr.bf16.mxu0 %v8018_v38  ;;  %6263 = vmatprep.subr.bf16.mxu1 %v8020_v4 }
 0x9b1   :  { %6233 = vmatpush1.bf16.msra.mxu0 %v8022_v57  ;;  %6265 = vmatpush1.bf16.msra.mxu1 %v8025_v13 }
 0x9b2   :  { %6267 = vmatprep.subr.bf16.mxu0 %v7934_v31  ;;  %6299 = vmatprep.subr.bf16.mxu1 %v7938_v30 }
 0xa67   :  { %v3112_v19 = vpop.f32.mrb[18].mxu0  ;;  %v3183_v12 = vpop.f32.mrb[20].mxu1 }
 0xa68   :  { %v6776_v9 = vadd.f32 %v3112_v19, %v8080_v50  ;;  %v3114_v53 = vpop.f32.mrb[19].mxu0  ;;  %v3185_v27 = vpop.f32.mrb[21].mxu1  ;;  %v6794_v18 = vadd.f32 %v3183_v12, %v8095_v40 }
 0xa69   :  { %v6777_v7 = vadd.f32 %v3114_v53, %v8084_v44  ;;  %v6795_v36 = vadd.f32 %v3185_v27, %v8090_v26 }
 0xa6a   :  { %v5322_v52 = vmul.f32 -1.442695, %v6776_v9 }
 0xa6b   :  { %v5323_v61 = vmul.f32 -1.442695, %v6777_v7  ;;  %v5324_v43 = vmul.f32 -1.442695, %v6795_v36 }
 0xa6c   :  { %7033 = vpow2.f32 %v5322_v52 }
 0xa6d   :  { %7035 = vpow2.f32 %v5323_v61 }
 0xa6e   :  { %7037 = vpow2.f32 %v5324_v43 }
 0xa6f   :  { %7039 = vtanh.f32 %v6794_v18 }
 0xa76   :  { %v7034_v28 = vpop.eup %7033 }
 0xa77   :  { %v7036_v41 = vpop.eup %7035  ;;  %v3195_v22 = vadd.f32 1.0, %v7034_v28 }
 0xa78   :  { %v3201_v42 = vadd.f32 1.0, %v7036_v41  ;;  %v7038_v2 = vpop.eup %7037 }
 0xa79   :  { %7041 = vrcp.f32 %v3195_v22  ;;  %v7040_v49 = vpop.eup %7039  ;;  %v3208_v10 = vadd.f32 1.0, %v7038_v2 }
 0xa7a   :  { %7043 = vrcp.f32 %v3201_v42 }
 0xa7b   :  { %7045 = vrcp.f32 %v3208_v10 }
 0xa83   :  { %v7042_v17 = vpop.eup %7041 }
 0xa84   :  { %v7044_v56 = vpop.eup %7043  ;;  %v3212_v11 = vmul.f32 %v7042_v17, %v7040_v49 }
 0xa85   :  { %v3211_v35 = vmul.f32 0.0, %v7044_v56  ;;  %v7046_v6 = vpop.eup %7045 }
 0xa87   :  { %v8098_v59 = vadd.f32 %v3212_v11, %v3211_v35 }
 0xa89   :  { %7047 = vtanh.f32 %v8098_v59 }
 0xa93   :  { %v7048_v45 = vpop.eup %7047 }
 0xa94   :  { %v8101_v33 = vmul.f32 %v7048_v45, %v7046_v6  ;;  %v3938_v45 = vld [vmem:[#allocation6 + $0x200] sm:$0xff] }
 0xa96   :  { %3350 = vmatmul.mubr.f32.vlgmr.msra.gmra.mrb[20].mxu0 %v8101_v33  ;;  %3421 = vmatmul.mubr.f32.vlgmr.msra.gmra.mrb[22].mxu1 %v8101_v33 }
 0xa97   :  { %6269 = vmatpush1.bf16.msra.mxu0 %v7936_v1  ;;  %6301 = vmatpush1.bf16.msra.mxu1 %v7941_v63 }
 0xa98   :  { %6271 = vmatprep.subr.bf16.mxu0 %v7945_v25  ;;  %6303 = vmatprep.subr.bf16.mxu1 %v7950_v54 }
 0xa99   :  { %3588 = vmatprep.mubr.f32.mxu0 %v7229_v0  ;;  %3659 = vmatprep.mubr.f32.mxu1 %v7229_v0 }
 0xa9b   :  { %6273 = vmatpush1.bf16.msra.mxu0 %v7948_v15  ;;  %6305 = vmatpush1.bf16.msra.mxu1 %v7953_v37 }
 0xa9c   :  { %6275 = vmatprep.subr.bf16.mxu0 %v7957_v8  ;;  %6307 = vmatprep.subr.bf16.mxu1 %v7962_v34 }
 0xa9f   :  { %6277 = vmatpush1.bf16.msra.mxu0 %v7960_v14  ;;  %6309 = vmatpush1.bf16.msra.mxu1 %v7965_v16 }
 0xaa0   :  { %6279 = vmatprep.subr.bf16.mxu0 %v7970_v21  ;;  %6311 = vmatprep.subr.bf16.mxu1 %v7974_v39 }
 0xaa3   :  { %6281 = vmatpush1.bf16.msra.mxu0 %v7972_v58  ;;  %6313 = vmatpush1.bf16.msra.mxu1 %v7977_v55 }
 0xaa4   :  { %6283 = vmatprep.subr.bf16.mxu0 %v7981_v32  ;;  %6315 = vmatprep.subr.bf16.mxu1 %v7986_v24 }
 0xaa7   :  { %6285 = vmatpush1.bf16.msra.mxu0 %v7983_v51  ;;  %6317 = vmatpush1.bf16.msra.mxu1 %v7989_v62 }
 0xaa8   :  { %6287 = vmatprep.subr.bf16.mxu0 %v7991_v5  ;;  %6319 = vmatprep.subr.bf16.mxu1 %v7997_v20 }
 0xaab   :  { %6289 = vmatpush1.bf16.msra.mxu0 %v7995_v29  ;;  %6321 = vmatpush1.bf16.msra.mxu1 %v8001_v48 }
 0xaac   :  { %6291 = vmatprep.subr.bf16.mxu0 %v8003_v3  ;;  %6323 = vmatprep.subr.bf16.mxu1 %v8006_v46 }
 0xaaf   :  { %6293 = vmatpush1.bf16.msra.mxu0 %v8009_v23  ;;  %6325 = vmatpush1.bf16.msra.mxu1 %v8013_v60 }
 0xab0   :  { %6295 = vmatprep.subr.bf16.mxu0 %v8018_v38  ;;  %6327 = vmatprep.subr.bf16.mxu1 %v8020_v4 }
 0xab3   :  { %6297 = vmatpush1.bf16.msra.mxu0 %v8022_v57  ;;  %6329 = vmatpush1.bf16.msra.mxu1 %v8025_v13 }
 0xab4   :  { %6331 = vmatprep.subr.bf16.mxu0 %v7934_v31  ;;  %6363 = vmatprep.subr.bf16.mxu1 %v7938_v30 }
 0xb69   :  { %v3351_v47 = vpop.f32.mrb[20].mxu0  ;;  %v3422_v19 = vpop.f32.mrb[22].mxu1 }
 0xb6a   :  { %v6778_v12 = vadd.f32 %v3351_v47, %v8080_v50  ;;  %v3353_v9 = vpop.f32.mrb[21].mxu0  ;;  %v3424_v53 = vpop.f32.mrb[23].mxu1  ;;  %v6796_v43 = vadd.f32 %v3422_v19, %v8095_v40  ;;  %v3942_v47 = vld [vmem:[#allocation6 + $0x220] sm:$0xff] }
 0xb6b   :  { %v6779_v27 = vadd.f32 %v3353_v9, %v8084_v44  ;;  %v6797_v61 = vadd.f32 %v3424_v53, %v8090_v26  ;;  %v3940_v9 = vld [vmem:[#allocation6 + $0x210] sm:$0xff] }
 0xb6c   :  { %v5325_v7 = vmul.f32 -1.442695, %v6778_v12  ;;  %v8201_v12 = vpack.c.bf16 %v3942_v47, %v3938_v45  ;;  %v3944_v53 = vld [vmem:[#allocation6 + $0x230] sm:$0xff]  ;;  %v3979_v47 = vld [vmem:[#allocation6 + $0x348] sm:$0xff] }
 0xb6d   :  { %v5326_v52 = vmul.f32 -1.442695, %v6779_v27  ;;  %v5327_v36 = vmul.f32 -1.442695, %v6797_v61  ;;  %v8204_v27 = vpack.c.bf16 %v3944_v53, %v3940_v9  ;;  %v3949_v61 = vld [vmem:[#allocation6 + $0x258] sm:$0xff]  ;;  %v3983_v9 = vld [vmem:[#allocation6 + $0x368] sm:$0xff] }
 0xb6e   :  { %7049 = vpow2.f32 %v5325_v7  ;;  %v3947_v7 = vld [vmem:[#allocation6 + $0x248] sm:$0xff]  ;;  %v3981_v53 = vld [vmem:[#allocation6 + $0x358] sm:$0xff] }
 0xb6f   :  { %7051 = vpow2.f32 %v5326_v52  ;;  %v3951_v52 = vld [vmem:[#allocation6 + $0x268] sm:$0xff] }
 0xb70   :  { %7053 = vpow2.f32 %v5327_v36  ;;  %v8209_v36 = vpack.c.bf16 %v3951_v52, %v3947_v7  ;;  %v8256_v7 = vpack.c.bf16 %v3983_v9, %v3979_v47  ;;  %v3985_v52 = vld [vmem:[#allocation6 + $0x378] sm:$0xff] }
 0xb71   :  { %7055 = vtanh.f32 %v6796_v43  ;;  %v3953_v43 = vld [vmem:[#allocation6 + $0x278] sm:$0xff] }
 0xb78   :  { %v7050_v31 = vpop.eup %7049 }
 0xb79   :  { %v7052_v18 = vpop.eup %7051  ;;  %v3434_v30 = vadd.f32 1.0, %v7050_v31  ;;  %v3946_v31 = vld [vmem:[#allocation6 + $0x240] sm:$0xff] }
 0xb7a   :  { %v3440_v28 = vadd.f32 1.0, %v7052_v18  ;;  %v7054_v41 = vpop.eup %7053  ;;  %v3950_v18 = vld [vmem:[#allocation6 + $0x260] sm:$0xff] }
 0xb7b   :  { %7057 = vrcp.f32 %v3434_v30  ;;  %v7056_v22 = vpop.eup %7055  ;;  %v3447_v17 = vadd.f32 1.0, %v7054_v41  ;;  %v8211_v30 = vpack.c.bf16 %v3953_v43, %v3949_v61  ;;  %v3948_v41 = vld [vmem:[#allocation6 + $0x250] sm:$0xff]  ;;  %v3978_v61 = vld [vmem:[#allocation6 + $0x340] sm:$0xff] }
 0xb7c   :  { %7059 = vrcp.f32 %v3440_v28  ;;  %v8213_v28 = vpack.c.bf16 %v3950_v18, %v3946_v31  ;;  %v3982_v43 = vld [vmem:[#allocation6 + $0x360] sm:$0xff]  ;;  %v8259_v31 = vpack.c.bf16 %v3985_v52, %v3981_v53 }
 0xb7d   :  { %7061 = vrcp.f32 %v3447_v17  ;;  %v3957_v17 = vld [vmem:[#allocation6 + $0x298] sm:$0xff]  ;;  %v8261_v18 = vpack.c.bf16 %v3982_v43, %v3978_v61 }
 0xb85   :  { %v7058_v42 = vpop.eup %7057 }
 0xb86   :  { %v7060_v2 = vpop.eup %7059  ;;  %v3451_v49 = vmul.f32 %v7058_v42, %v7056_v22  ;;  %v3952_v22 = vld [vmem:[#allocation6 + $0x270] sm:$0xff] }
 0xb87   :  { %v3450_v56 = vmul.f32 %v7060_v2, %v8098_v59  ;;  %v7062_v10 = vpop.eup %7061  ;;  %v3945_v59 = vld [vmem:[#allocation6 + $0x238] sm:$0xff]  ;;  %v8216_v42 = vpack.c.bf16 %v3952_v22, %v3948_v41  ;;  %v3955_v2 = vld [vmem:[#allocation6 + $0x288] sm:$0xff]  ;;  %v3980_v41 = vld [vmem:[#allocation6 + $0x350] sm:$0xff] }
 0xb88   :  { %v3984_v22 = vld [vmem:[#allocation6 + $0x370] sm:$0xff] }
 0xb89   :  { %v8144_v11 = vadd.f32 %v3451_v49, %v3450_v56  ;;  %v3959_v49 = vld [vmem:[#allocation6 + $0x2a8] sm:$0xff] }
 0xb8a   :  { %v8221_v56 = vpack.c.bf16 %v3959_v49, %v3955_v2  ;;  %v3987_v2 = vld [vmem:[#allocation6 + $0x388] sm:$0xff]  ;;  %v8264_v49 = vpack.c.bf16 %v3984_v22, %v3980_v41 }
 0xb8b   :  { %7063 = vtanh.f32 %v8144_v11 }
 0xb95   :  { %v7064_v35 = vpop.eup %7063 }
 0xb96   :  { %v8147_v6 = vmul.f32 %v7064_v35, %v7062_v10  ;;  %v3954_v10 = vld [vmem:[#allocation6 + $0x280] sm:$0xff] }
 0xb97   :  { %v3958_v35 = vld [vmem:[#allocation6 + $0x2a0] sm:$0xff] }
 0xb98   :  { %3589 = vmatmul.mubr.f32.vlgmr.msra.gmra.mrb[22].mxu0 %v8147_v6  ;;  %3660 = vmatmul.mubr.f32.vlgmr.msra.gmra.mrb[24].mxu1 %v8147_v6 }
 0xb99   :  { %6333 = vmatpush1.bf16.msra.mxu0 %v7936_v1  ;;  %6365 = vmatpush1.bf16.msra.mxu1 %v7941_v63 }
 0xb9a   :  { %6335 = vmatprep.subr.bf16.mxu0 %v7945_v25  ;;  %6367 = vmatprep.subr.bf16.mxu1 %v7950_v54 }
 0xb9b   :  { %3827 = vmatprep.mubr.f32.mxu0 %v7229_v0  ;;  %3898 = vmatprep.mubr.f32.mxu1 %v7229_v0 }
 0xb9d   :  { %6337 = vmatpush1.bf16.msra.mxu0 %v7948_v15  ;;  %6369 = vmatpush1.bf16.msra.mxu1 %v7953_v37 }
 0xb9e   :  { %6339 = vmatprep.subr.bf16.mxu0 %v7957_v8  ;;  %6371 = vmatprep.subr.bf16.mxu1 %v7962_v34 }
 0xba1   :  { %6341 = vmatpush1.bf16.msra.mxu0 %v7960_v14  ;;  %6373 = vmatpush1.bf16.msra.mxu1 %v7965_v16 }
 0xba2   :  { %6343 = vmatprep.subr.bf16.mxu0 %v7970_v21  ;;  %6375 = vmatprep.subr.bf16.mxu1 %v7974_v39 }
 0xba5   :  { %6345 = vmatpush1.bf16.msra.mxu0 %v7972_v58  ;;  %6377 = vmatpush1.bf16.msra.mxu1 %v7977_v55 }
 0xba6   :  { %6347 = vmatprep.subr.bf16.mxu0 %v7981_v32  ;;  %6379 = vmatprep.subr.bf16.mxu1 %v7986_v24 }
 0xba9   :  { %6349 = vmatpush1.bf16.msra.mxu0 %v7983_v51  ;;  %6381 = vmatpush1.bf16.msra.mxu1 %v7989_v62 }
 0xbaa   :  { %6351 = vmatprep.subr.bf16.mxu0 %v7991_v5  ;;  %6383 = vmatprep.subr.bf16.mxu1 %v7997_v20 }
 0xbad   :  { %6353 = vmatpush1.bf16.msra.mxu0 %v7995_v29  ;;  %6385 = vmatpush1.bf16.msra.mxu1 %v8001_v48 }
 0xbae   :  { %6355 = vmatprep.subr.bf16.mxu0 %v8003_v3  ;;  %6387 = vmatprep.subr.bf16.mxu1 %v8006_v46 }
 0xbb1   :  { %6357 = vmatpush1.bf16.msra.mxu0 %v8009_v23  ;;  %6389 = vmatpush1.bf16.msra.mxu1 %v8013_v60 }
 0xbb2   :  { %6359 = vmatprep.subr.bf16.mxu0 %v8018_v38  ;;  %6391 = vmatprep.subr.bf16.mxu1 %v8020_v4  ;;  %v3939_v38 = vld [vmem:[#allocation6 + $0x208] sm:$0xff] }
 0xbb3   :  { %v3943_v4 = vld [vmem:[#allocation6 + $0x228] sm:$0xff] }
 0xbb5   :  { %6361 = vmatpush1.bf16.msra.mxu0 %v8022_v57  ;;  %6393 = vmatpush1.bf16.msra.mxu1 %v8025_v13  ;;  %v3941_v57 = vld [vmem:[#allocation6 + $0x218] sm:$0xff]  ;;  %v8197_v13 = vpack.c.bf16 %v3943_v4, %v3939_v38 }
 0xbb6   :  { %v8199_v19 = vpack.c.bf16 %v3945_v59, %v3941_v57  ;;  %v3972_v57 = vld [vmem:[#allocation6 + $0x310] sm:$0xff] }
 0xbb7   :  { %6395 = vmatprep.subr.bf16.mxu0 %v8197_v13  ;;  %v3976_v59 = vld [vmem:[#allocation6 + $0x330] sm:$0xff] }
 0xbb8   :  { %6427 = vmatprep.subr.bf16.mxu1 %v8199_v19  ;;  %v8252_v45 = vpack.c.bf16 %v3976_v59, %v3972_v57  ;;  %v4000_v57 = vld [vmem:[#allocation6 + $0x3f0] sm:$0xff] }
 0xc6b   :  { %v3590_v1 = vpop.f32.mrb[22].mxu0  ;;  %v3661_v63 = vpop.f32.mrb[24].mxu1 }
 0xc6c   :  { %v6780_v25 = vadd.f32 %v3590_v1, %v8080_v50  ;;  %v3592_v15 = vpop.f32.mrb[23].mxu0  ;;  %v3663_v54 = vpop.f32.mrb[25].mxu1  ;;  %v6798_v21 = vadd.f32 %v3661_v63, %v8095_v40  ;;  %v8225_v63 = vpack.c.bf16 %v3958_v35, %v3954_v10  ;;  %v3993_v10 = vld [vmem:[#allocation6 + $0x3b8] sm:$0xff] }
 0xc6d   :  { %v6781_v37 = vadd.f32 %v3592_v15, %v8084_v44  ;;  %v6799_v34 = vadd.f32 %v3663_v54, %v8090_v26  ;;  %v3960_v15 = vld [vmem:[#allocation6 + $0x2b0] sm:$0xff] }
 0xc6e   :  { %v5328_v8 = vmul.f32 -1.442695, %v6780_v25  ;;  %v3956_v25 = vld [vmem:[#allocation6 + $0x290] sm:$0xff] }
 0xc6f   :  { %v5329_v14 = vmul.f32 -1.442695, %v6781_v37  ;;  %v5330_v16 = vmul.f32 -1.442695, %v6799_v34  ;;  %v8228_v54 = vpack.c.bf16 %v3960_v15, %v3956_v25  ;;  %v3963_v37 = vld [vmem:[#allocation6 + $0x2c8] sm:$0xff]  ;;  %v3986_v15 = vld [vmem:[#allocation6 + $0x380] sm:$0xff] }
 0xc70   :  { %7065 = vpow2.f32 %v5328_v8  ;;  %v3967_v8 = vld [vmem:[#allocation6 + $0x2e8] sm:$0xff] }
 0xc71   :  { %7067 = vpow2.f32 %v5329_v14  ;;  %v3965_v14 = vld [vmem:[#allocation6 + $0x2d8] sm:$0xff]  ;;  %v8233_v34 = vpack.c.bf16 %v3967_v8, %v3963_v37  ;;  %v3990_v37 = vld [vmem:[#allocation6 + $0x3a0] sm:$0xff]  ;;  %v3988_v8 = vld [vmem:[#allocation6 + $0x390] sm:$0xff] }
 0xc72   :  { %7069 = vpow2.f32 %v5330_v16  ;;  %v3969_v16 = vld [vmem:[#allocation6 + $0x2f8] sm:$0xff] }
 0xc73   :  { %7071 = vtanh.f32 %v6798_v21  ;;  %v3962_v21 = vld [vmem:[#allocation6 + $0x2c0] sm:$0xff] }
 0xc7a   :  { %v7066_v58 = vpop.eup %7065 }
 0xc7b   :  { %v7068_v39 = vpop.eup %7067  ;;  %v3673_v55 = vadd.f32 1.0, %v7066_v58  ;;  %v3966_v58 = vld [vmem:[#allocation6 + $0x2e0] sm:$0xff] }
 0xc7c   :  { %v3679_v32 = vadd.f32 1.0, %v7068_v39  ;;  %v7070_v51 = vpop.eup %7069  ;;  %v8235_v39 = vpack.c.bf16 %v3969_v16, %v3965_v14  ;;  %v8272_v14 = vpack.c.bf16 %v3990_v37, %v3986_v15  ;;  %v3992_v16 = vld [vmem:[#allocation6 + $0x3b0] sm:$0xff] }
 0xc7d   :  { %7073 = vrcp.f32 %v3673_v55  ;;  %v7072_v24 = vpop.eup %7071  ;;  %v3686_v20 = vadd.f32 1.0, %v7070_v51  ;;  %v8237_v55 = vpack.c.bf16 %v3966_v58, %v3962_v21  ;;  %v3968_v51 = vld [vmem:[#allocation6 + $0x2f0] sm:$0xff]  ;;  %v3995_v21 = vld [vmem:[#allocation6 + $0x3c8] sm:$0xff] }
 0xc7e   :  { %7075 = vrcp.f32 %v3679_v32  ;;  %v3964_v32 = vld [vmem:[#allocation6 + $0x2d0] sm:$0xff]  ;;  %v3999_v58 = vld [vmem:[#allocation6 + $0x3e8] sm:$0xff] }
 0xc7f   :  { %7077 = vrcp.f32 %v3686_v20 }
 0xc87   :  { %v7074_v62 = vpop.eup %7073 }
 0xc88   :  { %v7076_v5 = vpop.eup %7075  ;;  %v3690_v29 = vmul.f32 %v7074_v62, %v7072_v24  ;;  %v8240_v24 = vpack.c.bf16 %v3968_v51, %v3964_v32  ;;  %v3971_v62 = vld [vmem:[#allocation6 + $0x308] sm:$0xff]  ;;  %v8276_v32 = vpack.c.bf16 %v3992_v16, %v3988_v8  ;;  %v8278_v51 = vpack.c.bf16 %v3999_v58, %v3995_v21 }
 0xc89   :  { %v3689_v48 = vmul.f32 %v7076_v5, %v8144_v11  ;;  %v7078_v46 = vpop.eup %7077  ;;  %v3961_v11 = vld [vmem:[#allocation6 + $0x2b8] sm:$0xff]  ;;  %v3975_v5 = vld [vmem:[#allocation6 + $0x328] sm:$0xff] }
 0xc8a   :  { %v8223_v1 = vpack.c.bf16 %v3961_v11, %v3957_v17  ;;  %v8245_v20 = vpack.c.bf16 %v3975_v5, %v3971_v62  ;;  %v3991_v17 = vld [vmem:[#allocation6 + $0x3a8] sm:$0xff]  ;;  %v3989_v11 = vld [vmem:[#allocation6 + $0x398] sm:$0xff] }
 0xc8b   :  { %v8188_v3 = vadd.f32 %v3690_v29, %v3689_v48  ;;  %v3973_v29 = vld [vmem:[#allocation6 + $0x318] sm:$0xff]  ;;  %v8267_v35 = vpack.c.bf16 %v3991_v17, %v3987_v2  ;;  %v8269_v25 = vpack.c.bf16 %v3993_v10, %v3989_v11 }
 0xc8c   :  { %v3977_v48 = vld [vmem:[#allocation6 + $0x338] sm:$0xff] }
 0xc8d   :  { %7079 = vtanh.f32 %v8188_v3  ;;  %v8247_v38 = vpack.c.bf16 %v3977_v48, %v3973_v29  ;;  %v3997_v62 = vld [vmem:[#allocation6 + $0x3d8] sm:$0xff]  ;;  %v3994_v29 = vld [vmem:[#allocation6 + $0x3c0] sm:$0xff] }
 0xc8e   :  { %v4001_v5 = vld [vmem:[#allocation6 + $0x3f8] sm:$0xff] }
 0xc8f   :  { %v8281_v48 = vpack.c.bf16 %v4001_v5, %v3997_v62 }
 0xc97   :  { %v7080_v23 = vpop.eup %7079 }
 0xc98   :  { %v8191_v60 = vmul.f32 %v7080_v23, %v7078_v46  ;;  %v3970_v46 = vld [vmem:[#allocation6 + $0x300] sm:$0xff] }
 0xc99   :  { %v3974_v23 = vld [vmem:[#allocation6 + $0x320] sm:$0xff] }
 0xc9a   :  { %3828 = vmatmul.mubr.f32.vlgmr.msra.gmra.mrb[24].mxu0 %v8191_v60  ;;  %3899 = vmatmul.mubr.f32.vlgmr.msra.gmra.mrb[26].mxu1 %v8191_v60  ;;  %v8249_v4 = vpack.c.bf16 %v3974_v23, %v3970_v46  ;;  %v3998_v46 = vld [vmem:[#allocation6 + $0x3e0] sm:$0xff]  ;;  %v3996_v23 = vld [vmem:[#allocation6 + $0x3d0] sm:$0xff] }
 0xc9b   :  { %4066 = vmatprep.mubr.f32.mxu0 %v7229_v0  ;;  %4137 = vmatprep.mubr.f32.mxu1 %v7229_v0  ;;  %v8284_v59 = vpack.c.bf16 %v3998_v46, %v3994_v29  ;;  %v8288_v47 = vpack.c.bf16 %v4000_v57, %v3996_v23 }
 0xc9c   :  { %6397 = vmatpush1.bf16.msra.mxu0 %v8201_v12  ;;  %6429 = vmatpush1.bf16.msra.mxu1 %v8204_v27 }
 0xc9d   :  { %6399 = vmatprep.subr.bf16.mxu0 %v8209_v36  ;;  %6431 = vmatprep.subr.bf16.mxu1 %v8211_v30 }
 0xca0   :  { %6401 = vmatpush1.bf16.msra.mxu0 %v8213_v28  ;;  %6433 = vmatpush1.bf16.msra.mxu1 %v8216_v42 }
 0xca1   :  { %6403 = vmatprep.subr.bf16.mxu0 %v8221_v56  ;;  %6435 = vmatprep.subr.bf16.mxu1 %v8223_v1 }
 0xca4   :  { %6405 = vmatpush1.bf16.msra.mxu0 %v8225_v63  ;;  %6437 = vmatpush1.bf16.msra.mxu1 %v8228_v54 }
 0xca5   :  { %6407 = vmatprep.subr.bf16.mxu0 %v8233_v34  ;;  %6439 = vmatprep.subr.bf16.mxu1 %v8235_v39 }
 0xca8   :  { %6409 = vmatpush1.bf16.msra.mxu0 %v8237_v55  ;;  %6441 = vmatpush1.bf16.msra.mxu1 %v8240_v24 }
 0xca9   :  { %6411 = vmatprep.subr.bf16.mxu0 %v8245_v20  ;;  %6443 = vmatprep.subr.bf16.mxu1 %v8247_v38 }
 0xcac   :  { %6413 = vmatpush1.bf16.msra.mxu0 %v8249_v4  ;;  %6445 = vmatpush1.bf16.msra.mxu1 %v8252_v45 }
 0xcad   :  { %6415 = vmatprep.subr.bf16.mxu0 %v8256_v7  ;;  %6447 = vmatprep.subr.bf16.mxu1 %v8259_v31 }
 0xcb0   :  { %6417 = vmatpush1.bf16.msra.mxu0 %v8261_v18  ;;  %6449 = vmatpush1.bf16.msra.mxu1 %v8264_v49 }
 0xcb1   :  { %6419 = vmatprep.subr.bf16.mxu0 %v8267_v35  ;;  %6451 = vmatprep.subr.bf16.mxu1 %v8269_v25 }
 0xcb4   :  { %6421 = vmatpush1.bf16.msra.mxu0 %v8272_v14  ;;  %6453 = vmatpush1.bf16.msra.mxu1 %v8276_v32 }
 0xcb5   :  { %6423 = vmatprep.subr.bf16.mxu0 %v8278_v51  ;;  %6455 = vmatprep.subr.bf16.mxu1 %v8281_v48 }
 0xcb8   :  { %6425 = vmatpush1.bf16.msra.mxu0 %v8284_v59  ;;  %6457 = vmatpush1.bf16.msra.mxu1 %v8288_v47 }
 0xcb9   :  { %6459 = vmatprep.subr.bf16.mxu0 %v8197_v13  ;;  %6491 = vmatprep.subr.bf16.mxu1 %v8199_v19 }
 0xd6d   :  { %v3829_v9 = vpop.f32.mrb[24].mxu0  ;;  %v3900_v53 = vpop.f32.mrb[26].mxu1 }
 0xd6e   :  { %v6782_v52 = vadd.f32 %v3829_v9, %v8080_v50  ;;  %v3831_v61 = vpop.f32.mrb[25].mxu0  ;;  %v3902_v43 = vpop.f32.mrb[27].mxu1  ;;  %v6800_v10 = vadd.f32 %v3900_v53, %v8095_v40 }
 0xd6f   :  { %v6783_v41 = vadd.f32 %v3831_v61, %v8084_v44  ;;  %v6801_v17 = vadd.f32 %v3902_v43, %v8090_v26 }
 0xd70   :  { %v5331_v22 = vmul.f32 -1.442695, %v6782_v52 }
 0xd71   :  { %v5332_v2 = vmul.f32 -1.442695, %v6783_v41  ;;  %v5333_v11 = vmul.f32 -1.442695, %v6801_v17 }
 0xd72   :  { %7081 = vpow2.f32 %v5331_v22 }
 0xd73   :  { %7083 = vpow2.f32 %v5332_v2 }
 0xd74   :  { %7085 = vpow2.f32 %v5333_v11 }
 0xd75   :  { %7087 = vtanh.f32 %v6800_v10 }
 0xd7c   :  { %v7082_v15 = vpop.eup %7081 }
 0xd7d   :  { %v7084_v37 = vpop.eup %7083  ;;  %v3912_v8 = vadd.f32 1.0, %v7082_v15 }
 0xd7e   :  { %v3918_v16 = vadd.f32 1.0, %v7084_v37  ;;  %v7086_v21 = vpop.eup %7085 }
 0xd7f   :  { %7089 = vrcp.f32 %v3912_v8  ;;  %v7088_v58 = vpop.eup %7087  ;;  %v3925_v46 = vadd.f32 1.0, %v7086_v21 }
 0xd80   :  { %7091 = vrcp.f32 %v3918_v16 }
 0xd81   :  { %7093 = vrcp.f32 %v3925_v46 }
 0xd89   :  { %v7090_v62 = vpop.eup %7089 }
 0xd8a   :  { %v7092_v5 = vpop.eup %7091  ;;  %v3929_v29 = vmul.f32 %v7090_v62, %v7088_v58 }
 0xd8b   :  { %v3928_v23 = vmul.f32 %v7092_v5, %v8188_v3  ;;  %v7094_v9 = vpop.eup %7093 }
 0xd8d   :  { %v8300_v57 = vadd.f32 %v3929_v29, %v3928_v23 }
 0xd8f   :  { %7095 = vtanh.f32 %v8300_v57 }
 0xd99   :  { %v7096_v53 = vpop.eup %7095 }
 0xd9a   :  { %v8303_v52 = vmul.f32 %v7096_v53, %v7094_v9 }
 0xd9c   :  { %4067 = vmatmul.mubr.f32.vlgmr.msra.gmra.mrb[26].mxu0 %v8303_v52  ;;  %4138 = vmatmul.mubr.f32.vlgmr.msra.gmra.mrb[28].mxu1 %v8303_v52 }
 0xd9d   :  { %6461 = vmatpush1.bf16.msra.mxu0 %v8201_v12  ;;  %6493 = vmatpush1.bf16.msra.mxu1 %v8204_v27 }
 0xd9e   :  { %6463 = vmatprep.subr.bf16.mxu0 %v8209_v36  ;;  %6495 = vmatprep.subr.bf16.mxu1 %v8211_v30 }
 0xd9f   :  { %4305 = vmatprep.mubr.f32.mxu0 %v7229_v0  ;;  %4376 = vmatprep.mubr.f32.mxu1 %v7229_v0 }
 0xda1   :  { %6465 = vmatpush1.bf16.msra.mxu0 %v8213_v28  ;;  %6497 = vmatpush1.bf16.msra.mxu1 %v8216_v42 }
 0xda2   :  { %6467 = vmatprep.subr.bf16.mxu0 %v8221_v56  ;;  %6499 = vmatprep.subr.bf16.mxu1 %v8223_v1 }
 0xda5   :  { %6469 = vmatpush1.bf16.msra.mxu0 %v8225_v63  ;;  %6501 = vmatpush1.bf16.msra.mxu1 %v8228_v54 }
 0xda6   :  { %6471 = vmatprep.subr.bf16.mxu0 %v8233_v34  ;;  %6503 = vmatprep.subr.bf16.mxu1 %v8235_v39 }
 0xda9   :  { %6473 = vmatpush1.bf16.msra.mxu0 %v8237_v55  ;;  %6505 = vmatpush1.bf16.msra.mxu1 %v8240_v24 }
 0xdaa   :  { %6475 = vmatprep.subr.bf16.mxu0 %v8245_v20  ;;  %6507 = vmatprep.subr.bf16.mxu1 %v8247_v38 }
 0xdad   :  { %6477 = vmatpush1.bf16.msra.mxu0 %v8249_v4  ;;  %6509 = vmatpush1.bf16.msra.mxu1 %v8252_v45 }
 0xdae   :  { %6479 = vmatprep.subr.bf16.mxu0 %v8256_v7  ;;  %6511 = vmatprep.subr.bf16.mxu1 %v8259_v31 }
 0xdb1   :  { %6481 = vmatpush1.bf16.msra.mxu0 %v8261_v18  ;;  %6513 = vmatpush1.bf16.msra.mxu1 %v8264_v49 }
 0xdb2   :  { %6483 = vmatprep.subr.bf16.mxu0 %v8267_v35  ;;  %6515 = vmatprep.subr.bf16.mxu1 %v8269_v25 }
 0xdb5   :  { %6485 = vmatpush1.bf16.msra.mxu0 %v8272_v14  ;;  %6517 = vmatpush1.bf16.msra.mxu1 %v8276_v32 }
 0xdb6   :  { %6487 = vmatprep.subr.bf16.mxu0 %v8278_v51  ;;  %6519 = vmatprep.subr.bf16.mxu1 %v8281_v48 }
 0xdb9   :  { %6489 = vmatpush1.bf16.msra.mxu0 %v8284_v59  ;;  %6521 = vmatpush1.bf16.msra.mxu1 %v8288_v47 }
 0xdba   :  { %6523 = vmatprep.subr.bf16.mxu0 %v8197_v13  ;;  %6555 = vmatprep.subr.bf16.mxu1 %v8199_v19 }
 0xe6f   :  { %v4068_v3 = vpop.f32.mrb[26].mxu0  ;;  %v4139_v61 = vpop.f32.mrb[28].mxu1 }
 0xe70   :  { %v6784_v43 = vadd.f32 %v4068_v3, %v8080_v50  ;;  %v4070_v41 = vpop.f32.mrb[27].mxu0  ;;  %v4141_v22 = vpop.f32.mrb[29].mxu1  ;;  %v6802_v37 = vadd.f32 %v4139_v61, %v8095_v40 }
 0xe71   :  { %v6785_v2 = vadd.f32 %v4070_v41, %v8084_v44  ;;  %v6803_v10 = vadd.f32 %v4141_v22, %v8090_v26 }
 0xe72   :  { %v5334_v17 = vmul.f32 -1.442695, %v6784_v43 }
 0xe73   :  { %v5335_v11 = vmul.f32 -1.442695, %v6785_v2  ;;  %v5336_v15 = vmul.f32 -1.442695, %v6803_v10 }
 0xe74   :  { %7097 = vpow2.f32 %v5334_v17 }
 0xe75   :  { %7099 = vpow2.f32 %v5335_v11 }
 0xe76   :  { %7101 = vpow2.f32 %v5336_v15 }
 0xe77   :  { %7103 = vtanh.f32 %v6802_v37 }
 0xe7e   :  { %v7098_v8 = vpop.eup %7097 }
 0xe7f   :  { %v7100_v16 = vpop.eup %7099  ;;  %v4151_v21 = vadd.f32 1.0, %v7098_v8 }
 0xe80   :  { %v4157_v58 = vadd.f32 1.0, %v7100_v16  ;;  %v7102_v62 = vpop.eup %7101 }
 0xe81   :  { %7105 = vrcp.f32 %v4151_v21  ;;  %v7104_v5 = vpop.eup %7103  ;;  %v4164_v9 = vadd.f32 1.0, %v7102_v62 }
 0xe82   :  { %7107 = vrcp.f32 %v4157_v58 }
 0xe83   :  { %7109 = vrcp.f32 %v4164_v9 }
 0xe8b   :  { %v7106_v29 = vpop.eup %7105 }
 0xe8c   :  { %v7108_v46 = vpop.eup %7107  ;;  %v4168_v23 = vmul.f32 %v7106_v29, %v7104_v5 }
 0xe8d   :  { %v4167_v53 = vmul.f32 %v7108_v46, %v8300_v57  ;;  %v7110_v61 = vpop.eup %7109 }
 0xe8f   :  { %v8346_v3 = vadd.f32 %v4168_v23, %v4167_v53 }
 0xe91   :  { %7111 = vtanh.f32 %v8346_v3 }
 0xe9b   :  { %v7112_v43 = vpop.eup %7111 }
 0xe9c   :  { %v8349_v41 = vmul.f32 %v7112_v43, %v7110_v61 }
 0xe9e   :  { %4306 = vmatmul.mubr.f32.vlgmr.msra.gmra.mrb[28].mxu0 %v8349_v41  ;;  %4377 = vmatmul.mubr.f32.vlgmr.msra.gmra.mrb[30].mxu1 %v8349_v41 }
 0xe9f   :  { %6525 = vmatpush1.bf16.msra.mxu0 %v8201_v12  ;;  %6557 = vmatpush1.bf16.msra.mxu1 %v8204_v27 }
 0xea0   :  { %6527 = vmatprep.subr.bf16.mxu0 %v8209_v36  ;;  %6559 = vmatprep.subr.bf16.mxu1 %v8211_v30 }
 0xea1   :  { %4544 = vmatprep.mubr.f32.mxu0 %v7229_v0  ;;  %4615 = vmatprep.mubr.f32.mxu1 %v7229_v0 }
 0xea3   :  { %6529 = vmatpush1.bf16.msra.mxu0 %v8213_v28  ;;  %6561 = vmatpush1.bf16.msra.mxu1 %v8216_v42 }
 0xea4   :  { %6531 = vmatprep.subr.bf16.mxu0 %v8221_v56  ;;  %6563 = vmatprep.subr.bf16.mxu1 %v8223_v1 }
 0xea7   :  { %6533 = vmatpush1.bf16.msra.mxu0 %v8225_v63  ;;  %6565 = vmatpush1.bf16.msra.mxu1 %v8228_v54 }
 0xea8   :  { %6535 = vmatprep.subr.bf16.mxu0 %v8233_v34  ;;  %6567 = vmatprep.subr.bf16.mxu1 %v8235_v39 }
 0xeab   :  { %6537 = vmatpush1.bf16.msra.mxu0 %v8237_v55  ;;  %6569 = vmatpush1.bf16.msra.mxu1 %v8240_v24 }
 0xeac   :  { %6539 = vmatprep.subr.bf16.mxu0 %v8245_v20  ;;  %6571 = vmatprep.subr.bf16.mxu1 %v8247_v38 }
 0xeaf   :  { %6541 = vmatpush1.bf16.msra.mxu0 %v8249_v4  ;;  %6573 = vmatpush1.bf16.msra.mxu1 %v8252_v45 }
 0xeb0   :  { %6543 = vmatprep.subr.bf16.mxu0 %v8256_v7  ;;  %6575 = vmatprep.subr.bf16.mxu1 %v8259_v31 }
 0xeb3   :  { %6545 = vmatpush1.bf16.msra.mxu0 %v8261_v18  ;;  %6577 = vmatpush1.bf16.msra.mxu1 %v8264_v49 }
 0xeb4   :  { %6547 = vmatprep.subr.bf16.mxu0 %v8267_v35  ;;  %6579 = vmatprep.subr.bf16.mxu1 %v8269_v25 }
 0xeb7   :  { %6549 = vmatpush1.bf16.msra.mxu0 %v8272_v14  ;;  %6581 = vmatpush1.bf16.msra.mxu1 %v8276_v32 }
 0xeb8   :  { %6551 = vmatprep.subr.bf16.mxu0 %v8278_v51  ;;  %6583 = vmatprep.subr.bf16.mxu1 %v8281_v48 }
 0xebb   :  { %6553 = vmatpush1.bf16.msra.mxu0 %v8284_v59  ;;  %6585 = vmatpush1.bf16.msra.mxu1 %v8288_v47 }
 0xebc   :  { %6587 = vmatprep.subr.bf16.mxu0 %v8197_v13  ;;  %6619 = vmatprep.subr.bf16.mxu1 %v8199_v19 }
 0xf71   :  { %v4307_v57 = vpop.f32.mrb[28].mxu0  ;;  %v4378_v22 = vpop.f32.mrb[30].mxu1 }
 0xf72   :  { %v6786_v2 = vadd.f32 %v4307_v57, %v8080_v50  ;;  %v4309_v17 = vpop.f32.mrb[29].mxu0  ;;  %v4380_v11 = vpop.f32.mrb[31].mxu1  ;;  %v6804_v21 = vadd.f32 %v4378_v22, %v8095_v40 }
 0xf73   :  { %v6787_v10 = vadd.f32 %v4309_v17, %v8084_v44  ;;  %v6805_v8 = vadd.f32 %v4380_v11, %v8090_v26  ;;  %v4897_v17 = vld [vmem:[#allocation6 + $0x218] sm:$0xff] }
 0xf74   :  { %v5337_v15 = vmul.f32 -1.442695, %v6786_v2 }
 0xf75   :  { %v5338_v37 = vmul.f32 -1.442695, %v6787_v10  ;;  %v5339_v16 = vmul.f32 -1.442695, %v6805_v8  ;;  %v4901_v10 = vld [vmem:[#allocation6 + $0x238] sm:$0xff] }
 0xf76   :  { %7113 = vpow2.f32 %v5337_v15  ;;  %v4896_v15 = vld [vmem:[#allocation6 + $0x210] sm:$0xff]  ;;  %v6682_v8 = vpack.c.bf16 %v4901_v10, %v4897_v17 }
 0xf77   :  { %7115 = vpow2.f32 %v5338_v37  ;;  %v4900_v37 = vld [vmem:[#allocation6 + $0x230] sm:$0xff] }
 0xf78   :  { %7117 = vpow2.f32 %v5339_v16  ;;  %v6684_v16 = vpack.c.bf16 %v4900_v37, %v4896_v15  ;;  %v4928_v17 = vld [vmem:[#allocation6 + $0x310] sm:$0xff]  ;;  %v4935_v37 = vld [vmem:[#allocation6 + $0x348] sm:$0xff] }
 0xf79   :  { %7119 = vtanh.f32 %v6804_v21  ;;  %v4903_v21 = vld [vmem:[#allocation6 + $0x248] sm:$0xff] }
 0xf80   :  { %v7114_v13 = vpop.eup %7113 }
 0xf81   :  { %v7116_v58 = vpop.eup %7115  ;;  %v4390_v19 = vadd.f32 1.0, %v7114_v13  ;;  %v4907_v13 = vld [vmem:[#allocation6 + $0x268] sm:$0xff] }
 0xf82   :  { %v4396_v62 = vadd.f32 1.0, %v7116_v58  ;;  %v7118_v5 = vpop.eup %7117  ;;  %v6654_v58 = vpack.c.bf16 %v4907_v13, %v4903_v21  ;;  %v4938_v13 = vld [vmem:[#allocation6 + $0x360] sm:$0xff] }
 0xf83   :  { %7121 = vrcp.f32 %v4390_v19  ;;  %v7120_v29 = vpop.eup %7119  ;;  %v4403_v53 = vadd.f32 1.0, %v7118_v5  ;;  %v4902_v19 = vld [vmem:[#allocation6 + $0x240] sm:$0xff]  ;;  %v4905_v5 = vld [vmem:[#allocation6 + $0x258] sm:$0xff] }
 0xf84   :  { %7123 = vrcp.f32 %v4396_v62  ;;  %v4906_v62 = vld [vmem:[#allocation6 + $0x260] sm:$0xff] }
 0xf85   :  { %7125 = vrcp.f32 %v4403_v53 }
 0xf8d   :  { %v7122_v46 = vpop.eup %7121 }
 0xf8e   :  { %v7124_v23 = vpop.eup %7123  ;;  %v4407_v9 = vmul.f32 %v7122_v46, %v7120_v29  ;;  %v6656_v29 = vpack.c.bf16 %v4906_v62, %v4902_v19  ;;  %v4909_v46 = vld [vmem:[#allocation6 + $0x278] sm:$0xff] }
 0xf8f   :  { %v4406_v61 = vmul.f32 %v7124_v23, %v8346_v3  ;;  %v7126_v57 = vpop.eup %7125  ;;  %v4898_v3 = vld [vmem:[#allocation6 + $0x220] sm:$0xff]  ;;  %v4904_v23 = vld [vmem:[#allocation6 + $0x250] sm:$0xff]  ;;  %v6686_v53 = vpack.c.bf16 %v4909_v46, %v4905_v5  ;;  %v4941_v19 = vld [vmem:[#allocation6 + $0x378] sm:$0xff] }
 0xf90   :  { %v4940_v46 = vld [vmem:[#allocation6 + $0x370] sm:$0xff] }
 0xf91   :  { %v8392_v43 = vadd.f32 %v4407_v9, %v4406_v61  ;;  %v4908_v9 = vld [vmem:[#allocation6 + $0x270] sm:$0xff] }
 0xf92   :  { %v6688_v61 = vpack.c.bf16 %v4908_v9, %v4904_v23  ;;  %v4943_v23 = vld [vmem:[#allocation6 + $0x388] sm:$0xff] }
 0xf93   :  { %7127 = vtanh.f32 %v8392_v43 }
 0xf9d   :  { %v7128_v22 = vpop.eup %7127 }
 0xf9e   :  { %v8395_v2 = vmul.f32 %v7128_v22, %v7126_v57  ;;  %v4915_v57 = vld [vmem:[#allocation6 + $0x2a8] sm:$0xff] }
 0xfa0   :  { %4545 = vmatmul.mubr.f32.vlgmr.msra.gmra.mrb[30].mxu0 %v8395_v2  ;;  %4616 = vmatmul.mubr.f32.vlgmr.msra.gmra.mrb[32].mxu1 %v8395_v2 }
 0xfa1   :  { %6589 = vmatpush1.bf16.msra.mxu0 %v8201_v12  ;;  %6621 = vmatpush1.bf16.msra.mxu1 %v8204_v27 }
 0xfa2   :  { %6591 = vmatprep.subr.bf16.mxu0 %v8209_v36  ;;  %6623 = vmatprep.subr.bf16.mxu1 %v8211_v30 }
 0xfa3   :  { %4783 = vmatprep.mubr.f32.mxu0 %v7229_v0  ;;  %4854 = vmatprep.mubr.f32.mxu1 %v7229_v0 }
 0xfa5   :  { %6593 = vmatpush1.bf16.msra.mxu0 %v8213_v28  ;;  %6625 = vmatpush1.bf16.msra.mxu1 %v8216_v42 }
 0xfa6   :  { %6595 = vmatprep.subr.bf16.mxu0 %v8221_v56  ;;  %6627 = vmatprep.subr.bf16.mxu1 %v8223_v1 }
 0xfa9   :  { %6597 = vmatpush1.bf16.msra.mxu0 %v8225_v63  ;;  %6629 = vmatpush1.bf16.msra.mxu1 %v8228_v54 }
 0xfaa   :  { %6599 = vmatprep.subr.bf16.mxu0 %v8233_v34  ;;  %6631 = vmatprep.subr.bf16.mxu1 %v8235_v39 }
 0xfad   :  { %6601 = vmatpush1.bf16.msra.mxu0 %v8237_v55  ;;  %6633 = vmatpush1.bf16.msra.mxu1 %v8240_v24 }
 0xfae   :  { %6603 = vmatprep.subr.bf16.mxu0 %v8245_v20  ;;  %6635 = vmatprep.subr.bf16.mxu1 %v8247_v38 }
 0xfb1   :  { %6605 = vmatpush1.bf16.msra.mxu0 %v8249_v4  ;;  %6637 = vmatpush1.bf16.msra.mxu1 %v8252_v45 }
 0xfb2   :  { %6607 = vmatprep.subr.bf16.mxu0 %v8256_v7  ;;  %6639 = vmatprep.subr.bf16.mxu1 %v8259_v31 }
 0xfb5   :  { %6609 = vmatpush1.bf16.msra.mxu0 %v8261_v18  ;;  %6641 = vmatpush1.bf16.msra.mxu1 %v8264_v49 }
 0xfb6   :  { %6611 = vmatprep.subr.bf16.mxu0 %v8267_v35  ;;  %6643 = vmatprep.subr.bf16.mxu1 %v8269_v25 }
 0xfb9   :  { %6613 = vmatpush1.bf16.msra.mxu0 %v8272_v14  ;;  %6645 = vmatpush1.bf16.msra.mxu1 %v8276_v32 }
 0xfba   :  { %6615 = vmatprep.subr.bf16.mxu0 %v8278_v51  ;;  %6647 = vmatprep.subr.bf16.mxu1 %v8281_v48  ;;  %v4895_v51 = vld [vmem:[#allocation6 + $0x208] sm:$0xff] }
 0xfbb   :  { %v4899_v48 = vld [vmem:[#allocation6 + $0x228] sm:$0xff] }
 0xfbd   :  { %6617 = vmatpush1.bf16.msra.mxu0 %v8284_v59  ;;  %6649 = vmatpush1.bf16.msra.mxu1 %v8288_v47  ;;  %v6650_v59 = vpack.c.bf16 %v4899_v48, %v4895_v51  ;;  %v4894_v47 = vld [vmem:[#allocation6 + $0x200] sm:$0xff] }
 0xfbe   :  { %v6652_v11 = vpack.c.bf16 %v4898_v3, %v4894_v47  ;;  %6683 = vmatprep.subr.bf16.mxu1 %v6682_v8  ;;  %v4926_v51 = vld [vmem:[#allocation6 + $0x300] sm:$0xff]  ;;  %v4933_v3 = vld [vmem:[#allocation6 + $0x338] sm:$0xff]  ;;  %v4939_v8 = vld [vmem:[#allocation6 + $0x368] sm:$0xff] }
 0xfbf   :  { %6651 = vmatprep.subr.bf16.mxu0 %v6650_v59  ;;  %v4930_v48 = vld [vmem:[#allocation6 + $0x320] sm:$0xff]  ;;  %v4929_v59 = vld [vmem:[#allocation6 + $0x318] sm:$0xff]  ;;  %v6670_v21 = vpack.c.bf16 %v4939_v8, %v4935_v37 }
 0xfc0   :  { %v6668_v47 = vpack.c.bf16 %v4930_v48, %v4926_v51  ;;  %v6698_v10 = vpack.c.bf16 %v4933_v3, %v4929_v59 }
0x1073   :  { %v4546_v12 = vpop.f32.mrb[30].mxu0  ;;  %v4617_v27 = vpop.f32.mrb[32].mxu1 }
0x1074   :  { %v6788_v36 = vadd.f32 %v4546_v12, %v8080_v50  ;;  %v4548_v30 = vpop.f32.mrb[31].mxu0  ;;  %v4619_v28 = vpop.f32.mrb[33].mxu1  ;;  %v6806_v34 = vadd.f32 %v4617_v27, %v8095_v40  ;;  %v4910_v12 = vld [vmem:[#allocation6 + $0x280] sm:$0xff] }
0x1075   :  { %v6789_v42 = vadd.f32 %v4548_v30, %v8084_v44  ;;  %v6807_v63 = vadd.f32 %v4619_v28, %v8090_v26  ;;  %v4914_v27 = vld [vmem:[#allocation6 + $0x2a0] sm:$0xff]  ;;  %v4917_v28 = vld [vmem:[#allocation6 + $0x2b8] sm:$0xff] }
0x1076   :  { %v5340_v56 = vmul.f32 -1.442695, %v6788_v36  ;;  %v4913_v36 = vld [vmem:[#allocation6 + $0x298] sm:$0xff]  ;;  %v6660_v30 = vpack.c.bf16 %v4914_v27, %v4910_v12 }
0x1077   :  { %v5341_v1 = vmul.f32 -1.442695, %v6789_v42  ;;  %v5342_v54 = vmul.f32 -1.442695, %v6807_v63  ;;  %v4912_v42 = vld [vmem:[#allocation6 + $0x290] sm:$0xff]  ;;  %v4945_v12 = vld [vmem:[#allocation6 + $0x398] sm:$0xff] }
0x1078   :  { %7129 = vpow2.f32 %v5340_v56  ;;  %v4916_v56 = vld [vmem:[#allocation6 + $0x2b0] sm:$0xff]  ;;  %v4949_v27 = vld [vmem:[#allocation6 + $0x3b8] sm:$0xff] }
0x1079   :  { %7131 = vpow2.f32 %v5341_v1  ;;  %v6690_v1 = vpack.c.bf16 %v4917_v28, %v4913_v36  ;;  %v6692_v63 = vpack.c.bf16 %v4916_v56, %v4912_v42  ;;  %v4944_v36 = vld [vmem:[#allocation6 + $0x390] sm:$0xff]  ;;  %v4951_v42 = vld [vmem:[#allocation6 + $0x3c8] sm:$0xff] }
0x107a   :  { %7133 = vpow2.f32 %v5342_v54  ;;  %v4919_v54 = vld [vmem:[#allocation6 + $0x2c8] sm:$0xff]  ;;  %v4948_v28 = vld [vmem:[#allocation6 + $0x3b0] sm:$0xff] }
0x107b   :  { %7135 = vtanh.f32 %v6806_v34  ;;  %v4923_v34 = vld [vmem:[#allocation6 + $0x2e8] sm:$0xff] }
0x107c   :  { %v4955_v56 = vld [vmem:[#allocation6 + $0x3e8] sm:$0xff] }
0x1082   :  { %v7130_v39 = vpop.eup %7129 }
0x1083   :  { %v7132_v55 = vpop.eup %7131  ;;  %v4629_v24 = vadd.f32 1.0, %v7130_v39  ;;  %v6662_v39 = vpack.c.bf16 %v4923_v34, %v4919_v54  ;;  %v4950_v54 = vld [vmem:[#allocation6 + $0x3c0] sm:$0xff] }
0x1084   :  { %v4635_v20 = vadd.f32 1.0, %v7132_v55  ;;  %v7134_v38 = vpop.eup %7133  ;;  %v4918_v55 = vld [vmem:[#allocation6 + $0x2c0] sm:$0xff] }
0x1085   :  { %7137 = vrcp.f32 %v4629_v24  ;;  %v7136_v4 = vpop.eup %7135  ;;  %v4642_v18 = vadd.f32 1.0, %v7134_v38  ;;  %v4922_v24 = vld [vmem:[#allocation6 + $0x2e0] sm:$0xff] }
0x1086   :  { %7139 = vrcp.f32 %v4635_v20  ;;  %v4921_v20 = vld [vmem:[#allocation6 + $0x2d8] sm:$0xff]  ;;  %v6664_v38 = vpack.c.bf16 %v4922_v24, %v4918_v55  ;;  %v4954_v34 = vld [vmem:[#allocation6 + $0x3e0] sm:$0xff]  ;;  %v4952_v24 = vld [vmem:[#allocation6 + $0x3d0] sm:$0xff] }
0x1087   :  { %7141 = vrcp.f32 %v4642_v18  ;;  %v4957_v55 = vld [vmem:[#allocation6 + $0x3f8] sm:$0xff] }
0x108f   :  { %v7138_v45 = vpop.eup %7137 }
0x1090   :  { %v7140_v7 = vpop.eup %7139  ;;  %v4646_v31 = vmul.f32 %v7138_v45, %v7136_v4  ;;  %v4925_v4 = vld [vmem:[#allocation6 + $0x2f8] sm:$0xff]  ;;  %v4920_v45 = vld [vmem:[#allocation6 + $0x2d0] sm:$0xff] }
0x1091   :  { %v4645_v49 = vmul.f32 %v7140_v7, %v8392_v43  ;;  %v7142_v25 = vpop.eup %7141  ;;  %v4911_v43 = vld [vmem:[#allocation6 + $0x288] sm:$0xff]  ;;  %v4924_v7 = vld [vmem:[#allocation6 + $0x2f0] sm:$0xff] }
0x1092   :  { %v6658_v22 = vpack.c.bf16 %v4915_v57, %v4911_v43  ;;  %v6696_v18 = vpack.c.bf16 %v4924_v7, %v4920_v45  ;;  %v4946_v43 = vld [vmem:[#allocation6 + $0x3a0] sm:$0xff]  ;;  %v7230_v7 = vmov 0.0|0.0  }
0x1093   :  { %v8436_v35 = vadd.f32 %v4646_v31, %v4645_v49  ;;  %v6694_v31 = vpack.c.bf16 %v4925_v4, %v4921_v20  ;;  %v4927_v49 = vld [vmem:[#allocation6 + $0x308] sm:$0xff]  ;;  %v4956_v20 = vld [vmem:[#allocation6 + $0x3f0] sm:$0xff] }
0x1094   :  { %v6712_v45 = vpack.c.bf16 %v4956_v20, %v4952_v24  ;;  %v5152_v20 = vld [vmem:[%s8573_s4 + $0x70] sm:$0xff] }
0x1095   :  { %7143 = vtanh.f32 %v8436_v35 }
0x109f   :  { %v7144_v14 = vpop.eup %7143 }
0x10a0   :  { %v8439_v32 = vmul.f32 %v7144_v14, %v7142_v25  ;;  %v4931_v25 = vld [vmem:[#allocation6 + $0x328] sm:$0xff] }
0x10a1   :  { %v6666_v14 = vpack.c.bf16 %v4931_v25, %v4927_v49 }
0x10a2   :  { %4784 = vmatmul.mubr.f32.vlgmr.msra.gmra.mrb[32].mxu0 %v8439_v32  ;;  %4855 = vmatmul.mubr.f32.vlgmr.msra.gmra.mrb[34].mxu1 %v8439_v32 }
0x10a3   :  { %5022 = vmatprep.mubr.f32.mxu0 %v7229_v0  ;;  %5093 = vmatprep.mubr.f32.mxu1 %v7229_v0 }
0x10a4   :  { %6653 = vmatpush1.bf16.msra.mxu0 %v6652_v11  ;;  %6685 = vmatpush1.bf16.msra.mxu1 %v6684_v16  ;;  %v4932_v11 = vld [vmem:[#allocation6 + $0x330] sm:$0xff]  ;;  %v4934_v16 = vld [vmem:[#allocation6 + $0x340] sm:$0xff] }
0x10a5   :  { %6655 = vmatprep.subr.bf16.mxu0 %v6654_v58  ;;  %6687 = vmatprep.subr.bf16.mxu1 %v6686_v53  ;;  %v6700_v15 = vpack.c.bf16 %v4932_v11, %v4928_v17  ;;  %v4937_v58 = vld [vmem:[#allocation6 + $0x358] sm:$0xff]  ;;  %v6672_v62 = vpack.c.bf16 %v4938_v13, %v4934_v16  ;;  %v4947_v53 = vld [vmem:[#allocation6 + $0x3a8] sm:$0xff] }
0x10a6   :  { %v6702_v5 = vpack.c.bf16 %v4941_v19, %v4937_v58  ;;  %v6674_v57 = vpack.c.bf16 %v4947_v53, %v4943_v23 }
0x10a8   :  { %6657 = vmatpush1.bf16.msra.mxu0 %v6656_v29  ;;  %6689 = vmatpush1.bf16.msra.mxu1 %v6688_v61  ;;  %v4936_v29 = vld [vmem:[#allocation6 + $0x350] sm:$0xff]  ;;  %v4942_v61 = vld [vmem:[#allocation6 + $0x380] sm:$0xff] }
0x10a9   :  { %6659 = vmatprep.subr.bf16.mxu0 %v6658_v22  ;;  %6691 = vmatprep.subr.bf16.mxu1 %v6690_v1  ;;  %v6704_v9 = vpack.c.bf16 %v4940_v46, %v4936_v29  ;;  %v6676_v22 = vpack.c.bf16 %v4946_v43, %v4942_v61  ;;  %v6708_v1 = vpack.c.bf16 %v4948_v28, %v4944_v36  ;;  %v5138_v29 = vld [vmem:[%s8573_s4] sm:$0xff]  ;;  %v5139_v46 = vld [vmem:[%s8573_s4 + $0x8] sm:$0xff]  ;;  %v5141_v43 = vld [vmem:[%s8573_s4 + $0x18] sm:$0xff] }
0x10aa   :  { %v6715_v53 = vpack.c.bf16 %v5139_v46, %v5138_v29  ;;  %v5144_v36 = vld [vmem:[%s8573_s4 + $0x30] sm:$0xff] }
0x10ac   :  { %6661 = vmatpush1.bf16.msra.mxu0 %v6660_v30  ;;  %6693 = vmatpush1.bf16.msra.mxu1 %v6692_v63  ;;  %v6706_v30 = vpack.c.bf16 %v4949_v27, %v4945_v12  ;;  %v6678_v63 = vpack.c.bf16 %v4955_v56, %v4951_v42  ;;  %v5143_v12 = vld [vmem:[%s8573_s4 + $0x28] sm:$0xff]  ;;  %v5146_v42 = vld [vmem:[%s8573_s4 + $0x40] sm:$0xff] }
0x10ad   :  { %6663 = vmatprep.subr.bf16.mxu0 %v6662_v39  ;;  %6695 = vmatprep.subr.bf16.mxu1 %v6694_v31  ;;  %v4953_v39 = vld [vmem:[#allocation6 + $0x3d8] sm:$0xff]  ;;  %v5147_v56 = vld [vmem:[%s8573_s4 + $0x48] sm:$0xff] }
0x10ae   :  { %v6710_v4 = vpack.c.bf16 %v4957_v55, %v4953_v39  ;;  %v5150_v39 = vld [vmem:[%s8573_s4 + $0x60] sm:$0xff]  ;;  %v5151_v55 = vld [vmem:[%s8573_s4 + $0x68] sm:$0xff] }
0x10af   :  { %v6733_v24 = vpack.c.bf16 %v5151_v55, %v5150_v39 }
0x10b0   :  { %6665 = vmatpush1.bf16.msra.mxu0 %v6664_v38  ;;  %6697 = vmatpush1.bf16.msra.mxu1 %v6696_v18  ;;  %v6680_v38 = vpack.c.bf16 %v4954_v34, %v4950_v54  ;;  %v5149_v54 = vld [vmem:[%s8573_s4 + $0x58] sm:$0xff] }
0x10b1   :  { %6667 = vmatprep.subr.bf16.mxu0 %v6666_v14  ;;  %6699 = vmatprep.subr.bf16.mxu1 %v6698_v10 }
0x10b4   :  { %6669 = vmatpush1.bf16.msra.mxu0 %v6668_v47  ;;  %6701 = vmatpush1.bf16.msra.mxu1 %v6700_v15 }
0x10b5   :  { %6671 = vmatprep.subr.bf16.mxu0 %v6670_v21  ;;  %6703 = vmatprep.subr.bf16.mxu1 %v6702_v5 }
0x10b8   :  { %6673 = vmatpush1.bf16.msra.mxu0 %v6672_v62  ;;  %6705 = vmatpush1.bf16.msra.mxu1 %v6704_v9 }
0x10b9   :  { %6675 = vmatprep.subr.bf16.mxu0 %v6674_v57  ;;  %6707 = vmatprep.subr.bf16.mxu1 %v6706_v30  ;;  %v5145_v30 = vld [vmem:[%s8573_s4 + $0x38] sm:$0xff] }
0x10ba   :  { %v6724_v28 = vpack.c.bf16 %v5145_v30, %v5144_v36 }
0x10bc   :  { %6677 = vmatpush1.bf16.msra.mxu0 %v6676_v22  ;;  %6709 = vmatpush1.bf16.msra.mxu1 %v6708_v1  ;;  %v5142_v22 = vld [vmem:[%s8573_s4 + $0x20] sm:$0xff]  ;;  %v6727_v1 = vpack.c.bf16 %v5147_v56, %v5146_v42 }
0x10bd   :  { %6679 = vmatprep.subr.bf16.mxu0 %v6678_v63  ;;  %6711 = vmatprep.subr.bf16.mxu1 %v6710_v4  ;;  %v6721_v27 = vpack.c.bf16 %v5143_v12, %v5142_v22  ;;  %v5148_v63 = vld [vmem:[%s8573_s4 + $0x50] sm:$0xff] }
0x10be   :  { %v6730_v34 = vpack.c.bf16 %v5149_v54, %v5148_v63 }
0x10c0   :  { %6681 = vmatpush1.bf16.msra.mxu0 %v6680_v38  ;;  %6713 = vmatpush1.bf16.msra.mxu1 %v6712_v45  ;;  %v5153_v38 = vld [vmem:[%s8573_s4 + $0x78] sm:$0xff] }
0x10c1   :  { %6714 = vmatprep.subr.bf16.mxu0 %v7230_v7  ;;  %v6736_v4 = vpack.c.bf16 %v5153_v38, %v5152_v20 }
0x1175   :  { %v4785_v31 = vpop.f32.mrb[32].mxu0  ;;  %v4856_v18 = vpop.f32.mrb[34].mxu1 }
0x1176   :  { %v6790_v49 = vadd.f32 %v4785_v31, %v8080_v50  ;;  %v4787_v25 = vpop.f32.mrb[33].mxu0  ;;  %v4858_v14 = vpop.f32.mrb[35].mxu1  ;;  %v6808_v17 = vadd.f32 %v4856_v18, %v8095_v40 }
0x1177   :  { %v6791_v51 = vadd.f32 %v4787_v25, %v8084_v44  ;;  %v6809_v47 = vadd.f32 %v4858_v14, %v8090_v26 }
0x1178   :  { %v5343_v48 = vmul.f32 -1.442695, %v6790_v49 }
0x1179   :  { %v5344_v59 = vmul.f32 -1.442695, %v6791_v51  ;;  %v5345_v3 = vmul.f32 -1.442695, %v6809_v47 }
0x117a   :  { %7145 = vpow2.f32 %v5343_v48 }
0x117b   :  { %7147 = vpow2.f32 %v5344_v59 }
0x117c   :  { %7149 = vpow2.f32 %v5345_v3 }
0x117d   :  { %7151 = vtanh.f32 %v6808_v17 }
0x1184   :  { %v7146_v11 = vpop.eup %7145 }
0x1185   :  { %v7148_v10 = vpop.eup %7147  ;;  %v4868_v15 = vadd.f32 1.0, %v7146_v11 }
0x1186   :  { %v4874_v37 = vadd.f32 1.0, %v7148_v10  ;;  %v7150_v8 = vpop.eup %7149 }
0x1187   :  { %7153 = vrcp.f32 %v4868_v15  ;;  %v7152_v16 = vpop.eup %7151  ;;  %v4881_v19 = vadd.f32 1.0, %v7150_v8 }
0x1188   :  { %7155 = vrcp.f32 %v4874_v37 }
0x1189   :  { %7157 = vrcp.f32 %v4881_v19 }
0x1191   :  { %v7154_v21 = vpop.eup %7153 }
0x1192   :  { %v7156_v13 = vpop.eup %7155  ;;  %v4885_v58 = vmul.f32 %v7154_v21, %v7152_v16 }
0x1193   :  { %v4884_v62 = vmul.f32 %v7156_v13, %v8436_v35  ;;  %v7158_v23 = vpop.eup %7157  ;;  %v5140_v35 = vld [vmem:[%s8573_s4 + $0x10] sm:$0xff] }
0x1194   :  { %v6718_v57 = vpack.c.bf16 %v5141_v43, %v5140_v35 }
0x1195   :  { %v8451_v5 = vadd.f32 %v4885_v58, %v4884_v62 }
0x1197   :  { %7159 = vtanh.f32 %v8451_v5 }
0x11a1   :  { %v7160_v9 = vpop.eup %7159 }
0x11a2   :  { %v4888_v61 = vmul.f32 %v7160_v9, %v7158_v23 }
0x11a4   :  { %5023 = vmatmul.mubr.f32.vlgmr.msra.gmra.mrb[34].mxu0 %v4888_v61  ;;  %5094 = vmatmul.mubr.f32.vlgmr.msra.gmra.mrb[36].mxu1 %v4888_v61 }
0x11a5   :  { %6716 = vmatpush3.bf16.msra.mxu0 %v6715_v53  ;;  %5407 = vmatprep.mubr.msk.f32.mxu0 %vm7231_vm0, %v7229_v0 }
0x11a6   :  { %6717 = vmatprep.subr.bf16.mxu0 %v7230_v7 }
0x11a9   :  { %6719 = vmatpush3.bf16.msra.mxu0 %v6718_v57 }
0x11aa   :  { %6720 = vmatprep.subr.bf16.mxu0 %v7230_v7 }
0x11ad   :  { %6722 = vmatpush3.bf16.msra.mxu0 %v6721_v27 }
0x11ae   :  { %6723 = vmatprep.subr.bf16.mxu0 %v7230_v7 }
0x11b1   :  { %6725 = vmatpush3.bf16.msra.mxu0 %v6724_v28 }
0x11b2   :  { %6726 = vmatprep.subr.bf16.mxu0 %v7230_v7 }
0x11b5   :  { %6728 = vmatpush3.bf16.msra.mxu0 %v6727_v1 }
0x11b6   :  { %6729 = vmatprep.subr.bf16.mxu0 %v7230_v7 }
0x11b9   :  { %6731 = vmatpush3.bf16.msra.mxu0 %v6730_v34 }
0x11ba   :  { %6732 = vmatprep.subr.bf16.mxu0 %v7230_v7 }
0x11bd   :  { %6734 = vmatpush3.bf16.msra.mxu0 %v6733_v24 }
0x11be   :  { %6735 = vmatprep.subr.bf16.mxu0 %v7230_v7 }
0x11c1   :  { %6737 = vmatpush3.bf16.msra.mxu0 %v6736_v4 }
0x11c4   :  { %5408 = vmatmul.mubr.f32.vlgmr.msra.gmra.mrb[36].mxu0 %v8101_v33 }
0x11c5   :  { %5410 = vmatprep.mubr.msk.f32.mxu0 %vm7231_vm0, %v7229_v0 }
0x11c8   :  { %5411 = vmatmul.mubr.f32.gmra.mrb[38].mxu0 %v8147_v6 }
0x11c9   :  { %5413 = vmatprep.mubr.msk.f32.mxu0 %vm7231_vm0, %v7229_v0 }
0x11cc   :  { %5414 = vmatmul.mubr.f32.gmra.mrb[40].mxu0 %v8191_v60 }
0x11cd   :  { %5416 = vmatprep.mubr.msk.f32.mxu0 %vm7231_vm0, %v7229_v0 }
0x11d0   :  { %5417 = vmatmul.mubr.f32.gmra.mrb[42].mxu0 %v8303_v52 }
0x11d1   :  { %5419 = vmatprep.mubr.msk.f32.mxu0 %vm7231_vm0, %v7229_v0 }
0x11d4   :  { %5420 = vmatmul.mubr.f32.gmra.mrb[44].mxu0 %v8349_v41 }
0x11d5   :  { %5422 = vmatprep.mubr.msk.f32.mxu0 %vm7231_vm0, %v7229_v0 }
0x11d8   :  { %5423 = vmatmul.mubr.f32.gmra.mrb[46].mxu0 %v8395_v2 }
0x11d9   :  { %5425 = vmatprep.mubr.msk.f32.mxu0 %vm7231_vm0, %v7229_v0 }
0x11dc   :  { %5426 = vmatmul.mubr.f32.gmra.mrb[48].mxu0 %v8439_v32 }
0x11dd   :  { %5428 = vmatprep.mubr.msk.f32.mxu0 %vm7231_vm0, %v7229_v0 }
0x11e0   :  { %5429 = vmatmul.mubr.f32.gmra.mrb[50].mxu0 %v4888_v61 }
0x11e1   :  { %5431 = vmatprep.mubr.msk.f32.mxu0 %vm7231_vm0, %v7229_v0 }
0x1277   :  { %v5024_v33 = vpop.f32.mrb[34].mxu0  ;;  %v5095_v6 = vpop.f32.mrb[36].mxu1 }
0x1278   :  { %v6792_v60 = vadd.f32 %v5024_v33, %v8080_v50  ;;  %v5026_v52 = vpop.f32.mrb[35].mxu0  ;;  %v5097_v41 = vpop.f32.mrb[37].mxu1  ;;  %v6810_v18 = vadd.f32 %v5095_v6, %v8095_v40 }
0x1279   :  { %v6793_v2 = vadd.f32 %v5026_v52, %v8084_v44  ;;  %v6811_v32 = vadd.f32 %v5097_v41, %v8090_v26  ;;  %v5349_v26 = vld [vmem:[%s8574_s5] ss:$0 sm:$0xff] }
0x127a   :  { %v5346_v45 = vmul.f32 -1.442695, %v6792_v60 }
0x127b   :  { %v5347_v7 = vmul.f32 -1.442695, %v6793_v2  ;;  %v5348_v31 = vmul.f32 -1.442695, %v6811_v32 }
0x127c   :  { %7161 = vpow2.f32 %v5346_v45 }
0x127d   :  { %7163 = vpow2.f32 %v5347_v7 }
0x127e   :  { %7165 = vpow2.f32 %v5348_v31 }
0x127f   :  { %7167 = vtanh.f32 %v6810_v18 }
0x1286   :  { %v7162_v49 = vpop.eup %7161 }
0x1287   :  { %v7164_v25 = vpop.eup %7163  ;;  %v5107_v0 = vadd.f32 1.0, %v7162_v49 }
0x1288   :  { %v5113_v14 = vadd.f32 1.0, %v7164_v25  ;;  %v7166_v50 = vpop.eup %7165 }
0x1289   :  { %7169 = vrcp.f32 %v5107_v0  ;;  %v7168_v51 = vpop.eup %7167  ;;  %v5120_v47 = vadd.f32 1.0, %v7166_v50 }
0x128a   :  { %7171 = vrcp.f32 %v5113_v14 }
0x128b   :  { %7173 = vrcp.f32 %v5120_v47 }
0x1293   :  { %v7170_v44 = vpop.eup %7169 }
0x1294   :  { %v7172_v48 = vpop.eup %7171  ;;  %v5124_v59 = vmul.f32 %v7170_v44, %v7168_v51 }
0x1295   :  { %v5123_v3 = vmul.f32 %v7172_v48, %v8451_v5  ;;  %v7174_v58 = vpop.eup %7173 }
0x1297   :  { %v5227_v40 = vpop.f32.mrb[36].mxu0  ;;  %v5125_v17 = vadd.f32 %v5124_v59, %v5123_v3 }
0x1298   :  { %v5228_v11 = vadd.f32 %v5349_v26, %v5227_v40  ;;  %v5409_v10 = vpop.f32.mrb[37].mxu0 }
0x1299   :  { %7175 = vtanh.f32 %v5125_v17 }
0x129a   :  { %5271 = vst [vmem:[%s8575_s6] sm:$0xff] %v5228_v11 }
0x129b   :  { %v5232_v15 = vpop.f32.mrb[38].mxu0 }
0x129c   :  { %v5233_v37 = vadd.f32 %v5349_v26, %v5232_v15  ;;  %v5412_v8 = vpop.f32.mrb[39].mxu0 }
0x129e   :  { %5272 = vst [vmem:[%s8575_s6 + $0x8] sm:$0xff] %v5233_v37 }
0x129f   :  { %v5237_v16 = vpop.f32.mrb[40].mxu0 }
0x12a0   :  { %v5238_v21 = vadd.f32 %v5349_v26, %v5237_v16  ;;  %v5415_v13 = vpop.f32.mrb[41].mxu0 }
0x12a2   :  { %5273 = vst [vmem:[%s8575_s6 + $0x10] sm:$0xff] %v5238_v21 }
0x12a3   :  { %v7176_v19 = vpop.eup %7175  ;;  %v5242_v62 = vpop.f32.mrb[42].mxu0 }
0x12a4   :  { %v5243_v5 = vadd.f32 %v5349_v26, %v5242_v62  ;;  %v5418_v29 = vpop.f32.mrb[43].mxu0  ;;  %v5127_v46 = vmul.f32 %v7176_v19, %v7174_v58 }
0x12a6   :  { %5274 = vst [vmem:[%s8575_s6 + $0x18] sm:$0xff] %v5243_v5  ;;  %5432 = vmatmul.mubr.f32.gmra.mrb[52].mxu0 %v5127_v46 }
0x12a7   :  { %v5247_v23 = vpop.f32.mrb[44].mxu0 }
0x12a8   :  { %v5248_v9 = vadd.f32 %v5349_v26, %v5247_v23  ;;  %v5421_v53 = vpop.f32.mrb[45].mxu0 }
0x12aa   :  { %5275 = vst [vmem:[%s8575_s6 + $0x20] sm:$0xff] %v5248_v9 }
0x12ab   :  { %v5252_v61 = vpop.f32.mrb[46].mxu0 }
0x12ac   :  { %v5253_v35 = vadd.f32 %v5349_v26, %v5252_v61  ;;  %v5424_v43 = vpop.f32.mrb[47].mxu0 }
0x12ae   :  { %5276 = vst [vmem:[%s8575_s6 + $0x28] sm:$0xff] %v5253_v35 }
0x12af   :  { %v5257_v57 = vpop.f32.mrb[48].mxu0 }
0x12b0   :  { %v5258_v22 = vadd.f32 %v5349_v26, %v5257_v57  ;;  %v5427_v12 = vpop.f32.mrb[49].mxu0 }
0x12b2   :  { %5277 = vst [vmem:[%s8575_s6 + $0x30] sm:$0xff] %v5258_v22 }
0x12b3   :  { %v5262_v27 = vpop.f32.mrb[50].mxu0 }
0x12b4   :  { %v5263_v36 = vadd.f32 %v5349_v26, %v5262_v27  ;;  %v5430_v30 = vpop.f32.mrb[51].mxu0 }
0x12b6   :  { %5278 = vst [vmem:[%s8575_s6 + $0x38] sm:$0xff] %v5263_v36 }
0x1379   :  { %v5267_v28 = vpop.f32.mrb[52].mxu0 }
0x137a   :  { %v5268_v42 = vadd.f32 %v5349_v26, %v5267_v28  ;;  %v5433_v56 = vpop.f32.mrb[53].mxu0 }
0x137c   :  { %5279 = vst [vmem:[%s8575_s6 + $0x40] sm:$0xff] %v5268_v42 }
0x137d   :  { %5284 = vsyncpa [#allocation5], 1 }
0x137e   :  { %5285 = vsyncpa [#allocation7], 1 }

</bundles_post_ra>
